<compile_context>
chip_gen: v6e
topology: v6e:2x2x1
jax: 0.10.0
libtpu: 0.0.40
codegen_flags: <defaults>
</compile_context>

<pallas_src>
import functools
import math

import jax
import jax.numpy as jnp
from jax.experimental import pallas as pl
from jax.experimental.pallas import tpu as pltpu

VMEM = pltpu.MemorySpace.VMEM

PARAM_DTYPE = jnp.bfloat16   # matmul weights (bf16 MXU path on v6e/v7x)
ACT_DTYPE = jnp.bfloat16     # activations stored between kernels

# ----- small version-compat shims (keep the optimized path when available) --
_CompilerParams = getattr(pltpu, "CompilerParams", None) or getattr(
    pltpu, "TPUCompilerParams")

if hasattr(pl, "reciprocal"):
    def _recip(x):
        return pl.reciprocal(x, approx=True)
else:                                             # pragma: no cover
    def _recip(x):
        return 1.0 / x


def _parallel_params():
    return _CompilerParams(dimension_semantics=("parallel",))


def _vspec():
    # whole (small) parameter array resident in VMEM across the grid
    return pl.BlockSpec(memory_space=VMEM)


# --------------------------------------------------------------------------
# In-kernel helpers
# --------------------------------------------------------------------------
def _layer_norm_f32(x, g, b, eps=1e-5):
    mu = jnp.mean(x, axis=-1, keepdims=True)
    xc = x - mu
    var = jnp.mean(xc * xc, axis=-1, keepdims=True)
    return xc * jax.lax.rsqrt(var + eps) * g + b


def _causal_shift(h, shift):
    # shift down the time axis (axis 0) by `shift`, zero-fill at the top.
    L = h.shape[0]
    if shift == 0:
        return h
    if shift >= L:
        return jnp.zeros_like(h)
    pad = jnp.zeros((shift,) + h.shape[1:], h.dtype)
    return jnp.concatenate([pad, h[:L - shift]], axis=0)


def _dilated_conv_stack(h, cw_ref, cb_ref, n_layers, ksize):
    # h: [L, C] f32 ; cw_ref: [n_layers, K, 1, C] ; cb_ref: [n_layers, 1, C]
    for layer in range(n_layers):
        dil = 2 ** layer
        acc = jnp.zeros_like(h)
        for t in range(ksize):
            shift = (ksize - 1 - t) * dil
            acc = acc + _causal_shift(h, shift) * cw_ref[layer, t]
        h = jnp.maximum(acc + cb_ref[layer], 0.0)
    return h


# --------------------------------------------------------------------------
# Fused kernels
# --------------------------------------------------------------------------
def _stage_front_kernel(x_ref, cw_ref, cb_ref, we_ref, be_ref, pe_ref, o_ref,
                        *, n_layers, ksize):
    # x_ref: [L, C] (one batch element).  Causal depthwise dilated conv stack
    # + linear embedding to d_model + positional encoding, all in one pass.
    h = _dilated_conv_stack(x_ref[...].astype(jnp.float32), cw_ref, cb_ref,
                            n_layers, ksize)
    emb = jnp.dot(h.astype(we_ref.dtype), we_ref[...],
                  preferred_element_type=jnp.float32)
    o_ref[...] = (emb + be_ref[...] + pe_ref[...]).astype(o_ref.dtype)


def _interstage_block_kernel(xp_ref, xc_ref,
                             wq_ref, bq_ref, wkv_ref, bkv_ref, wo_ref, bo_ref,
                             lnp_g_ref, lnp_b_ref,
                             wg_ref, bg_ref, w1_ref, b1_ref, w2_ref, b2_ref,
                             lnc_g_ref, lnc_b_ref,
                             op_ref, oc_ref, *, n_heads, scale):
    xp = xp_ref[...]                       # [L, D] bf16
    xc = xc_ref[...]
    D = xp.shape[-1]
    dh = D // n_heads

    # fused projections: Q from x_prev, (K|V) from x_curr in one matmul
    q = (jnp.dot(xp, wq_ref[...], preferred_element_type=jnp.float32)
         + bq_ref[...]).astype(jnp.bfloat16)
    kv = (jnp.dot(xc, wkv_ref[...], preferred_element_type=jnp.float32)
          + bkv_ref[...])
    k = kv[:, :D].astype(jnp.bfloat16)
    v = kv[:, D:].astype(jnp.bfloat16)

    # multi-head cross attention (full per-batch scores; f32 softmax stats)
    heads = []
    for head in range(n_heads):
        sl = slice(head * dh, (head + 1) * dh)
        s = jax.lax.dot_general(q[:, sl], k[:, sl], (((1,), (1,)), ((), ())),
                                preferred_element_type=jnp.float32) * scale
        s = s - jnp.max(s, axis=-1, keepdims=True)
        p = jnp.exp(s)
        p = p * _recip(jnp.sum(p, axis=-1, keepdims=True))
        heads.append(jnp.dot(p.astype(jnp.bfloat16), v[:, sl],
                             preferred_element_type=jnp.float32))
    attn = jnp.concatenate(heads, axis=-1)
    att_out = (jnp.dot(attn.astype(jnp.bfloat16), wo_ref[...],
                       preferred_element_type=jnp.float32) + bo_ref[...])

    # residual + LayerNorm (prev branch) fused in-kernel
    xp_new = _layer_norm_f32(xp.astype(jnp.float32) + att_out,
                             lnp_g_ref[...], lnp_b_ref[...])

    # gated FFN mix: gate from the *updated* x_prev, FFN of x_curr
    g_lin = (jnp.dot(xp_new.astype(jnp.bfloat16), wg_ref[...],
                     preferred_element_type=jnp.float32) + bg_ref[...])
    gate = 1.0 / (1.0 + jnp.exp(-g_lin))
    hmid = jnp.maximum(
        jnp.dot(xc, w1_ref[...], preferred_element_type=jnp.float32)
        + b1_ref[...], 0.0)
    ff = (jnp.dot(hmid.astype(jnp.bfloat16), w2_ref[...],
                  preferred_element_type=jnp.float32) + b2_ref[...])

    # residual + LayerNorm (curr branch)
    xc_new = _layer_norm_f32(xc.astype(jnp.float32) + gate * ff,
                             lnc_g_ref[...], lnc_b_ref[...])

    op_ref[...] = xp_new.astype(op_ref.dtype)
    oc_ref[...] = xc_new.astype(oc_ref.dtype)


def _regressor_kernel(x_ref, cw_ref, cb_ref, w1_ref, b1_ref, w2_ref, b2_ref,
                      wt_ref, bt_ref, o_ref, *, n_layers, ksize):
    # x_ref: [L, D].  Conv stack -> d_ff MLP -> scalar per step -> time proj.
    h = _dilated_conv_stack(x_ref[...].astype(jnp.float32), cw_ref, cb_ref,
                            n_layers, ksize)
    h1 = jnp.maximum(
        jnp.dot(h.astype(w1_ref.dtype), w1_ref[...],
                preferred_element_type=jnp.float32) + b1_ref[...], 0.0)
    # head2 (d_ff -> 1) as a lane reduction: the narrow column stays in vregs.
    z = jnp.sum(h1 * w2_ref[...], axis=-1, keepdims=True) + b2_ref[...]   # [L,1]
    # time projection seq_len -> pred_len via broadcast-multiply + sublane sum
    out = jnp.sum(z * wt_ref[...], axis=0, keepdims=True) + bt_ref[...]   # [1,P]
    o_ref[...] = out.astype(o_ref.dtype)


# --------------------------------------------------------------------------
# pallas_call wrappers
# --------------------------------------------------------------------------
def stage_front(x_s, p, pe):
    B, L, C = x_s.shape
    D = p["we"].shape[1]
    n_layers, ksize = p["cw"].shape[0], p["cw"].shape[1]
    return pl.pallas_call(
        functools.partial(_stage_front_kernel, n_layers=n_layers, ksize=ksize),
        out_shape=jax.ShapeDtypeStruct((B, L, D), ACT_DTYPE),
        grid=(B,),
        in_specs=[pl.BlockSpec((None, L, C), lambda b: (b, 0, 0)),
                  _vspec(), _vspec(), _vspec(), _vspec(), _vspec()],
        out_specs=pl.BlockSpec((None, L, D), lambda b: (b, 0, 0)),
        compiler_params=_parallel_params(),
    )(x_s, p["cw"], p["cb"], p["we"], p["be"], pe)


def interstage_block(blk, x_prev, x_curr, n_heads):
    B, L, D = x_prev.shape
    scale = 1.0 / math.sqrt(D // n_heads)
    io_spec = pl.BlockSpec((None, L, D), lambda b: (b, 0, 0))
    return pl.pallas_call(
        functools.partial(_interstage_block_kernel,
                          n_heads=n_heads, scale=scale),
        out_shape=(jax.ShapeDtypeStruct((B, L, D), ACT_DTYPE),
                   jax.ShapeDtypeStruct((B, L, D), ACT_DTYPE)),
        grid=(B,),
        in_specs=[io_spec, io_spec] + [_vspec()] * 16,
        out_specs=(io_spec, io_spec),
        compiler_params=_parallel_params(),
    )(x_prev, x_curr,
      blk["wq"], blk["bq"], blk["wkv"], blk["bkv"], blk["wo"], blk["bo"],
      blk["lnp_g"], blk["lnp_b"],
      blk["wg"], blk["bg"], blk["w1"], blk["b1"], blk["w2"], blk["b2"],
      blk["lnc_g"], blk["lnc_b"])


def regressor(p, x):
    B, L, D = x.shape
    P = p["wt"].shape[1]
    n_layers, ksize = p["cw"].shape[0], p["cw"].shape[1]
    out = pl.pallas_call(
        functools.partial(_regressor_kernel, n_layers=n_layers, ksize=ksize),
        out_shape=jax.ShapeDtypeStruct((B, 1, P), jnp.float32),
        grid=(B,),
        in_specs=[pl.BlockSpec((None, L, D), lambda b: (b, 0, 0))]
                 + [_vspec()] * 8,
        out_specs=pl.BlockSpec((None, 1, P), lambda b: (b, 0, 0)),
        compiler_params=_parallel_params(),
    )(x, p["cw"], p["cb"], p["w1"], p["b1"], p["w2"], p["b2"],
      p["wt"], p["bt"])
    return out[:, 0, :]


# --------------------------------------------------------------------------
# Model glue
# --------------------------------------------------------------------------
def positional_encoding(L, d_model):
    pos = jnp.arange(L, dtype=jnp.float32)[:, None]
    div = jnp.exp(jnp.arange(0, d_model, 2, dtype=jnp.float32)
                  * (-math.log(10000.0) / d_model))
    pe = jnp.zeros((L, d_model), jnp.float32)
    pe = pe.at[:, 0::2].set(jnp.sin(pos * div))
    pe = pe.at[:, 1::2].set(jnp.cos(pos * div[: d_model // 2]))   # odd-D safe
    return pe


def multistage_layer(blocks, x_list, n_heads):
    out_list = []
    out = None
    for i, blk in enumerate(blocks):
        prev = x_list[0] if i == 0 else out[1]
        out = interstage_block(blk, prev, x_list[i + 1], n_heads)
        out_list.append(out[0])
    out_list.append(out[1])
    return out_list


def multistage_net_forward(params, x, *, stage_w, n_heads):
    B, L, _ = x.shape
    d_model = params["front"][0]["we"].shape[1]
    pe = positional_encoding(L, d_model)          # constant-folded under jit

    # per-stage fused conv + embedding + PE
    embeds = []
    start = 0
    for s, cs in enumerate(stage_w):
        x_s = x[:, :, start:start + cs]
        start += cs
        embeds.append(stage_front(x_s, params["front"][s], pe))

    # stacked multistage (interstage) layers, one fused kernel per block
    out_list = embeds
    for blocks in params["multistage"]:
        out_list = multistage_layer(blocks, out_list, n_heads)

    # fused regressor head on the final stage representation
    return regressor(params["regressor"], out_list[-1])


# --------------------------------------------------------------------------
# Deterministic parameter init
# --------------------------------------------------------------------------
def init_params(key, *, stage_w, d_model, d_ff, kernel_size, n_temporal,
                n_multistage, n_regressor, seq_len, pred_len):
    n_stage = len(stage_w)
    state = [key]

    def nk():
        state[0], sub = jax.random.split(state[0])
        return sub

    def w(shape, scale=0.02, dtype=PARAM_DTYPE):
        return (jax.random.normal(nk(), shape, jnp.float32) * scale).astype(dtype)

    def front(c):
        return {"cw": w((n_temporal, kernel_size, 1, c), 0.1, jnp.float32),
                "cb": jnp.zeros((n_temporal, 1, c), jnp.float32),
                "we": w((c, d_model)),
                "be": jnp.zeros((1, d_model), jnp.float32)}

    def block():
        return {"wq": w((d_model, d_model)),
                "bq": jnp.zeros((1, d_model), jnp.float32),
                "wkv": w((d_model, 2 * d_model)),
                "bkv": jnp.zeros((1, 2 * d_model), jnp.float32),
                "wo": w((d_model, d_model)),
                "bo": jnp.zeros((1, d_model), jnp.float32),
                "lnp_g": jnp.ones((1, d_model), jnp.float32),
                "lnp_b": jnp.zeros((1, d_model), jnp.float32),
                "wg": w((d_model, d_model)),
                "bg": jnp.zeros((1, d_model), jnp.float32),
                "w1": w((d_model, d_ff)),
                "b1": jnp.zeros((1, d_ff), jnp.float32),
                "w2": w((d_ff, d_model)),
                "b2": jnp.zeros((1, d_model), jnp.float32),
                "lnc_g": jnp.ones((1, d_model), jnp.float32),
                "lnc_b": jnp.zeros((1, d_model), jnp.float32)}

    return {
        "front": [front(stage_w[s]) for s in range(n_stage)],
        "multistage": [[block() for _ in range(n_stage - 1)]
                       for _ in range(n_multistage)],
        "regressor": {
            "cw": w((n_regressor, kernel_size, 1, d_model), 0.1, jnp.float32),
            "cb": jnp.zeros((n_regressor, 1, d_model), jnp.float32),
            "w1": w((d_model, d_ff)),
            "b1": jnp.zeros((1, d_ff), jnp.float32),
            "w2": w((1, d_ff), 0.02, jnp.float32),      # head2 as row vector
            "b2": jnp.zeros((1, 1), jnp.float32),
            "wt": w((seq_len, pred_len), 0.02, jnp.float32),
            "bt": jnp.zeros((1, pred_len), jnp.float32),
        },
    }


# --------------------------------------------------------------------------
if __name__ == "__main__":
    B = 2
    seq_len = 8
    stage_w = (3, 4, 5)          # n_stage = 3, total input features = 12
    d_model = 32
    d_ff = 64
    kernel_size = 3
    n_attention_heads = 4
    n_temporal_layers = 2
    n_multistage_layers = 2
    n_regressor_layers = 2
    pred_len = 4

    key = jax.random.PRNGKey(0)
    pkey, xkey = jax.random.split(key)

    params = init_params(
        pkey, stage_w=stage_w, d_model=d_model, d_ff=d_ff,
        kernel_size=kernel_size, n_temporal=n_temporal_layers,
        n_multistage=n_multistage_layers, n_regressor=n_regressor_layers,
        seq_len=seq_len, pred_len=pred_len)

    x = jax.random.normal(xkey, (B, seq_len, sum(stage_w)), jnp.float32)

    fwd = jax.jit(functools.partial(multistage_net_forward,
                                    stage_w=stage_w,
                                    n_heads=n_attention_heads))
    out = fwd(params, x)
    jax.block_until_ready(out)
    assert out.shape == (B, pred_len), out.shape
    assert bool(jnp.all(jnp.isfinite(out)))
    print("KERNEL_OK")
</pallas_src>

<mosaic_0001>
module attributes {stable_mosaic.version = 11 : i64} {
  func.func @_stage_front_kernel(%arg0: i32, %arg1: memref<1x8x4xf32, #tpu.memory_space<vmem>>, %arg2: memref<2x3x1x4xf32, #tpu.memory_space<vmem>>, %arg3: memref<2x1x4xf32, #tpu.memory_space<vmem>>, %arg4: memref<4x32xbf16, #tpu.memory_space<vmem>>, %arg5: memref<1x32xf32, #tpu.memory_space<vmem>>, %arg6: memref<8x32xf32, #tpu.memory_space<vmem>>, %arg7: memref<1x8x32xbf16, #tpu.memory_space<vmem>>) attributes {dimension_semantics = [#tpu.dimension_semantics<parallel>], iteration_bounds = array<i64: 2>, scalar_prefetch = 0 : i64, scratch_operands = 0 : i64, tpu.core_type = #tpu.core_type<tc>, window_params = [{transform_indices = @transform_0, window_bounds = array<i64: 1, 8, 4>}, {pipeline_mode = #tpu.pipeline_mode<synchronous>, transform_indices = @transform_1, window_bounds = array<i64: 2, 3, 1, 4>}, {pipeline_mode = #tpu.pipeline_mode<synchronous>, transform_indices = @transform_2, window_bounds = array<i64: 2, 1, 4>}, {pipeline_mode = #tpu.pipeline_mode<synchronous>, transform_indices = @transform_3, window_bounds = array<i64: 4, 32>}, {pipeline_mode = #tpu.pipeline_mode<synchronous>, transform_indices = @transform_4, window_bounds = array<i64: 1, 32>}, {pipeline_mode = #tpu.pipeline_mode<synchronous>, transform_indices = @transform_5, window_bounds = array<i64: 8, 32>}, {transform_indices = @transform_6, window_bounds = array<i64: 1, 8, 32>}]} {
    %c0 = arith.constant 0 : index
    %c0_0 = arith.constant 0 : index
    %c0_1 = arith.constant 0 : index
    %0 = vector.load %arg1[%c0, %c0_0, %c0_1] : memref<1x8x4xf32, #tpu.memory_space<vmem>>, vector<1x8x4xf32>
    %1 = vector.shape_cast %0 : vector<1x8x4xf32> to vector<8x4xf32>
    %cst = arith.constant 0.000000e+00 : f32
    %2 = vector.broadcast %cst : f32 to vector<8x4xf32>
    %cst_2 = arith.constant 0.000000e+00 : f32
    %3 = vector.broadcast %cst_2 : f32 to vector<2x4xf32>
    %4 = vector.extract_strided_slice %1 {offsets = [0, 0], sizes = [6, 4], strides = [1, 1]} : vector<8x4xf32> to vector<6x4xf32>
    %5 = tpu.concatenate %3, %4 in 0 : vector<2x4xf32>, vector<6x4xf32> -> vector<8x4xf32>
    %c0_3 = arith.constant 0 : index
    %c0_4 = arith.constant 0 : index
    %c0_5 = arith.constant 0 : index
    %c0_6 = arith.constant 0 : index
    %6 = vector.load %arg2[%c0_3, %c0_4, %c0_5, %c0_6] : memref<2x3x1x4xf32, #tpu.memory_space<vmem>>, vector<1x1x1x4xf32>
    %7 = vector.shape_cast %6 : vector<1x1x1x4xf32> to vector<1x4xf32>
    %8 = vector.broadcast %7 : vector<1x4xf32> to vector<8x4xf32>
    %9 = arith.mulf %5, %8 : vector<8x4xf32>
    %10 = arith.addf %2, %9 : vector<8x4xf32>
    %cst_7 = arith.constant 0.000000e+00 : f32
    %11 = vector.broadcast %cst_7 : f32 to vector<1x4xf32>
    %12 = vector.extract_strided_slice %1 {offsets = [0, 0], sizes = [7, 4], strides = [1, 1]} : vector<8x4xf32> to vector<7x4xf32>
    %13 = tpu.concatenate %11, %12 in 0 : vector<1x4xf32>, vector<7x4xf32> -> vector<8x4xf32>
    %c0_8 = arith.constant 0 : index
    %c1 = arith.constant 1 : index
    %c0_9 = arith.constant 0 : index
    %c0_10 = arith.constant 0 : index
    %14 = vector.load %arg2[%c0_8, %c1, %c0_9, %c0_10] : memref<2x3x1x4xf32, #tpu.memory_space<vmem>>, vector<1x1x1x4xf32>
    %15 = vector.shape_cast %14 : vector<1x1x1x4xf32> to vector<1x4xf32>
    %16 = vector.broadcast %15 : vector<1x4xf32> to vector<8x4xf32>
    %17 = arith.mulf %13, %16 : vector<8x4xf32>
    %18 = arith.addf %10, %17 : vector<8x4xf32>
    %c0_11 = arith.constant 0 : index
    %c2 = arith.constant 2 : index
    %c0_12 = arith.constant 0 : index
    %c0_13 = arith.constant 0 : index
    %19 = vector.load %arg2[%c0_11, %c2, %c0_12, %c0_13] : memref<2x3x1x4xf32, #tpu.memory_space<vmem>>, vector<1x1x1x4xf32>
    %20 = vector.shape_cast %19 : vector<1x1x1x4xf32> to vector<1x4xf32>
    %21 = vector.broadcast %20 : vector<1x4xf32> to vector<8x4xf32>
    %22 = arith.mulf %1, %21 : vector<8x4xf32>
    %23 = arith.addf %18, %22 : vector<8x4xf32>
    %c0_14 = arith.constant 0 : index
    %c0_15 = arith.constant 0 : index
    %c0_16 = arith.constant 0 : index
    %24 = vector.load %arg3[%c0_14, %c0_15, %c0_16] : memref<2x1x4xf32, #tpu.memory_space<vmem>>, vector<1x1x4xf32>
    %25 = vector.shape_cast %24 : vector<1x1x4xf32> to vector<1x4xf32>
    %26 = vector.broadcast %25 : vector<1x4xf32> to vector<8x4xf32>
    %27 = arith.addf %23, %26 : vector<8x4xf32>
    %cst_17 = arith.constant 0.000000e+00 : f32
    %28 = vector.broadcast %cst_17 : f32 to vector<8x4xf32>
    %29 = arith.maximumf %27, %28 : vector<8x4xf32>
    %cst_18 = arith.constant 0.000000e+00 : f32
    %30 = vector.broadcast %cst_18 : f32 to vector<8x4xf32>
    %cst_19 = arith.constant 0.000000e+00 : f32
    %31 = vector.broadcast %cst_19 : f32 to vector<4x4xf32>
    %32 = vector.extract_strided_slice %29 {offsets = [0, 0], sizes = [4, 4], strides = [1, 1]} : vector<8x4xf32> to vector<4x4xf32>
    %33 = tpu.concatenate %31, %32 in 0 : vector<4x4xf32>, vector<4x4xf32> -> vector<8x4xf32>
    %c1_20 = arith.constant 1 : index
    %c0_21 = arith.constant 0 : index
    %c0_22 = arith.constant 0 : index
    %c0_23 = arith.constant 0 : index
    %34 = vector.load %arg2[%c1_20, %c0_21, %c0_22, %c0_23] : memref<2x3x1x4xf32, #tpu.memory_space<vmem>>, vector<1x1x1x4xf32>
    %35 = vector.shape_cast %34 : vector<1x1x1x4xf32> to vector<1x4xf32>
    %36 = vector.broadcast %35 : vector<1x4xf32> to vector<8x4xf32>
    %37 = arith.mulf %33, %36 : vector<8x4xf32>
    %38 = arith.addf %30, %37 : vector<8x4xf32>
    %cst_24 = arith.constant 0.000000e+00 : f32
    %39 = vector.broadcast %cst_24 : f32 to vector<2x4xf32>
    %40 = vector.extract_strided_slice %29 {offsets = [0, 0], sizes = [6, 4], strides = [1, 1]} : vector<8x4xf32> to vector<6x4xf32>
    %41 = tpu.concatenate %39, %40 in 0 : vector<2x4xf32>, vector<6x4xf32> -> vector<8x4xf32>
    %c1_25 = arith.constant 1 : index
    %c1_26 = arith.constant 1 : index
    %c0_27 = arith.constant 0 : index
    %c0_28 = arith.constant 0 : index
    %42 = vector.load %arg2[%c1_25, %c1_26, %c0_27, %c0_28] : memref<2x3x1x4xf32, #tpu.memory_space<vmem>>, vector<1x1x1x4xf32>
    %43 = vector.shape_cast %42 : vector<1x1x1x4xf32> to vector<1x4xf32>
    %44 = vector.broadcast %43 : vector<1x4xf32> to vector<8x4xf32>
    %45 = arith.mulf %41, %44 : vector<8x4xf32>
    %46 = arith.addf %38, %45 : vector<8x4xf32>
    %c1_29 = arith.constant 1 : index
    %c2_30 = arith.constant 2 : index
    %c0_31 = arith.constant 0 : index
    %c0_32 = arith.constant 0 : index
    %47 = vector.load %arg2[%c1_29, %c2_30, %c0_31, %c0_32] : memref<2x3x1x4xf32, #tpu.memory_space<vmem>>, vector<1x1x1x4xf32>
    %48 = vector.shape_cast %47 : vector<1x1x1x4xf32> to vector<1x4xf32>
    %49 = vector.broadcast %48 : vector<1x4xf32> to vector<8x4xf32>
    %50 = arith.mulf %29, %49 : vector<8x4xf32>
    %51 = arith.addf %46, %50 : vector<8x4xf32>
    %c1_33 = arith.constant 1 : index
    %c0_34 = arith.constant 0 : index
    %c0_35 = arith.constant 0 : index
    %52 = vector.load %arg3[%c1_33, %c0_34, %c0_35] : memref<2x1x4xf32, #tpu.memory_space<vmem>>, vector<1x1x4xf32>
    %53 = vector.shape_cast %52 : vector<1x1x4xf32> to vector<1x4xf32>
    %54 = vector.broadcast %53 : vector<1x4xf32> to vector<8x4xf32>
    %55 = arith.addf %51, %54 : vector<8x4xf32>
    %cst_36 = arith.constant 0.000000e+00 : f32
    %56 = vector.broadcast %cst_36 : f32 to vector<8x4xf32>
    %57 = arith.maximumf %55, %56 : vector<8x4xf32>
    %58 = arith.truncf %57 : vector<8x4xf32> to vector<8x4xbf16>
    %c0_37 = arith.constant 0 : index
    %c0_38 = arith.constant 0 : index
    %59 = vector.load %arg4[%c0_37, %c0_38] : memref<4x32xbf16, #tpu.memory_space<vmem>>, vector<4x32xbf16>
    %cst_39 = arith.constant dense<0.000000e+00> : vector<8x32xf32>
    %60 = tpu.matmul %58, %59, %cst_39 {dimension_numbers = #tpu.dot_dimension_numbers<[1], [0], [0], [1], [0, 0, 1, 1], [], []>} : vector<8x4xbf16>, vector<4x32xbf16>, vector<8x32xf32> -> vector<8x32xf32>
    %c0_40 = arith.constant 0 : index
    %c0_41 = arith.constant 0 : index
    %61 = vector.load %arg5[%c0_40, %c0_41] : memref<1x32xf32, #tpu.memory_space<vmem>>, vector<1x32xf32>
    %62 = vector.broadcast %61 : vector<1x32xf32> to vector<8x32xf32>
    %63 = arith.addf %60, %62 : vector<8x32xf32>
    %c0_42 = arith.constant 0 : index
    %c0_43 = arith.constant 0 : index
    %64 = vector.load %arg6[%c0_42, %c0_43] : memref<8x32xf32, #tpu.memory_space<vmem>>, vector<8x32xf32>
    %65 = arith.addf %63, %64 : vector<8x32xf32>
    %66 = arith.truncf %65 : vector<8x32xf32> to vector<8x32xbf16>
    %c0_44 = arith.constant 0 : index
    %c0_45 = arith.constant 0 : index
    %c0_46 = arith.constant 0 : index
    %67 = vector.load %arg7[%c0_44, %c0_45, %c0_46] : memref<1x8x32xbf16, #tpu.memory_space<vmem>>, vector<1x8x32xbf16>
    %68 = vector.shape_cast %67 : vector<1x8x32xbf16> to vector<8x32xbf16>
    %69 = vector.shape_cast %66 : vector<8x32xbf16> to vector<1x8x32xbf16>
    tpu.vector_store %arg7[%c0_44, %c0_45, %c0_46], %69 {strides = array<i32>} : memref<1x8x32xbf16, #tpu.memory_space<vmem>>, vector<1x8x32xbf16>,
    return
  }
  func.func @transform_0(%arg0: i32) -> (i32, i32, i32) {
    %c0_i32 = arith.constant 0 : i32
    %c0_i32_0 = arith.constant 0 : i32
    %c0_i32_1 = arith.constant 0 : i32
    return %arg0, %c0_i32, %c0_i32_0 : i32, i32, i32
  }
  func.func @transform_1(%arg0: i32) -> (i32, i32, i32, i32) {
    %c0_i32 = arith.constant 0 : i32
    %c0_i32_0 = arith.constant 0 : i32
    %c0_i32_1 = arith.constant 0 : i32
    %c0_i32_2 = arith.constant 0 : i32
    %c0_i32_3 = arith.constant 0 : i32
    return %c0_i32, %c0_i32_0, %c0_i32_1, %c0_i32_2 : i32, i32, i32, i32
  }
  func.func @transform_2(%arg0: i32) -> (i32, i32, i32) {
    %c0_i32 = arith.constant 0 : i32
    %c0_i32_0 = arith.constant 0 : i32
    %c0_i32_1 = arith.constant 0 : i32
    %c0_i32_2 = arith.constant 0 : i32
    return %c0_i32, %c0_i32_0, %c0_i32_1 : i32, i32, i32
  }
  func.func @transform_3(%arg0: i32) -> (i32, i32) {
    %c0_i32 = arith.constant 0 : i32
    %c0_i32_0 = arith.constant 0 : i32
    %c0_i32_1 = arith.constant 0 : i32
    return %c0_i32, %c0_i32_0 : i32, i32
  }
  func.func @transform_4(%arg0: i32) -> (i32, i32) {
    %c0_i32 = arith.constant 0 : i32
    %c0_i32_0 = arith.constant 0 : i32
    %c0_i32_1 = arith.constant 0 : i32
    return %c0_i32, %c0_i32_0 : i32, i32
  }
  func.func @transform_5(%arg0: i32) -> (i32, i32) {
    %c0_i32 = arith.constant 0 : i32
    %c0_i32_0 = arith.constant 0 : i32
    %c0_i32_1 = arith.constant 0 : i32
    return %c0_i32, %c0_i32_0 : i32, i32
  }
  func.func @transform_6(%arg0: i32) -> (i32, i32, i32) {
    %c0_i32 = arith.constant 0 : i32
    %c0_i32_0 = arith.constant 0 : i32
    %c0_i32_1 = arith.constant 0 : i32
    return %arg0, %c0_i32, %c0_i32_0 : i32, i32, i32
  }
}

module attributes {stable_mosaic.version = 11 : i64} {
  func.func @_stage_front_kernel(%arg0: i32, %arg1: memref<1x8x3xf32, #tpu.memory_space<vmem>>, %arg2: memref<2x3x1x3xf32, #tpu.memory_space<vmem>>, %arg3: memref<2x1x3xf32, #tpu.memory_space<vmem>>, %arg4: memref<3x32xbf16, #tpu.memory_space<vmem>>, %arg5: memref<1x32xf32, #tpu.memory_space<vmem>>, %arg6: memref<8x32xf32, #tpu.memory_space<vmem>>, %arg7: memref<1x8x32xbf16, #tpu.memory_space<vmem>>) attributes {dimension_semantics = [#tpu.dimension_semantics<parallel>], iteration_bounds = array<i64: 2>, scalar_prefetch = 0 : i64, scratch_operands = 0 : i64, tpu.core_type = #tpu.core_type<tc>, window_params = [{transform_indices = @transform_0, window_bounds = array<i64: 1, 8, 3>}, {pipeline_mode = #tpu.pipeline_mode<synchronous>, transform_indices = @transform_1, window_bounds = array<i64: 2, 3, 1, 3>}, {pipeline_mode = #tpu.pipeline_mode<synchronous>, transform_indices = @transform_2, window_bounds = array<i64: 2, 1, 3>}, {pipeline_mode = #tpu.pipeline_mode<synchronous>, transform_indices = @transform_3, window_bounds = array<i64: 3, 32>}, {pipeline_mode = #tpu.pipeline_mode<synchronous>, transform_indices = @transform_4, window_bounds = array<i64: 1, 32>}, {pipeline_mode = #tpu.pipeline_mode<synchronous>, transform_indices = @transform_5, window_bounds = array<i64: 8, 32>}, {transform_indices = @transform_6, window_bounds = array<i64: 1, 8, 32>}]} {
    %c0 = arith.constant 0 : index
    %c0_0 = arith.constant 0 : index
    %c0_1 = arith.constant 0 : index
    %0 = vector.load %arg1[%c0, %c0_0, %c0_1] : memref<1x8x3xf32, #tpu.memory_space<vmem>>, vector<1x8x3xf32>
    %1 = vector.shape_cast %0 : vector<1x8x3xf32> to vector<8x3xf32>
    %cst = arith.constant 0.000000e+00 : f32
    %2 = vector.broadcast %cst : f32 to vector<8x3xf32>
    %cst_2 = arith.constant 0.000000e+00 : f32
    %3 = vector.broadcast %cst_2 : f32 to vector<2x3xf32>
    %4 = vector.extract_strided_slice %1 {offsets = [0, 0], sizes = [6, 3], strides = [1, 1]} : vector<8x3xf32> to vector<6x3xf32>
    %5 = tpu.concatenate %3, %4 in 0 : vector<2x3xf32>, vector<6x3xf32> -> vector<8x3xf32>
    %c0_3 = arith.constant 0 : index
    %c0_4 = arith.constant 0 : index
    %c0_5 = arith.constant 0 : index
    %c0_6 = arith.constant 0 : index
    %6 = vector.load %arg2[%c0_3, %c0_4, %c0_5, %c0_6] : memref<2x3x1x3xf32, #tpu.memory_space<vmem>>, vector<1x1x1x3xf32>
    %7 = vector.shape_cast %6 : vector<1x1x1x3xf32> to vector<1x3xf32>
    %8 = vector.broadcast %7 : vector<1x3xf32> to vector<8x3xf32>
    %9 = arith.mulf %5, %8 : vector<8x3xf32>
    %10 = arith.addf %2, %9 : vector<8x3xf32>
    %cst_7 = arith.constant 0.000000e+00 : f32
    %11 = vector.broadcast %cst_7 : f32 to vector<1x3xf32>
    %12 = vector.extract_strided_slice %1 {offsets = [0, 0], sizes = [7, 3], strides = [1, 1]} : vector<8x3xf32> to vector<7x3xf32>
    %13 = tpu.concatenate %11, %12 in 0 : vector<1x3xf32>, vector<7x3xf32> -> vector<8x3xf32>
    %c0_8 = arith.constant 0 : index
    %c1 = arith.constant 1 : index
    %c0_9 = arith.constant 0 : index
    %c0_10 = arith.constant 0 : index
    %14 = vector.load %arg2[%c0_8, %c1, %c0_9, %c0_10] : memref<2x3x1x3xf32, #tpu.memory_space<vmem>>, vector<1x1x1x3xf32>
    %15 = vector.shape_cast %14 : vector<1x1x1x3xf32> to vector<1x3xf32>
    %16 = vector.broadcast %15 : vector<1x3xf32> to vector<8x3xf32>
    %17 = arith.mulf %13, %16 : vector<8x3xf32>
    %18 = arith.addf %10, %17 : vector<8x3xf32>
    %c0_11 = arith.constant 0 : index
    %c2 = arith.constant 2 : index
    %c0_12 = arith.constant 0 : index
    %c0_13 = arith.constant 0 : index
    %19 = vector.load %arg2[%c0_11, %c2, %c0_12, %c0_13] : memref<2x3x1x3xf32, #tpu.memory_space<vmem>>, vector<1x1x1x3xf32>
    %20 = vector.shape_cast %19 : vector<1x1x1x3xf32> to vector<1x3xf32>
    %21 = vector.broadcast %20 : vector<1x3xf32> to vector<8x3xf32>
    %22 = arith.mulf %1, %21 : vector<8x3xf32>
    %23 = arith.addf %18, %22 : vector<8x3xf32>
    %c0_14 = arith.constant 0 : index
    %c0_15 = arith.constant 0 : index
    %c0_16 = arith.constant 0 : index
    %24 = vector.load %arg3[%c0_14, %c0_15, %c0_16] : memref<2x1x3xf32, #tpu.memory_space<vmem>>, vector<1x1x3xf32>
    %25 = vector.shape_cast %24 : vector<1x1x3xf32> to vector<1x3xf32>
    %26 = vector.broadcast %25 : vector<1x3xf32> to vector<8x3xf32>
    %27 = arith.addf %23, %26 : vector<8x3xf32>
    %cst_17 = arith.constant 0.000000e+00 : f32
    %28 = vector.broadcast %cst_17 : f32 to vector<8x3xf32>
    %29 = arith.maximumf %27, %28 : vector<8x3xf32>
    %cst_18 = arith.constant 0.000000e+00 : f32
    %30 = vector.broadcast %cst_18 : f32 to vector<8x3xf32>
    %cst_19 = arith.constant 0.000000e+00 : f32
    %31 = vector.broadcast %cst_19 : f32 to vector<4x3xf32>
    %32 = vector.extract_strided_slice %29 {offsets = [0, 0], sizes = [4, 3], strides = [1, 1]} : vector<8x3xf32> to vector<4x3xf32>
    %33 = tpu.concatenate %31, %32 in 0 : vector<4x3xf32>, vector<4x3xf32> -> vector<8x3xf32>
    %c1_20 = arith.constant 1 : index
    %c0_21 = arith.constant 0 : index
    %c0_22 = arith.constant 0 : index
    %c0_23 = arith.constant 0 : index
    %34 = vector.load %arg2[%c1_20, %c0_21, %c0_22, %c0_23] : memref<2x3x1x3xf32, #tpu.memory_space<vmem>>, vector<1x1x1x3xf32>
    %35 = vector.shape_cast %34 : vector<1x1x1x3xf32> to vector<1x3xf32>
    %36 = vector.broadcast %35 : vector<1x3xf32> to vector<8x3xf32>
    %37 = arith.mulf %33, %36 : vector<8x3xf32>
    %38 = arith.addf %30, %37 : vector<8x3xf32>
    %cst_24 = arith.constant 0.000000e+00 : f32
    %39 = vector.broadcast %cst_24 : f32 to vector<2x3xf32>
    %40 = vector.extract_strided_slice %29 {offsets = [0, 0], sizes = [6, 3], strides = [1, 1]} : vector<8x3xf32> to vector<6x3xf32>
    %41 = tpu.concatenate %39, %40 in 0 : vector<2x3xf32>, vector<6x3xf32> -> vector<8x3xf32>
    %c1_25 = arith.constant 1 : index
    %c1_26 = arith.constant 1 : index
    %c0_27 = arith.constant 0 : index
    %c0_28 = arith.constant 0 : index
    %42 = vector.load %arg2[%c1_25, %c1_26, %c0_27, %c0_28] : memref<2x3x1x3xf32, #tpu.memory_space<vmem>>, vector<1x1x1x3xf32>
    %43 = vector.shape_cast %42 : vector<1x1x1x3xf32> to vector<1x3xf32>
    %44 = vector.broadcast %43 : vector<1x3xf32> to vector<8x3xf32>
    %45 = arith.mulf %41, %44 : vector<8x3xf32>
    %46 = arith.addf %38, %45 : vector<8x3xf32>
    %c1_29 = arith.constant 1 : index
    %c2_30 = arith.constant 2 : index
    %c0_31 = arith.constant 0 : index
    %c0_32 = arith.constant 0 : index
    %47 = vector.load %arg2[%c1_29, %c2_30, %c0_31, %c0_32] : memref<2x3x1x3xf32, #tpu.memory_space<vmem>>, vector<1x1x1x3xf32>
    %48 = vector.shape_cast %47 : vector<1x1x1x3xf32> to vector<1x3xf32>
    %49 = vector.broadcast %48 : vector<1x3xf32> to vector<8x3xf32>
    %50 = arith.mulf %29, %49 : vector<8x3xf32>
    %51 = arith.addf %46, %50 : vector<8x3xf32>
    %c1_33 = arith.constant 1 : index
    %c0_34 = arith.constant 0 : index
    %c0_35 = arith.constant 0 : index
    %52 = vector.load %arg3[%c1_33, %c0_34, %c0_35] : memref<2x1x3xf32, #tpu.memory_space<vmem>>, vector<1x1x3xf32>
    %53 = vector.shape_cast %52 : vector<1x1x3xf32> to vector<1x3xf32>
    %54 = vector.broadcast %53 : vector<1x3xf32> to vector<8x3xf32>
    %55 = arith.addf %51, %54 : vector<8x3xf32>
    %cst_36 = arith.constant 0.000000e+00 : f32
    %56 = vector.broadcast %cst_36 : f32 to vector<8x3xf32>
    %57 = arith.maximumf %55, %56 : vector<8x3xf32>
    %58 = arith.truncf %57 : vector<8x3xf32> to vector<8x3xbf16>
    %c0_37 = arith.constant 0 : index
    %c0_38 = arith.constant 0 : index
    %59 = vector.load %arg4[%c0_37, %c0_38] : memref<3x32xbf16, #tpu.memory_space<vmem>>, vector<3x32xbf16>
    %cst_39 = arith.constant dense<0.000000e+00> : vector<8x32xf32>
    %60 = tpu.matmul %58, %59, %cst_39 {dimension_numbers = #tpu.dot_dimension_numbers<[1], [0], [0], [1], [0, 0, 1, 1], [], []>} : vector<8x3xbf16>, vector<3x32xbf16>, vector<8x32xf32> -> vector<8x32xf32>
    %c0_40 = arith.constant 0 : index
    %c0_41 = arith.constant 0 : index
    %61 = vector.load %arg5[%c0_40, %c0_41] : memref<1x32xf32, #tpu.memory_space<vmem>>, vector<1x32xf32>
    %62 = vector.broadcast %61 : vector<1x32xf32> to vector<8x32xf32>
    %63 = arith.addf %60, %62 : vector<8x32xf32>
    %c0_42 = arith.constant 0 : index
    %c0_43 = arith.constant 0 : index
    %64 = vector.load %arg6[%c0_42, %c0_43] : memref<8x32xf32, #tpu.memory_space<vmem>>, vector<8x32xf32>
    %65 = arith.addf %63, %64 : vector<8x32xf32>
    %66 = arith.truncf %65 : vector<8x32xf32> to vector<8x32xbf16>
    %c0_44 = arith.constant 0 : index
    %c0_45 = arith.constant 0 : index
    %c0_46 = arith.constant 0 : index
    %67 = vector.load %arg7[%c0_44, %c0_45, %c0_46] : memref<1x8x32xbf16, #tpu.memory_space<vmem>>, vector<1x8x32xbf16>
    %68 = vector.shape_cast %67 : vector<1x8x32xbf16> to vector<8x32xbf16>
    %69 = vector.shape_cast %66 : vector<8x32xbf16> to vector<1x8x32xbf16>
    tpu.vector_store %arg7[%c0_44, %c0_45, %c0_46], %69 {strides = array<i32>} : memref<1x8x32xbf16, #tpu.memory_space<vmem>>, vector<1x8x32xbf16>,
    return
  }
  func.func @transform_0(%arg0: i32) -> (i32, i32, i32) {
    %c0_i32 = arith.constant 0 : i32
    %c0_i32_0 = arith.constant 0 : i32
    %c0_i32_1 = arith.constant 0 : i32
    return %arg0, %c0_i32, %c0_i32_0 : i32, i32, i32
  }
  func.func @transform_1(%arg0: i32) -> (i32, i32, i32, i32) {
    %c0_i32 = arith.constant 0 : i32
    %c0_i32_0 = arith.constant 0 : i32
    %c0_i32_1 = arith.constant 0 : i32
    %c0_i32_2 = arith.constant 0 : i32
    %c0_i32_3 = arith.constant 0 : i32
    return %c0_i32, %c0_i32_0, %c0_i32_1, %c0_i32_2 : i32, i32, i32, i32
  }
  func.func @transform_2(%arg0: i32) -> (i32, i32, i32) {
    %c0_i32 = arith.constant 0 : i32
    %c0_i32_0 = arith.constant 0 : i32
    %c0_i32_1 = arith.constant 0 : i32
    %c0_i32_2 = arith.constant 0 : i32
    return %c0_i32, %c0_i32_0, %c0_i32_1 : i32, i32, i32
  }
  func.func @transform_3(%arg0: i32) -> (i32, i32) {
    %c0_i32 = arith.constant 0 : i32
    %c0_i32_0 = arith.constant 0 : i32
    %c0_i32_1 = arith.constant 0 : i32
    return %c0_i32, %c0_i32_0 : i32, i32
  }
  func.func @transform_4(%arg0: i32) -> (i32, i32) {
    %c0_i32 = arith.constant 0 : i32
    %c0_i32_0 = arith.constant 0 : i32
    %c0_i32_1 = arith.constant 0 : i32
    return %c0_i32, %c0_i32_0 : i32, i32
  }
  func.func @transform_5(%arg0: i32) -> (i32, i32) {
    %c0_i32 = arith.constant 0 : i32
    %c0_i32_0 = arith.constant 0 : i32
    %c0_i32_1 = arith.constant 0 : i32
    return %c0_i32, %c0_i32_0 : i32, i32
  }
  func.func @transform_6(%arg0: i32) -> (i32, i32, i32) {
    %c0_i32 = arith.constant 0 : i32
    %c0_i32_0 = arith.constant 0 : i32
    %c0_i32_1 = arith.constant 0 : i32
    return %arg0, %c0_i32, %c0_i32_0 : i32, i32, i32
  }
}

module attributes {stable_mosaic.version = 11 : i64} {
  func.func @_interstage_block_kernel(%arg0: i32, %arg1: memref<1x8x32xbf16, #tpu.memory_space<vmem>>, %arg2: memref<1x8x32xbf16, #tpu.memory_space<vmem>>, %arg3: memref<32x32xbf16, #tpu.memory_space<vmem>>, %arg4: memref<1x32xf32, #tpu.memory_space<vmem>>, %arg5: memref<32x64xbf16, #tpu.memory_space<vmem>>, %arg6: memref<1x64xf32, #tpu.memory_space<vmem>>, %arg7: memref<32x32xbf16, #tpu.memory_space<vmem>>, %arg8: memref<1x32xf32, #tpu.memory_space<vmem>>, %arg9: memref<1x32xf32, #tpu.memory_space<vmem>>, %arg10: memref<1x32xf32, #tpu.memory_space<vmem>>, %arg11: memref<32x32xbf16, #tpu.memory_space<vmem>>, %arg12: memref<1x32xf32, #tpu.memory_space<vmem>>, %arg13: memref<32x64xbf16, #tpu.memory_space<vmem>>, %arg14: memref<1x64xf32, #tpu.memory_space<vmem>>, %arg15: memref<64x32xbf16, #tpu.memory_space<vmem>>, %arg16: memref<1x32xf32, #tpu.memory_space<vmem>>, %arg17: memref<1x32xf32, #tpu.memory_space<vmem>>, %arg18: memref<1x32xf32, #tpu.memory_space<vmem>>, %arg19: memref<1x8x32xbf16, #tpu.memory_space<vmem>>, %arg20: memref<1x8x32xbf16, #tpu.memory_space<vmem>>) attributes {dimension_semantics = [#tpu.dimension_semantics<parallel>], iteration_bounds = array<i64: 2>, scalar_prefetch = 0 : i64, scratch_operands = 0 : i64, tpu.core_type = #tpu.core_type<tc>, window_params = [{transform_indices = @transform_0, window_bounds = array<i64: 1, 8, 32>}, {transform_indices = @transform_1, window_bounds = array<i64: 1, 8, 32>}, {pipeline_mode = #tpu.pipeline_mode<synchronous>, transform_indices = @transform_2, window_bounds = array<i64: 32, 32>}, {pipeline_mode = #tpu.pipeline_mode<synchronous>, transform_indices = @transform_3, window_bounds = array<i64: 1, 32>}, {pipeline_mode = #tpu.pipeline_mode<synchronous>, transform_indices = @transform_4, window_bounds = array<i64: 32, 64>}, {pipeline_mode = #tpu.pipeline_mode<synchronous>, transform_indices = @transform_5, window_bounds = array<i64: 1, 64>}, {pipeline_mode = #tpu.pipeline_mode<synchronous>, transform_indices = @transform_6, window_bounds = array<i64: 32, 32>}, {pipeline_mode = #tpu.pipeline_mode<synchronous>, transform_indices = @transform_7, window_bounds = array<i64: 1, 32>}, {pipeline_mode = #tpu.pipeline_mode<synchronous>, transform_indices = @transform_8, window_bounds = array<i64: 1, 32>}, {pipeline_mode = #tpu.pipeline_mode<synchronous>, transform_indices = @transform_9, window_bounds = array<i64: 1, 32>}, {pipeline_mode = #tpu.pipeline_mode<synchronous>, transform_indices = @transform_10, window_bounds = array<i64: 32, 32>}, {pipeline_mode = #tpu.pipeline_mode<synchronous>, transform_indices = @transform_11, window_bounds = array<i64: 1, 32>}, {pipeline_mode = #tpu.pipeline_mode<synchronous>, transform_indices = @transform_12, window_bounds = array<i64: 32, 64>}, {pipeline_mode = #tpu.pipeline_mode<synchronous>, transform_indices = @transform_13, window_bounds = array<i64: 1, 64>}, {pipeline_mode = #tpu.pipeline_mode<synchronous>, transform_indices = @transform_14, window_bounds = array<i64: 64, 32>}, {pipeline_mode = #tpu.pipeline_mode<synchronous>, transform_indices = @transform_15, window_bounds = array<i64: 1, 32>}, {pipeline_mode = #tpu.pipeline_mode<synchronous>, transform_indices = @transform_16, window_bounds = array<i64: 1, 32>}, {pipeline_mode = #tpu.pipeline_mode<synchronous>, transform_indices = @transform_17, window_bounds = array<i64: 1, 32>}, {transform_indices = @transform_18, window_bounds = array<i64: 1, 8, 32>}, {transform_indices = @transform_19, window_bounds = array<i64: 1, 8, 32>}]} {
    %c0 = arith.constant 0 : index
    %c0_0 = arith.constant 0 : index
    %c0_1 = arith.constant 0 : index
    %0 = vector.load %arg1[%c0, %c0_0, %c0_1] : memref<1x8x32xbf16, #tpu.memory_space<vmem>>, vector<1x8x32xbf16>
    %1 = vector.shape_cast %0 : vector<1x8x32xbf16> to vector<8x32xbf16>
    %c0_2 = arith.constant 0 : index
    %c0_3 = arith.constant 0 : index
    %c0_4 = arith.constant 0 : index
    %2 = vector.load %arg2[%c0_2, %c0_3, %c0_4] : memref<1x8x32xbf16, #tpu.memory_space<vmem>>, vector<1x8x32xbf16>
    %3 = vector.shape_cast %2 : vector<1x8x32xbf16> to vector<8x32xbf16>
    %c0_5 = arith.constant 0 : index
    %c0_6 = arith.constant 0 : index
    %4 = vector.load %arg3[%c0_5, %c0_6] : memref<32x32xbf16, #tpu.memory_space<vmem>>, vector<32x32xbf16>
    %cst = arith.constant dense<0.000000e+00> : vector<8x32xf32>
    %5 = tpu.matmul %1, %4, %cst {dimension_numbers = #tpu.dot_dimension_numbers<[1], [0], [0], [1], [0, 0, 1, 1], [], []>} : vector<8x32xbf16>, vector<32x32xbf16>, vector<8x32xf32> -> vector<8x32xf32>
    %c0_7 = arith.constant 0 : index
    %c0_8 = arith.constant 0 : index
    %6 = vector.load %arg4[%c0_7, %c0_8] : memref<1x32xf32, #tpu.memory_space<vmem>>, vector<1x32xf32>
    %7 = vector.broadcast %6 : vector<1x32xf32> to vector<8x32xf32>
    %8 = arith.addf %5, %7 : vector<8x32xf32>
    %9 = arith.truncf %8 : vector<8x32xf32> to vector<8x32xbf16>
    %c0_9 = arith.constant 0 : index
    %c0_10 = arith.constant 0 : index
    %10 = vector.load %arg5[%c0_9, %c0_10] : memref<32x64xbf16, #tpu.memory_space<vmem>>, vector<32x64xbf16>
    %cst_11 = arith.constant dense<0.000000e+00> : vector<8x64xf32>
    %11 = tpu.matmul %3, %10, %cst_11 {dimension_numbers = #tpu.dot_dimension_numbers<[1], [0], [0], [1], [0, 0, 1, 1], [], []>} : vector<8x32xbf16>, vector<32x64xbf16>, vector<8x64xf32> -> vector<8x64xf32>
    %c0_12 = arith.constant 0 : index
    %c0_13 = arith.constant 0 : index
    %12 = vector.load %arg6[%c0_12, %c0_13] : memref<1x64xf32, #tpu.memory_space<vmem>>, vector<1x64xf32>
    %13 = vector.broadcast %12 : vector<1x64xf32> to vector<8x64xf32>
    %14 = arith.addf %11, %13 : vector<8x64xf32>
    %15 = vector.extract_strided_slice %14 {offsets = [0, 0], sizes = [8, 32], strides = [1, 1]} : vector<8x64xf32> to vector<8x32xf32>
    %16 = arith.truncf %15 : vector<8x32xf32> to vector<8x32xbf16>
    %17 = vector.extract_strided_slice %14 {offsets = [0, 32], sizes = [8, 32], strides = [1, 1]} : vector<8x64xf32> to vector<8x32xf32>
    %18 = arith.truncf %17 : vector<8x32xf32> to vector<8x32xbf16>
    %19 = vector.extract_strided_slice %9 {offsets = [0, 0], sizes = [8, 8], strides = [1, 1]} : vector<8x32xbf16> to vector<8x8xbf16>
    %20 = vector.extract_strided_slice %16 {offsets = [0, 0], sizes = [8, 8], strides = [1, 1]} : vector<8x32xbf16> to vector<8x8xbf16>
    %cst_14 = arith.constant dense<0.000000e+00> : vector<8x8xf32>
    %21 = tpu.matmul %19, %20, %cst_14 {dimension_numbers = #tpu.dot_dimension_numbers<[1], [1], [0], [0], [0, 0, 1, 0], [], []>} : vector<8x8xbf16>, vector<8x8xbf16>, vector<8x8xf32> -> vector<8x8xf32>
    %cst_15 = arith.constant 0.353553385 : f32
    %22 = vector.broadcast %cst_15 : f32 to vector<8x8xf32>
    %23 = arith.mulf %21, %22 : vector<8x8xf32>
    %cst_16 = arith.constant dense<0xFF800000> : vector<8xf32>
    %24 = vector.multi_reduction <maximumf>, %23, %cst_16 [1] : vector<8x8xf32> to vector<8xf32>
    %25 = vector.shape_cast %24 : vector<8xf32> to vector<8x1xf32>
    %26 = vector.broadcast %25 : vector<8x1xf32> to vector<8x8xf32>
    %27 = arith.subf %23, %26 : vector<8x8xf32>
    %28 = math.exp %27 : vector<8x8xf32>
    %cst_17 = arith.constant dense<0.000000e+00> : vector<8xf32>
    %29 = vector.multi_reduction <add>, %28, %cst_17 [1] : vector<8x8xf32> to vector<8xf32>
    %30 = vector.shape_cast %29 : vector<8xf32> to vector<8x1xf32>
    %31 = tpu.reciprocal %30 {approx = true} : vector<8x1xf32> -> vector<8x1xf32>
    %32 = vector.broadcast %31 : vector<8x1xf32> to vector<8x8xf32>
    %33 = arith.mulf %28, %32 : vector<8x8xf32>
    %34 = arith.truncf %33 : vector<8x8xf32> to vector<8x8xbf16>
    %35 = vector.extract_strided_slice %18 {offsets = [0, 0], sizes = [8, 8], strides = [1, 1]} : vector<8x32xbf16> to vector<8x8xbf16>
    %cst_18 = arith.constant dense<0.000000e+00> : vector<8x8xf32>
    %36 = tpu.matmul %34, %35, %cst_18 {dimension_numbers = #tpu.dot_dimension_numbers<[1], [0], [0], [1], [0, 0, 1, 1], [], []>} : vector<8x8xbf16>, vector<8x8xbf16>, vector<8x8xf32> -> vector<8x8xf32>
    %37 = vector.extract_strided_slice %9 {offsets = [0, 8], sizes = [8, 8], strides = [1, 1]} : vector<8x32xbf16> to vector<8x8xbf16>
    %38 = vector.extract_strided_slice %16 {offsets = [0, 8], sizes = [8, 8], strides = [1, 1]} : vector<8x32xbf16> to vector<8x8xbf16>
    %cst_19 = arith.constant dense<0.000000e+00> : vector<8x8xf32>
    %39 = tpu.matmul %37, %38, %cst_19 {dimension_numbers = #tpu.dot_dimension_numbers<[1], [1], [0], [0], [0, 0, 1, 0], [], []>} : vector<8x8xbf16>, vector<8x8xbf16>, vector<8x8xf32> -> vector<8x8xf32>
    %cst_20 = arith.constant 0.353553385 : f32
    %40 = vector.broadcast %cst_20 : f32 to vector<8x8xf32>
    %41 = arith.mulf %39, %40 : vector<8x8xf32>
    %cst_21 = arith.constant dense<0xFF800000> : vector<8xf32>
    %42 = vector.multi_reduction <maximumf>, %41, %cst_21 [1] : vector<8x8xf32> to vector<8xf32>
    %43 = vector.shape_cast %42 : vector<8xf32> to vector<8x1xf32>
    %44 = vector.broadcast %43 : vector<8x1xf32> to vector<8x8xf32>
    %45 = arith.subf %41, %44 : vector<8x8xf32>
    %46 = math.exp %45 : vector<8x8xf32>
    %cst_22 = arith.constant dense<0.000000e+00> : vector<8xf32>
    %47 = vector.multi_reduction <add>, %46, %cst_22 [1] : vector<8x8xf32> to vector<8xf32>
    %48 = vector.shape_cast %47 : vector<8xf32> to vector<8x1xf32>
    %49 = tpu.reciprocal %48 {approx = true} : vector<8x1xf32> -> vector<8x1xf32>
    %50 = vector.broadcast %49 : vector<8x1xf32> to vector<8x8xf32>
    %51 = arith.mulf %46, %50 : vector<8x8xf32>
    %52 = arith.truncf %51 : vector<8x8xf32> to vector<8x8xbf16>
    %53 = vector.extract_strided_slice %18 {offsets = [0, 8], sizes = [8, 8], strides = [1, 1]} : vector<8x32xbf16> to vector<8x8xbf16>
    %cst_23 = arith.constant dense<0.000000e+00> : vector<8x8xf32>
    %54 = tpu.matmul %52, %53, %cst_23 {dimension_numbers = #tpu.dot_dimension_numbers<[1], [0], [0], [1], [0, 0, 1, 1], [], []>} : vector<8x8xbf16>, vector<8x8xbf16>, vector<8x8xf32> -> vector<8x8xf32>
    %55 = vector.extract_strided_slice %9 {offsets = [0, 16], sizes = [8, 8], strides = [1, 1]} : vector<8x32xbf16> to vector<8x8xbf16>
    %56 = vector.extract_strided_slice %16 {offsets = [0, 16], sizes = [8, 8], strides = [1, 1]} : vector<8x32xbf16> to vector<8x8xbf16>
    %cst_24 = arith.constant dense<0.000000e+00> : vector<8x8xf32>
    %57 = tpu.matmul %55, %56, %cst_24 {dimension_numbers = #tpu.dot_dimension_numbers<[1], [1], [0], [0], [0, 0, 1, 0], [], []>} : vector<8x8xbf16>, vector<8x8xbf16>, vector<8x8xf32> -> vector<8x8xf32>
    %cst_25 = arith.constant 0.353553385 : f32
    %58 = vector.broadcast %cst_25 : f32 to vector<8x8xf32>
    %59 = arith.mulf %57, %58 : vector<8x8xf32>
    %cst_26 = arith.constant dense<0xFF800000> : vector<8xf32>
    %60 = vector.multi_reduction <maximumf>, %59, %cst_26 [1] : vector<8x8xf32> to vector<8xf32>
    %61 = vector.shape_cast %60 : vector<8xf32> to vector<8x1xf32>
    %62 = vector.broadcast %61 : vector<8x1xf32> to vector<8x8xf32>
    %63 = arith.subf %59, %62 : vector<8x8xf32>
    %64 = math.exp %63 : vector<8x8xf32>
    %cst_27 = arith.constant dense<0.000000e+00> : vector<8xf32>
    %65 = vector.multi_reduction <add>, %64, %cst_27 [1] : vector<8x8xf32> to vector<8xf32>
    %66 = vector.shape_cast %65 : vector<8xf32> to vector<8x1xf32>
    %67 = tpu.reciprocal %66 {approx = true} : vector<8x1xf32> -> vector<8x1xf32>
    %68 = vector.broadcast %67 : vector<8x1xf32> to vector<8x8xf32>
    %69 = arith.mulf %64, %68 : vector<8x8xf32>
    %70 = arith.truncf %69 : vector<8x8xf32> to vector<8x8xbf16>
    %71 = vector.extract_strided_slice %18 {offsets = [0, 16], sizes = [8, 8], strides = [1, 1]} : vector<8x32xbf16> to vector<8x8xbf16>
    %cst_28 = arith.constant dense<0.000000e+00> : vector<8x8xf32>
    %72 = tpu.matmul %70, %71, %cst_28 {dimension_numbers = #tpu.dot_dimension_numbers<[1], [0], [0], [1], [0, 0, 1, 1], [], []>} : vector<8x8xbf16>, vector<8x8xbf16>, vector<8x8xf32> -> vector<8x8xf32>
    %73 = vector.extract_strided_slice %9 {offsets = [0, 24], sizes = [8, 8], strides = [1, 1]} : vector<8x32xbf16> to vector<8x8xbf16>
    %74 = vector.extract_strided_slice %16 {offsets = [0, 24], sizes = [8, 8], strides = [1, 1]} : vector<8x32xbf16> to vector<8x8xbf16>
    %cst_29 = arith.constant dense<0.000000e+00> : vector<8x8xf32>
    %75 = tpu.matmul %73, %74, %cst_29 {dimension_numbers = #tpu.dot_dimension_numbers<[1], [1], [0], [0], [0, 0, 1, 0], [], []>} : vector<8x8xbf16>, vector<8x8xbf16>, vector<8x8xf32> -> vector<8x8xf32>
    %cst_30 = arith.constant 0.353553385 : f32
    %76 = vector.broadcast %cst_30 : f32 to vector<8x8xf32>
    %77 = arith.mulf %75, %76 : vector<8x8xf32>
    %cst_31 = arith.constant dense<0xFF800000> : vector<8xf32>
    %78 = vector.multi_reduction <maximumf>, %77, %cst_31 [1] : vector<8x8xf32> to vector<8xf32>
    %79 = vector.shape_cast %78 : vector<8xf32> to vector<8x1xf32>
    %80 = vector.broadcast %79 : vector<8x1xf32> to vector<8x8xf32>
    %81 = arith.subf %77, %80 : vector<8x8xf32>
    %82 = math.exp %81 : vector<8x8xf32>
    %cst_32 = arith.constant dense<0.000000e+00> : vector<8xf32>
    %83 = vector.multi_reduction <add>, %82, %cst_32 [1] : vector<8x8xf32> to vector<8xf32>
    %84 = vector.shape_cast %83 : vector<8xf32> to vector<8x1xf32>
    %85 = tpu.reciprocal %84 {approx = true} : vector<8x1xf32> -> vector<8x1xf32>
    %86 = vector.broadcast %85 : vector<8x1xf32> to vector<8x8xf32>
    %87 = arith.mulf %82, %86 : vector<8x8xf32>
    %88 = arith.truncf %87 : vector<8x8xf32> to vector<8x8xbf16>
    %89 = vector.extract_strided_slice %18 {offsets = [0, 24], sizes = [8, 8], strides = [1, 1]} : vector<8x32xbf16> to vector<8x8xbf16>
    %cst_33 = arith.constant dense<0.000000e+00> : vector<8x8xf32>
    %90 = tpu.matmul %88, %89, %cst_33 {dimension_numbers = #tpu.dot_dimension_numbers<[1], [0], [0], [1], [0, 0, 1, 1], [], []>} : vector<8x8xbf16>, vector<8x8xbf16>, vector<8x8xf32> -> vector<8x8xf32>
    %91 = tpu.concatenate %36, %54, %72, %90 in 1 : vector<8x8xf32>, vector<8x8xf32>, vector<8x8xf32>, vector<8x8xf32> -> vector<8x32xf32>
    %92 = arith.truncf %91 : vector<8x32xf32> to vector<8x32xbf16>
    %c0_34 = arith.constant 0 : index
    %c0_35 = arith.constant 0 : index
    %93 = vector.load %arg7[%c0_34, %c0_35] : memref<32x32xbf16, #tpu.memory_space<vmem>>, vector<32x32xbf16>
    %cst_36 = arith.constant dense<0.000000e+00> : vector<8x32xf32>
    %94 = tpu.matmul %92, %93, %cst_36 {dimension_numbers = #tpu.dot_dimension_numbers<[1], [0], [0], [1], [0, 0, 1, 1], [], []>} : vector<8x32xbf16>, vector<32x32xbf16>, vector<8x32xf32> -> vector<8x32xf32>
    %c0_37 = arith.constant 0 : index
    %c0_38 = arith.constant 0 : index
    %95 = vector.load %arg8[%c0_37, %c0_38] : memref<1x32xf32, #tpu.memory_space<vmem>>, vector<1x32xf32>
    %96 = vector.broadcast %95 : vector<1x32xf32> to vector<8x32xf32>
    %97 = arith.addf %94, %96 : vector<8x32xf32>
    %98 = arith.extf %1 : vector<8x32xbf16> to vector<8x32xf32>
    %99 = arith.addf %98, %97 : vector<8x32xf32>
    %c0_39 = arith.constant 0 : index
    %c0_40 = arith.constant 0 : index
    %100 = vector.load %arg9[%c0_39, %c0_40] : memref<1x32xf32, #tpu.memory_space<vmem>>, vector<1x32xf32>
    %c0_41 = arith.constant 0 : index
    %c0_42 = arith.constant 0 : index
    %101 = vector.load %arg10[%c0_41, %c0_42] : memref<1x32xf32, #tpu.memory_space<vmem>>, vector<1x32xf32>
    %cst_43 = arith.constant dense<0.000000e+00> : vector<8xf32>
    %102 = vector.multi_reduction <add>, %99, %cst_43 [1] : vector<8x32xf32> to vector<8xf32>
    %103 = vector.shape_cast %102 : vector<8xf32> to vector<8x1xf32>
    %cst_44 = arith.constant 3.200000e+01 : f32
    %104 = vector.broadcast %cst_44 : f32 to vector<8x1xf32>
    %105 = arith.divf %103, %104 : vector<8x1xf32>
    %106 = vector.broadcast %105 : vector<8x1xf32> to vector<8x32xf32>
    %107 = arith.subf %99, %106 : vector<8x32xf32>
    %108 = arith.mulf %107, %107 : vector<8x32xf32>
    %cst_45 = arith.constant dense<0.000000e+00> : vector<8xf32>
    %109 = vector.multi_reduction <add>, %108, %cst_45 [1] : vector<8x32xf32> to vector<8xf32>
    %110 = vector.shape_cast %109 : vector<8xf32> to vector<8x1xf32>
    %cst_46 = arith.constant 3.200000e+01 : f32
    %111 = vector.broadcast %cst_46 : f32 to vector<8x1xf32>
    %112 = arith.divf %110, %111 : vector<8x1xf32>
    %cst_47 = arith.constant 9.99999974E-6 : f32
    %113 = vector.broadcast %cst_47 : f32 to vector<8x1xf32>
    %114 = arith.addf %112, %113 : vector<8x1xf32>
    %115 = math.rsqrt %114 : vector<8x1xf32>
    %116 = vector.broadcast %115 : vector<8x1xf32> to vector<8x32xf32>
    %117 = arith.mulf %107, %116 : vector<8x32xf32>
    %118 = vector.broadcast %100 : vector<1x32xf32> to vector<8x32xf32>
    %119 = arith.mulf %117, %118 : vector<8x32xf32>
    %120 = vector.broadcast %101 : vector<1x32xf32> to vector<8x32xf32>
    %121 = arith.addf %119, %120 : vector<8x32xf32>
    %122 = arith.truncf %121 : vector<8x32xf32> to vector<8x32xbf16>
    %c0_48 = arith.constant 0 : index
    %c0_49 = arith.constant 0 : index
    %123 = vector.load %arg11[%c0_48, %c0_49] : memref<32x32xbf16, #tpu.memory_space<vmem>>, vector<32x32xbf16>
    %cst_50 = arith.constant dense<0.000000e+00> : vector<8x32xf32>
    %124 = tpu.matmul %122, %123, %cst_50 {dimension_numbers = #tpu.dot_dimension_numbers<[1], [0], [0], [1], [0, 0, 1, 1], [], []>} : vector<8x32xbf16>, vector<32x32xbf16>, vector<8x32xf32> -> vector<8x32xf32>
    %c0_51 = arith.constant 0 : index
    %c0_52 = arith.constant 0 : index
    %125 = vector.load %arg12[%c0_51, %c0_52] : memref<1x32xf32, #tpu.memory_space<vmem>>, vector<1x32xf32>
    %126 = vector.broadcast %125 : vector<1x32xf32> to vector<8x32xf32>
    %127 = arith.addf %124, %126 : vector<8x32xf32>
    %cst_53 = arith.constant 0.000000e+00 : f32
    %128 = vector.broadcast %cst_53 : f32 to vector<8x32xf32>
    %129 = arith.subf %128, %127 : vector<8x32xf32>
    %130 = math.exp %129 : vector<8x32xf32>
    %cst_54 = arith.constant 1.000000e+00 : f32
    %131 = vector.broadcast %cst_54 : f32 to vector<8x32xf32>
    %132 = arith.addf %131, %130 : vector<8x32xf32>
    %cst_55 = arith.constant 1.000000e+00 : f32
    %133 = vector.broadcast %cst_55 : f32 to vector<8x32xf32>
    %134 = arith.divf %133, %132 : vector<8x32xf32>
    %c0_56 = arith.constant 0 : index
    %c0_57 = arith.constant 0 : index
    %135 = vector.load %arg13[%c0_56, %c0_57] : memref<32x64xbf16, #tpu.memory_space<vmem>>, vector<32x64xbf16>
    %cst_58 = arith.constant dense<0.000000e+00> : vector<8x64xf32>
    %136 = tpu.matmul %3, %135, %cst_58 {dimension_numbers = #tpu.dot_dimension_numbers<[1], [0], [0], [1], [0, 0, 1, 1], [], []>} : vector<8x32xbf16>, vector<32x64xbf16>, vector<8x64xf32> -> vector<8x64xf32>
    %c0_59 = arith.constant 0 : index
    %c0_60 = arith.constant 0 : index
    %137 = vector.load %arg14[%c0_59, %c0_60] : memref<1x64xf32, #tpu.memory_space<vmem>>, vector<1x64xf32>
    %138 = vector.broadcast %137 : vector<1x64xf32> to vector<8x64xf32>
    %139 = arith.addf %136, %138 : vector<8x64xf32>
    %cst_61 = arith.constant 0.000000e+00 : f32
    %140 = vector.broadcast %cst_61 : f32 to vector<8x64xf32>
    %141 = arith.maximumf %139, %140 : vector<8x64xf32>
    %142 = arith.truncf %141 : vector<8x64xf32> to vector<8x64xbf16>
    %c0_62 = arith.constant 0 : index
    %c0_63 = arith.constant 0 : index
    %143 = vector.load %arg15[%c0_62, %c0_63] : memref<64x32xbf16, #tpu.memory_space<vmem>>, vector<64x32xbf16>
    %cst_64 = arith.constant dense<0.000000e+00> : vector<8x32xf32>
    %144 = tpu.matmul %142, %143, %cst_64 {dimension_numbers = #tpu.dot_dimension_numbers<[1], [0], [0], [1], [0, 0, 1, 1], [], []>} : vector<8x64xbf16>, vector<64x32xbf16>, vector<8x32xf32> -> vector<8x32xf32>
    %c0_65 = arith.constant 0 : index
    %c0_66 = arith.constant 0 : index
    %145 = vector.load %arg16[%c0_65, %c0_66] : memref<1x32xf32, #tpu.memory_space<vmem>>, vector<1x32xf32>
    %146 = vector.broadcast %145 : vector<1x32xf32> to vector<8x32xf32>
    %147 = arith.addf %144, %146 : vector<8x32xf32>
    %148 = arith.extf %3 : vector<8x32xbf16> to vector<8x32xf32>
    %149 = arith.mulf %134, %147 : vector<8x32xf32>
    %150 = arith.addf %148, %149 : vector<8x32xf32>
    %c0_67 = arith.constant 0 : index
    %c0_68 = arith.constant 0 : index
    %151 = vector.load %arg17[%c0_67, %c0_68] : memref<1x32xf32, #tpu.memory_space<vmem>>, vector<1x32xf32>
    %c0_69 = arith.constant 0 : index
    %c0_70 = arith.constant 0 : index
    %152 = vector.load %arg18[%c0_69, %c0_70] : memref<1x32xf32, #tpu.memory_space<vmem>>, vector<1x32xf32>
    %cst_71 = arith.constant dense<0.000000e+00> : vector<8xf32>
    %153 = vector.multi_reduction <add>, %150, %cst_71 [1] : vector<8x32xf32> to vector<8xf32>
    %154 = vector.shape_cast %153 : vector<8xf32> to vector<8x1xf32>
    %cst_72 = arith.constant 3.200000e+01 : f32
    %155 = vector.broadcast %cst_72 : f32 to vector<8x1xf32>
    %156 = arith.divf %154, %155 : vector<8x1xf32>
    %157 = vector.broadcast %156 : vector<8x1xf32> to vector<8x32xf32>
    %158 = arith.subf %150, %157 : vector<8x32xf32>
    %159 = arith.mulf %158, %158 : vector<8x32xf32>
    %cst_73 = arith.constant dense<0.000000e+00> : vector<8xf32>
    %160 = vector.multi_reduction <add>, %159, %cst_73 [1] : vector<8x32xf32> to vector<8xf32>
    %161 = vector.shape_cast %160 : vector<8xf32> to vector<8x1xf32>
    %cst_74 = arith.constant 3.200000e+01 : f32
    %162 = vector.broadcast %cst_74 : f32 to vector<8x1xf32>
    %163 = arith.divf %161, %162 : vector<8x1xf32>
    %cst_75 = arith.constant 9.99999974E-6 : f32
    %164 = vector.broadcast %cst_75 : f32 to vector<8x1xf32>
    %165 = arith.addf %163, %164 : vector<8x1xf32>
    %166 = math.rsqrt %165 : vector<8x1xf32>
    %167 = vector.broadcast %166 : vector<8x1xf32> to vector<8x32xf32>
    %168 = arith.mulf %158, %167 : vector<8x32xf32>
    %169 = vector.broadcast %151 : vector<1x32xf32> to vector<8x32xf32>
    %170 = arith.mulf %168, %169 : vector<8x32xf32>
    %171 = vector.broadcast %152 : vector<1x32xf32> to vector<8x32xf32>
    %172 = arith.addf %170, %171 : vector<8x32xf32>
    %173 = arith.truncf %121 : vector<8x32xf32> to vector<8x32xbf16>
    %c0_76 = arith.constant 0 : index
    %c0_77 = arith.constant 0 : index
    %c0_78 = arith.constant 0 : index
    %174 = vector.load %arg19[%c0_76, %c0_77, %c0_78] : memref<1x8x32xbf16, #tpu.memory_space<vmem>>, vector<1x8x32xbf16>
    %175 = vector.shape_cast %174 : vector<1x8x32xbf16> to vector<8x32xbf16>
    %176 = vector.shape_cast %173 : vector<8x32xbf16> to vector<1x8x32xbf16>
    tpu.vector_store %arg19[%c0_76, %c0_77, %c0_78], %176 {strides = array<i32>} : memref<1x8x32xbf16, #tpu.memory_space<vmem>>, vector<1x8x32xbf16>,
    %177 = arith.truncf %172 : vector<8x32xf32> to vector<8x32xbf16>
    %c0_79 = arith.constant 0 : index
    %c0_80 = arith.constant 0 : index
    %c0_81 = arith.constant 0 : index
    %178 = vector.load %arg20[%c0_79, %c0_80, %c0_81] : memref<1x8x32xbf16, #tpu.memory_space<vmem>>, vector<1x8x32xbf16>
    %179 = vector.shape_cast %178 : vector<1x8x32xbf16> to vector<8x32xbf16>
    %180 = vector.shape_cast %177 : vector<8x32xbf16> to vector<1x8x32xbf16>
    tpu.vector_store %arg20[%c0_79, %c0_80, %c0_81], %180 {strides = array<i32>} : memref<1x8x32xbf16, #tpu.memory_space<vmem>>, vector<1x8x32xbf16>,
    return
  }
  func.func @transform_0(%arg0: i32) -> (i32, i32, i32) {
    %c0_i32 = arith.constant 0 : i32
    %c0_i32_0 = arith.constant 0 : i32
    %c0_i32_1 = arith.constant 0 : i32
    return %arg0, %c0_i32, %c0_i32_0 : i32, i32, i32
  }
  func.func @transform_1(%arg0: i32) -> (i32, i32, i32) {
    %c0_i32 = arith.constant 0 : i32
    %c0_i32_0 = arith.constant 0 : i32
    %c0_i32_1 = arith.constant 0 : i32
    return %arg0, %c0_i32, %c0_i32_0 : i32, i32, i32
  }
  func.func @transform_2(%arg0: i32) -> (i32, i32) {
    %c0_i32 = arith.constant 0 : i32
    %c0_i32_0 = arith.constant 0 : i32
    %c0_i32_1 = arith.constant 0 : i32
    return %c0_i32, %c0_i32_0 : i32, i32
  }
  func.func @transform_3(%arg0: i32) -> (i32, i32) {
    %c0_i32 = arith.constant 0 : i32
    %c0_i32_0 = arith.constant 0 : i32
    %c0_i32_1 = arith.constant 0 : i32
    return %c0_i32, %c0_i32_0 : i32, i32
  }
  func.func @transform_4(%arg0: i32) -> (i32, i32) {
    %c0_i32 = arith.constant 0 : i32
    %c0_i32_0 = arith.constant 0 : i32
    %c0_i32_1 = arith.constant 0 : i32
    return %c0_i32, %c0_i32_0 : i32, i32
  }
  func.func @transform_5(%arg0: i32) -> (i32, i32) {
    %c0_i32 = arith.constant 0 : i32
    %c0_i32_0 = arith.constant 0 : i32
    %c0_i32_1 = arith.constant 0 : i32
    return %c0_i32, %c0_i32_0 : i32, i32
  }
  func.func @transform_6(%arg0: i32) -> (i32, i32) {
    %c0_i32 = arith.constant 0 : i32
    %c0_i32_0 = arith.constant 0 : i32
    %c0_i32_1 = arith.constant 0 : i32
    return %c0_i32, %c0_i32_0 : i32, i32
  }
  func.func @transform_7(%arg0: i32) -> (i32, i32) {
    %c0_i32 = arith.constant 0 : i32
    %c0_i32_0 = arith.constant 0 : i32
    %c0_i32_1 = arith.constant 0 : i32
    return %c0_i32, %c0_i32_0 : i32, i32
  }
  func.func @transform_8(%arg0: i32) -> (i32, i32) {
    %c0_i32 = arith.constant 0 : i32
    %c0_i32_0 = arith.constant 0 : i32
    %c0_i32_1 = arith.constant 0 : i32
    return %c0_i32, %c0_i32_0 : i32, i32
  }
  func.func @transform_9(%arg0: i32) -> (i32, i32) {
    %c0_i32 = arith.constant 0 : i32
    %c0_i32_0 = arith.constant 0 : i32
    %c0_i32_1 = arith.constant 0 : i32
    return %c0_i32, %c0_i32_0 : i32, i32
  }
  func.func @transform_10(%arg0: i32) -> (i32, i32) {
    %c0_i32 = arith.constant 0 : i32
    %c0_i32_0 = arith.constant 0 : i32
    %c0_i32_1 = arith.constant 0 : i32
    return %c0_i32, %c0_i32_0 : i32, i32
  }
  func.func @transform_11(%arg0: i32) -> (i32, i32) {
    %c0_i32 = arith.constant 0 : i32
    %c0_i32_0 = arith.constant 0 : i32
    %c0_i32_1 = arith.constant 0 : i32
    return %c0_i32, %c0_i32_0 : i32, i32
  }
  func.func @transform_12(%arg0: i32) -> (i32, i32) {
    %c0_i32 = arith.constant 0 : i32
    %c0_i32_0 = arith.constant 0 : i32
    %c0_i32_1 = arith.constant 0 : i32
    return %c0_i32, %c0_i32_0 : i32, i32
  }
  func.func @transform_13(%arg0: i32) -> (i32, i32) {
    %c0_i32 = arith.constant 0 : i32
    %c0_i32_0 = arith.constant 0 : i32
    %c0_i32_1 = arith.constant 0 : i32
    return %c0_i32, %c0_i32_0 : i32, i32
  }
  func.func @transform_14(%arg0: i32) -> (i32, i32) {
    %c0_i32 = arith.constant 0 : i32
    %c0_i32_0 = arith.constant 0 : i32
    %c0_i32_1 = arith.constant 0 : i32
    return %c0_i32, %c0_i32_0 : i32, i32
  }
  func.func @transform_15(%arg0: i32) -> (i32, i32) {
    %c0_i32 = arith.constant 0 : i32
    %c0_i32_0 = arith.constant 0 : i32
    %c0_i32_1 = arith.constant 0 : i32
    return %c0_i32, %c0_i32_0 : i32, i32
  }
  func.func @transform_16(%arg0: i32) -> (i32, i32) {
    %c0_i32 = arith.constant 0 : i32
    %c0_i32_0 = arith.constant 0 : i32
    %c0_i32_1 = arith.constant 0 : i32
    return %c0_i32, %c0_i32_0 : i32, i32
  }
  func.func @transform_17(%arg0: i32) -> (i32, i32) {
    %c0_i32 = arith.constant 0 : i32
    %c0_i32_0 = arith.constant 0 : i32
    %c0_i32_1 = arith.constant 0 : i32
    return %c0_i32, %c0_i32_0 : i32, i32
  }
  func.func @transform_18(%arg0: i32) -> (i32, i32, i32) {
    %c0_i32 = arith.constant 0 : i32
    %c0_i32_0 = arith.constant 0 : i32
    %c0_i32_1 = arith.constant 0 : i32
    return %arg0, %c0_i32, %c0_i32_0 : i32, i32, i32
  }
  func.func @transform_19(%arg0: i32) -> (i32, i32, i32) {
    %c0_i32 = arith.constant 0 : i32
    %c0_i32_0 = arith.constant 0 : i32
    %c0_i32_1 = arith.constant 0 : i32
    return %arg0, %c0_i32, %c0_i32_0 : i32, i32, i32
  }
}

module attributes {stable_mosaic.version = 11 : i64} {
  func.func @_stage_front_kernel(%arg0: i32, %arg1: memref<1x8x5xf32, #tpu.memory_space<vmem>>, %arg2: memref<2x3x1x5xf32, #tpu.memory_space<vmem>>, %arg3: memref<2x1x5xf32, #tpu.memory_space<vmem>>, %arg4: memref<5x32xbf16, #tpu.memory_space<vmem>>, %arg5: memref<1x32xf32, #tpu.memory_space<vmem>>, %arg6: memref<8x32xf32, #tpu.memory_space<vmem>>, %arg7: memref<1x8x32xbf16, #tpu.memory_space<vmem>>) attributes {dimension_semantics = [#tpu.dimension_semantics<parallel>], iteration_bounds = array<i64: 2>, scalar_prefetch = 0 : i64, scratch_operands = 0 : i64, tpu.core_type = #tpu.core_type<tc>, window_params = [{transform_indices = @transform_0, window_bounds = array<i64: 1, 8, 5>}, {pipeline_mode = #tpu.pipeline_mode<synchronous>, transform_indices = @transform_1, window_bounds = array<i64: 2, 3, 1, 5>}, {pipeline_mode = #tpu.pipeline_mode<synchronous>, transform_indices = @transform_2, window_bounds = array<i64: 2, 1, 5>}, {pipeline_mode = #tpu.pipeline_mode<synchronous>, transform_indices = @transform_3, window_bounds = array<i64: 5, 32>}, {pipeline_mode = #tpu.pipeline_mode<synchronous>, transform_indices = @transform_4, window_bounds = array<i64: 1, 32>}, {pipeline_mode = #tpu.pipeline_mode<synchronous>, transform_indices = @transform_5, window_bounds = array<i64: 8, 32>}, {transform_indices = @transform_6, window_bounds = array<i64: 1, 8, 32>}]} {
    %c0 = arith.constant 0 : index
    %c0_0 = arith.constant 0 : index
    %c0_1 = arith.constant 0 : index
    %0 = vector.load %arg1[%c0, %c0_0, %c0_1] : memref<1x8x5xf32, #tpu.memory_space<vmem>>, vector<1x8x5xf32>
    %1 = vector.shape_cast %0 : vector<1x8x5xf32> to vector<8x5xf32>
    %cst = arith.constant 0.000000e+00 : f32
    %2 = vector.broadcast %cst : f32 to vector<8x5xf32>
    %cst_2 = arith.constant 0.000000e+00 : f32
    %3 = vector.broadcast %cst_2 : f32 to vector<2x5xf32>
    %4 = vector.extract_strided_slice %1 {offsets = [0, 0], sizes = [6, 5], strides = [1, 1]} : vector<8x5xf32> to vector<6x5xf32>
    %5 = tpu.concatenate %3, %4 in 0 : vector<2x5xf32>, vector<6x5xf32> -> vector<8x5xf32>
    %c0_3 = arith.constant 0 : index
    %c0_4 = arith.constant 0 : index
    %c0_5 = arith.constant 0 : index
    %c0_6 = arith.constant 0 : index
    %6 = vector.load %arg2[%c0_3, %c0_4, %c0_5, %c0_6] : memref<2x3x1x5xf32, #tpu.memory_space<vmem>>, vector<1x1x1x5xf32>
    %7 = vector.shape_cast %6 : vector<1x1x1x5xf32> to vector<1x5xf32>
    %8 = vector.broadcast %7 : vector<1x5xf32> to vector<8x5xf32>
    %9 = arith.mulf %5, %8 : vector<8x5xf32>
    %10 = arith.addf %2, %9 : vector<8x5xf32>
    %cst_7 = arith.constant 0.000000e+00 : f32
    %11 = vector.broadcast %cst_7 : f32 to vector<1x5xf32>
    %12 = vector.extract_strided_slice %1 {offsets = [0, 0], sizes = [7, 5], strides = [1, 1]} : vector<8x5xf32> to vector<7x5xf32>
    %13 = tpu.concatenate %11, %12 in 0 : vector<1x5xf32>, vector<7x5xf32> -> vector<8x5xf32>
    %c0_8 = arith.constant 0 : index
    %c1 = arith.constant 1 : index
    %c0_9 = arith.constant 0 : index
    %c0_10 = arith.constant 0 : index
    %14 = vector.load %arg2[%c0_8, %c1, %c0_9, %c0_10] : memref<2x3x1x5xf32, #tpu.memory_space<vmem>>, vector<1x1x1x5xf32>
    %15 = vector.shape_cast %14 : vector<1x1x1x5xf32> to vector<1x5xf32>
    %16 = vector.broadcast %15 : vector<1x5xf32> to vector<8x5xf32>
    %17 = arith.mulf %13, %16 : vector<8x5xf32>
    %18 = arith.addf %10, %17 : vector<8x5xf32>
    %c0_11 = arith.constant 0 : index
    %c2 = arith.constant 2 : index
    %c0_12 = arith.constant 0 : index
    %c0_13 = arith.constant 0 : index
    %19 = vector.load %arg2[%c0_11, %c2, %c0_12, %c0_13] : memref<2x3x1x5xf32, #tpu.memory_space<vmem>>, vector<1x1x1x5xf32>
    %20 = vector.shape_cast %19 : vector<1x1x1x5xf32> to vector<1x5xf32>
    %21 = vector.broadcast %20 : vector<1x5xf32> to vector<8x5xf32>
    %22 = arith.mulf %1, %21 : vector<8x5xf32>
    %23 = arith.addf %18, %22 : vector<8x5xf32>
    %c0_14 = arith.constant 0 : index
    %c0_15 = arith.constant 0 : index
    %c0_16 = arith.constant 0 : index
    %24 = vector.load %arg3[%c0_14, %c0_15, %c0_16] : memref<2x1x5xf32, #tpu.memory_space<vmem>>, vector<1x1x5xf32>
    %25 = vector.shape_cast %24 : vector<1x1x5xf32> to vector<1x5xf32>
    %26 = vector.broadcast %25 : vector<1x5xf32> to vector<8x5xf32>
    %27 = arith.addf %23, %26 : vector<8x5xf32>
    %cst_17 = arith.constant 0.000000e+00 : f32
    %28 = vector.broadcast %cst_17 : f32 to vector<8x5xf32>
    %29 = arith.maximumf %27, %28 : vector<8x5xf32>
    %cst_18 = arith.constant 0.000000e+00 : f32
    %30 = vector.broadcast %cst_18 : f32 to vector<8x5xf32>
    %cst_19 = arith.constant 0.000000e+00 : f32
    %31 = vector.broadcast %cst_19 : f32 to vector<4x5xf32>
    %32 = vector.extract_strided_slice %29 {offsets = [0, 0], sizes = [4, 5], strides = [1, 1]} : vector<8x5xf32> to vector<4x5xf32>
    %33 = tpu.concatenate %31, %32 in 0 : vector<4x5xf32>, vector<4x5xf32> -> vector<8x5xf32>
    %c1_20 = arith.constant 1 : index
    %c0_21 = arith.constant 0 : index
    %c0_22 = arith.constant 0 : index
    %c0_23 = arith.constant 0 : index
    %34 = vector.load %arg2[%c1_20, %c0_21, %c0_22, %c0_23] : memref<2x3x1x5xf32, #tpu.memory_space<vmem>>, vector<1x1x1x5xf32>
    %35 = vector.shape_cast %34 : vector<1x1x1x5xf32> to vector<1x5xf32>
    %36 = vector.broadcast %35 : vector<1x5xf32> to vector<8x5xf32>
    %37 = arith.mulf %33, %36 : vector<8x5xf32>
    %38 = arith.addf %30, %37 : vector<8x5xf32>
    %cst_24 = arith.constant 0.000000e+00 : f32
    %39 = vector.broadcast %cst_24 : f32 to vector<2x5xf32>
    %40 = vector.extract_strided_slice %29 {offsets = [0, 0], sizes = [6, 5], strides = [1, 1]} : vector<8x5xf32> to vector<6x5xf32>
    %41 = tpu.concatenate %39, %40 in 0 : vector<2x5xf32>, vector<6x5xf32> -> vector<8x5xf32>
    %c1_25 = arith.constant 1 : index
    %c1_26 = arith.constant 1 : index
    %c0_27 = arith.constant 0 : index
    %c0_28 = arith.constant 0 : index
    %42 = vector.load %arg2[%c1_25, %c1_26, %c0_27, %c0_28] : memref<2x3x1x5xf32, #tpu.memory_space<vmem>>, vector<1x1x1x5xf32>
    %43 = vector.shape_cast %42 : vector<1x1x1x5xf32> to vector<1x5xf32>
    %44 = vector.broadcast %43 : vector<1x5xf32> to vector<8x5xf32>
    %45 = arith.mulf %41, %44 : vector<8x5xf32>
    %46 = arith.addf %38, %45 : vector<8x5xf32>
    %c1_29 = arith.constant 1 : index
    %c2_30 = arith.constant 2 : index
    %c0_31 = arith.constant 0 : index
    %c0_32 = arith.constant 0 : index
    %47 = vector.load %arg2[%c1_29, %c2_30, %c0_31, %c0_32] : memref<2x3x1x5xf32, #tpu.memory_space<vmem>>, vector<1x1x1x5xf32>
    %48 = vector.shape_cast %47 : vector<1x1x1x5xf32> to vector<1x5xf32>
    %49 = vector.broadcast %48 : vector<1x5xf32> to vector<8x5xf32>
    %50 = arith.mulf %29, %49 : vector<8x5xf32>
    %51 = arith.addf %46, %50 : vector<8x5xf32>
    %c1_33 = arith.constant 1 : index
    %c0_34 = arith.constant 0 : index
    %c0_35 = arith.constant 0 : index
    %52 = vector.load %arg3[%c1_33, %c0_34, %c0_35] : memref<2x1x5xf32, #tpu.memory_space<vmem>>, vector<1x1x5xf32>
    %53 = vector.shape_cast %52 : vector<1x1x5xf32> to vector<1x5xf32>
    %54 = vector.broadcast %53 : vector<1x5xf32> to vector<8x5xf32>
    %55 = arith.addf %51, %54 : vector<8x5xf32>
    %cst_36 = arith.constant 0.000000e+00 : f32
    %56 = vector.broadcast %cst_36 : f32 to vector<8x5xf32>
    %57 = arith.maximumf %55, %56 : vector<8x5xf32>
    %58 = arith.truncf %57 : vector<8x5xf32> to vector<8x5xbf16>
    %c0_37 = arith.constant 0 : index
    %c0_38 = arith.constant 0 : index
    %59 = vector.load %arg4[%c0_37, %c0_38] : memref<5x32xbf16, #tpu.memory_space<vmem>>, vector<5x32xbf16>
    %cst_39 = arith.constant dense<0.000000e+00> : vector<8x32xf32>
    %60 = tpu.matmul %58, %59, %cst_39 {dimension_numbers = #tpu.dot_dimension_numbers<[1], [0], [0], [1], [0, 0, 1, 1], [], []>} : vector<8x5xbf16>, vector<5x32xbf16>, vector<8x32xf32> -> vector<8x32xf32>
    %c0_40 = arith.constant 0 : index
    %c0_41 = arith.constant 0 : index
    %61 = vector.load %arg5[%c0_40, %c0_41] : memref<1x32xf32, #tpu.memory_space<vmem>>, vector<1x32xf32>
    %62 = vector.broadcast %61 : vector<1x32xf32> to vector<8x32xf32>
    %63 = arith.addf %60, %62 : vector<8x32xf32>
    %c0_42 = arith.constant 0 : index
    %c0_43 = arith.constant 0 : index
    %64 = vector.load %arg6[%c0_42, %c0_43] : memref<8x32xf32, #tpu.memory_space<vmem>>, vector<8x32xf32>
    %65 = arith.addf %63, %64 : vector<8x32xf32>
    %66 = arith.truncf %65 : vector<8x32xf32> to vector<8x32xbf16>
    %c0_44 = arith.constant 0 : index
    %c0_45 = arith.constant 0 : index
    %c0_46 = arith.constant 0 : index
    %67 = vector.load %arg7[%c0_44, %c0_45, %c0_46] : memref<1x8x32xbf16, #tpu.memory_space<vmem>>, vector<1x8x32xbf16>
    %68 = vector.shape_cast %67 : vector<1x8x32xbf16> to vector<8x32xbf16>
    %69 = vector.shape_cast %66 : vector<8x32xbf16> to vector<1x8x32xbf16>
    tpu.vector_store %arg7[%c0_44, %c0_45, %c0_46], %69 {strides = array<i32>} : memref<1x8x32xbf16, #tpu.memory_space<vmem>>, vector<1x8x32xbf16>,
    return
  }
  func.func @transform_0(%arg0: i32) -> (i32, i32, i32) {
    %c0_i32 = arith.constant 0 : i32
    %c0_i32_0 = arith.constant 0 : i32
    %c0_i32_1 = arith.constant 0 : i32
    return %arg0, %c0_i32, %c0_i32_0 : i32, i32, i32
  }
  func.func @transform_1(%arg0: i32) -> (i32, i32, i32, i32) {
    %c0_i32 = arith.constant 0 : i32
    %c0_i32_0 = arith.constant 0 : i32
    %c0_i32_1 = arith.constant 0 : i32
    %c0_i32_2 = arith.constant 0 : i32
    %c0_i32_3 = arith.constant 0 : i32
    return %c0_i32, %c0_i32_0, %c0_i32_1, %c0_i32_2 : i32, i32, i32, i32
  }
  func.func @transform_2(%arg0: i32) -> (i32, i32, i32) {
    %c0_i32 = arith.constant 0 : i32
    %c0_i32_0 = arith.constant 0 : i32
    %c0_i32_1 = arith.constant 0 : i32
    %c0_i32_2 = arith.constant 0 : i32
    return %c0_i32, %c0_i32_0, %c0_i32_1 : i32, i32, i32
  }
  func.func @transform_3(%arg0: i32) -> (i32, i32) {
    %c0_i32 = arith.constant 0 : i32
    %c0_i32_0 = arith.constant 0 : i32
    %c0_i32_1 = arith.constant 0 : i32
    return %c0_i32, %c0_i32_0 : i32, i32
  }
  func.func @transform_4(%arg0: i32) -> (i32, i32) {
    %c0_i32 = arith.constant 0 : i32
    %c0_i32_0 = arith.constant 0 : i32
    %c0_i32_1 = arith.constant 0 : i32
    return %c0_i32, %c0_i32_0 : i32, i32
  }
  func.func @transform_5(%arg0: i32) -> (i32, i32) {
    %c0_i32 = arith.constant 0 : i32
    %c0_i32_0 = arith.constant 0 : i32
    %c0_i32_1 = arith.constant 0 : i32
    return %c0_i32, %c0_i32_0 : i32, i32
  }
  func.func @transform_6(%arg0: i32) -> (i32, i32, i32) {
    %c0_i32 = arith.constant 0 : i32
    %c0_i32_0 = arith.constant 0 : i32
    %c0_i32_1 = arith.constant 0 : i32
    return %arg0, %c0_i32, %c0_i32_0 : i32, i32, i32
  }
}

module attributes {stable_mosaic.version = 11 : i64} {
  func.func @_regressor_kernel(%arg0: i32, %arg1: memref<1x8x32xbf16, #tpu.memory_space<vmem>>, %arg2: memref<2x3x1x32xf32, #tpu.memory_space<vmem>>, %arg3: memref<2x1x32xf32, #tpu.memory_space<vmem>>, %arg4: memref<32x64xbf16, #tpu.memory_space<vmem>>, %arg5: memref<1x64xf32, #tpu.memory_space<vmem>>, %arg6: memref<1x64xf32, #tpu.memory_space<vmem>>, %arg7: memref<1x1xf32, #tpu.memory_space<vmem>>, %arg8: memref<8x4xf32, #tpu.memory_space<vmem>>, %arg9: memref<1x4xf32, #tpu.memory_space<vmem>>, %arg10: memref<1x1x4xf32, #tpu.memory_space<vmem>>) attributes {dimension_semantics = [#tpu.dimension_semantics<parallel>], iteration_bounds = array<i64: 2>, scalar_prefetch = 0 : i64, scratch_operands = 0 : i64, tpu.core_type = #tpu.core_type<tc>, window_params = [{transform_indices = @transform_0, window_bounds = array<i64: 1, 8, 32>}, {pipeline_mode = #tpu.pipeline_mode<synchronous>, transform_indices = @transform_1, window_bounds = array<i64: 2, 3, 1, 32>}, {pipeline_mode = #tpu.pipeline_mode<synchronous>, transform_indices = @transform_2, window_bounds = array<i64: 2, 1, 32>}, {pipeline_mode = #tpu.pipeline_mode<synchronous>, transform_indices = @transform_3, window_bounds = array<i64: 32, 64>}, {pipeline_mode = #tpu.pipeline_mode<synchronous>, transform_indices = @transform_4, window_bounds = array<i64: 1, 64>}, {pipeline_mode = #tpu.pipeline_mode<synchronous>, transform_indices = @transform_5, window_bounds = array<i64: 1, 64>}, {pipeline_mode = #tpu.pipeline_mode<synchronous>, transform_indices = @transform_6, window_bounds = array<i64: 1, 1>}, {pipeline_mode = #tpu.pipeline_mode<synchronous>, transform_indices = @transform_7, window_bounds = array<i64: 8, 4>}, {pipeline_mode = #tpu.pipeline_mode<synchronous>, transform_indices = @transform_8, window_bounds = array<i64: 1, 4>}, {transform_indices = @transform_9, window_bounds = array<i64: 1, 1, 4>}]} {
    %c0 = arith.constant 0 : index
    %c0_0 = arith.constant 0 : index
    %c0_1 = arith.constant 0 : index
    %0 = vector.load %arg1[%c0, %c0_0, %c0_1] : memref<1x8x32xbf16, #tpu.memory_space<vmem>>, vector<1x8x32xbf16>
    %1 = vector.shape_cast %0 : vector<1x8x32xbf16> to vector<8x32xbf16>
    %2 = arith.extf %1 : vector<8x32xbf16> to vector<8x32xf32>
    %cst = arith.constant 0.000000e+00 : f32
    %3 = vector.broadcast %cst : f32 to vector<8x32xf32>
    %cst_2 = arith.constant 0.000000e+00 : f32
    %4 = vector.broadcast %cst_2 : f32 to vector<2x32xf32>
    %5 = vector.extract_strided_slice %2 {offsets = [0, 0], sizes = [6, 32], strides = [1, 1]} : vector<8x32xf32> to vector<6x32xf32>
    %6 = tpu.concatenate %4, %5 in 0 : vector<2x32xf32>, vector<6x32xf32> -> vector<8x32xf32>
    %c0_3 = arith.constant 0 : index
    %c0_4 = arith.constant 0 : index
    %c0_5 = arith.constant 0 : index
    %c0_6 = arith.constant 0 : index
    %7 = vector.load %arg2[%c0_3, %c0_4, %c0_5, %c0_6] : memref<2x3x1x32xf32, #tpu.memory_space<vmem>>, vector<1x1x1x32xf32>
    %8 = vector.shape_cast %7 : vector<1x1x1x32xf32> to vector<1x32xf32>
    %9 = vector.broadcast %8 : vector<1x32xf32> to vector<8x32xf32>
    %10 = arith.mulf %6, %9 : vector<8x32xf32>
    %11 = arith.addf %3, %10 : vector<8x32xf32>
    %cst_7 = arith.constant 0.000000e+00 : f32
    %12 = vector.broadcast %cst_7 : f32 to vector<1x32xf32>
    %13 = vector.extract_strided_slice %2 {offsets = [0, 0], sizes = [7, 32], strides = [1, 1]} : vector<8x32xf32> to vector<7x32xf32>
    %14 = tpu.concatenate %12, %13 in 0 : vector<1x32xf32>, vector<7x32xf32> -> vector<8x32xf32>
    %c0_8 = arith.constant 0 : index
    %c1 = arith.constant 1 : index
    %c0_9 = arith.constant 0 : index
    %c0_10 = arith.constant 0 : index
    %15 = vector.load %arg2[%c0_8, %c1, %c0_9, %c0_10] : memref<2x3x1x32xf32, #tpu.memory_space<vmem>>, vector<1x1x1x32xf32>
    %16 = vector.shape_cast %15 : vector<1x1x1x32xf32> to vector<1x32xf32>
    %17 = vector.broadcast %16 : vector<1x32xf32> to vector<8x32xf32>
    %18 = arith.mulf %14, %17 : vector<8x32xf32>
    %19 = arith.addf %11, %18 : vector<8x32xf32>
    %c0_11 = arith.constant 0 : index
    %c2 = arith.constant 2 : index
    %c0_12 = arith.constant 0 : index
    %c0_13 = arith.constant 0 : index
    %20 = vector.load %arg2[%c0_11, %c2, %c0_12, %c0_13] : memref<2x3x1x32xf32, #tpu.memory_space<vmem>>, vector<1x1x1x32xf32>
    %21 = vector.shape_cast %20 : vector<1x1x1x32xf32> to vector<1x32xf32>
    %22 = vector.broadcast %21 : vector<1x32xf32> to vector<8x32xf32>
    %23 = arith.mulf %2, %22 : vector<8x32xf32>
    %24 = arith.addf %19, %23 : vector<8x32xf32>
    %c0_14 = arith.constant 0 : index
    %c0_15 = arith.constant 0 : index
    %c0_16 = arith.constant 0 : index
    %25 = vector.load %arg3[%c0_14, %c0_15, %c0_16] : memref<2x1x32xf32, #tpu.memory_space<vmem>>, vector<1x1x32xf32>
    %26 = vector.shape_cast %25 : vector<1x1x32xf32> to vector<1x32xf32>
    %27 = vector.broadcast %26 : vector<1x32xf32> to vector<8x32xf32>
    %28 = arith.addf %24, %27 : vector<8x32xf32>
    %cst_17 = arith.constant 0.000000e+00 : f32
    %29 = vector.broadcast %cst_17 : f32 to vector<8x32xf32>
    %30 = arith.maximumf %28, %29 : vector<8x32xf32>
    %cst_18 = arith.constant 0.000000e+00 : f32
    %31 = vector.broadcast %cst_18 : f32 to vector<8x32xf32>
    %cst_19 = arith.constant 0.000000e+00 : f32
    %32 = vector.broadcast %cst_19 : f32 to vector<4x32xf32>
    %33 = vector.extract_strided_slice %30 {offsets = [0, 0], sizes = [4, 32], strides = [1, 1]} : vector<8x32xf32> to vector<4x32xf32>
    %34 = tpu.concatenate %32, %33 in 0 : vector<4x32xf32>, vector<4x32xf32> -> vector<8x32xf32>
    %c1_20 = arith.constant 1 : index
    %c0_21 = arith.constant 0 : index
    %c0_22 = arith.constant 0 : index
    %c0_23 = arith.constant 0 : index
    %35 = vector.load %arg2[%c1_20, %c0_21, %c0_22, %c0_23] : memref<2x3x1x32xf32, #tpu.memory_space<vmem>>, vector<1x1x1x32xf32>
    %36 = vector.shape_cast %35 : vector<1x1x1x32xf32> to vector<1x32xf32>
    %37 = vector.broadcast %36 : vector<1x32xf32> to vector<8x32xf32>
    %38 = arith.mulf %34, %37 : vector<8x32xf32>
    %39 = arith.addf %31, %38 : vector<8x32xf32>
    %cst_24 = arith.constant 0.000000e+00 : f32
    %40 = vector.broadcast %cst_24 : f32 to vector<2x32xf32>
    %41 = vector.extract_strided_slice %30 {offsets = [0, 0], sizes = [6, 32], strides = [1, 1]} : vector<8x32xf32> to vector<6x32xf32>
    %42 = tpu.concatenate %40, %41 in 0 : vector<2x32xf32>, vector<6x32xf32> -> vector<8x32xf32>
    %c1_25 = arith.constant 1 : index
    %c1_26 = arith.constant 1 : index
    %c0_27 = arith.constant 0 : index
    %c0_28 = arith.constant 0 : index
    %43 = vector.load %arg2[%c1_25, %c1_26, %c0_27, %c0_28] : memref<2x3x1x32xf32, #tpu.memory_space<vmem>>, vector<1x1x1x32xf32>
    %44 = vector.shape_cast %43 : vector<1x1x1x32xf32> to vector<1x32xf32>
    %45 = vector.broadcast %44 : vector<1x32xf32> to vector<8x32xf32>
    %46 = arith.mulf %42, %45 : vector<8x32xf32>
    %47 = arith.addf %39, %46 : vector<8x32xf32>
    %c1_29 = arith.constant 1 : index
    %c2_30 = arith.constant 2 : index
    %c0_31 = arith.constant 0 : index
    %c0_32 = arith.constant 0 : index
    %48 = vector.load %arg2[%c1_29, %c2_30, %c0_31, %c0_32] : memref<2x3x1x32xf32, #tpu.memory_space<vmem>>, vector<1x1x1x32xf32>
    %49 = vector.shape_cast %48 : vector<1x1x1x32xf32> to vector<1x32xf32>
    %50 = vector.broadcast %49 : vector<1x32xf32> to vector<8x32xf32>
    %51 = arith.mulf %30, %50 : vector<8x32xf32>
    %52 = arith.addf %47, %51 : vector<8x32xf32>
    %c1_33 = arith.constant 1 : index
    %c0_34 = arith.constant 0 : index
    %c0_35 = arith.constant 0 : index
    %53 = vector.load %arg3[%c1_33, %c0_34, %c0_35] : memref<2x1x32xf32, #tpu.memory_space<vmem>>, vector<1x1x32xf32>
    %54 = vector.shape_cast %53 : vector<1x1x32xf32> to vector<1x32xf32>
    %55 = vector.broadcast %54 : vector<1x32xf32> to vector<8x32xf32>
    %56 = arith.addf %52, %55 : vector<8x32xf32>
    %cst_36 = arith.constant 0.000000e+00 : f32
    %57 = vector.broadcast %cst_36 : f32 to vector<8x32xf32>
    %58 = arith.maximumf %56, %57 : vector<8x32xf32>
    %59 = arith.truncf %58 : vector<8x32xf32> to vector<8x32xbf16>
    %c0_37 = arith.constant 0 : index
    %c0_38 = arith.constant 0 : index
    %60 = vector.load %arg4[%c0_37, %c0_38] : memref<32x64xbf16, #tpu.memory_space<vmem>>, vector<32x64xbf16>
    %cst_39 = arith.constant dense<0.000000e+00> : vector<8x64xf32>
    %61 = tpu.matmul %59, %60, %cst_39 {dimension_numbers = #tpu.dot_dimension_numbers<[1], [0], [0], [1], [0, 0, 1, 1], [], []>} : vector<8x32xbf16>, vector<32x64xbf16>, vector<8x64xf32> -> vector<8x64xf32>
    %c0_40 = arith.constant 0 : index
    %c0_41 = arith.constant 0 : index
    %62 = vector.load %arg5[%c0_40, %c0_41] : memref<1x64xf32, #tpu.memory_space<vmem>>, vector<1x64xf32>
    %63 = vector.broadcast %62 : vector<1x64xf32> to vector<8x64xf32>
    %64 = arith.addf %61, %63 : vector<8x64xf32>
    %cst_42 = arith.constant 0.000000e+00 : f32
    %65 = vector.broadcast %cst_42 : f32 to vector<8x64xf32>
    %66 = arith.maximumf %64, %65 : vector<8x64xf32>
    %c0_43 = arith.constant 0 : index
    %c0_44 = arith.constant 0 : index
    %67 = vector.load %arg6[%c0_43, %c0_44] : memref<1x64xf32, #tpu.memory_space<vmem>>, vector<1x64xf32>
    %68 = vector.broadcast %67 : vector<1x64xf32> to vector<8x64xf32>
    %69 = arith.mulf %66, %68 : vector<8x64xf32>
    %cst_45 = arith.constant dense<0.000000e+00> : vector<8xf32>
    %70 = vector.multi_reduction <add>, %69, %cst_45 [1] : vector<8x64xf32> to vector<8xf32>
    %71 = vector.shape_cast %70 : vector<8xf32> to vector<8x1xf32>
    %c0_46 = arith.constant 0 : index
    %c0_47 = arith.constant 0 : index
    %72 = vector.load %arg7[%c0_46, %c0_47] : memref<1x1xf32, #tpu.memory_space<vmem>>, vector<1x1xf32>
    %73 = vector.broadcast %72 : vector<1x1xf32> to vector<8x1xf32>
    %74 = arith.addf %71, %73 : vector<8x1xf32>
    %c0_48 = arith.constant 0 : index
    %c0_49 = arith.constant 0 : index
    %75 = vector.load %arg8[%c0_48, %c0_49] : memref<8x4xf32, #tpu.memory_space<vmem>>, vector<8x4xf32>
    %76 = vector.broadcast %74 : vector<8x1xf32> to vector<8x4xf32>
    %77 = arith.mulf %76, %75 : vector<8x4xf32>
    %cst_50 = arith.constant dense<0.000000e+00> : vector<4xf32>
    %78 = vector.multi_reduction <add>, %77, %cst_50 [0] : vector<8x4xf32> to vector<4xf32>
    %79 = vector.shape_cast %78 : vector<4xf32> to vector<1x4xf32>
    %c0_51 = arith.constant 0 : index
    %c0_52 = arith.constant 0 : index
    %80 = vector.load %arg9[%c0_51, %c0_52] : memref<1x4xf32, #tpu.memory_space<vmem>>, vector<1x4xf32>
    %81 = arith.addf %79, %80 : vector<1x4xf32>
    %c0_53 = arith.constant 0 : index
    %c0_54 = arith.constant 0 : index
    %c0_55 = arith.constant 0 : index
    %82 = vector.load %arg10[%c0_53, %c0_54, %c0_55] : memref<1x1x4xf32, #tpu.memory_space<vmem>>, vector<1x1x4xf32>
    %83 = vector.shape_cast %82 : vector<1x1x4xf32> to vector<1x4xf32>
    %84 = vector.shape_cast %81 : vector<1x4xf32> to vector<1x1x4xf32>
    tpu.vector_store %arg10[%c0_53, %c0_54, %c0_55], %84 {strides = array<i32>} : memref<1x1x4xf32, #tpu.memory_space<vmem>>, vector<1x1x4xf32>,
    return
  }
  func.func @transform_0(%arg0: i32) -> (i32, i32, i32) {
    %c0_i32 = arith.constant 0 : i32
    %c0_i32_0 = arith.constant 0 : i32
    %c0_i32_1 = arith.constant 0 : i32
    return %arg0, %c0_i32, %c0_i32_0 : i32, i32, i32
  }
  func.func @transform_1(%arg0: i32) -> (i32, i32, i32, i32) {
    %c0_i32 = arith.constant 0 : i32
    %c0_i32_0 = arith.constant 0 : i32
    %c0_i32_1 = arith.constant 0 : i32
    %c0_i32_2 = arith.constant 0 : i32
    %c0_i32_3 = arith.constant 0 : i32
    return %c0_i32, %c0_i32_0, %c0_i32_1, %c0_i32_2 : i32, i32, i32, i32
  }
  func.func @transform_2(%arg0: i32) -> (i32, i32, i32) {
    %c0_i32 = arith.constant 0 : i32
    %c0_i32_0 = arith.constant 0 : i32
    %c0_i32_1 = arith.constant 0 : i32
    %c0_i32_2 = arith.constant 0 : i32
    return %c0_i32, %c0_i32_0, %c0_i32_1 : i32, i32, i32
  }
  func.func @transform_3(%arg0: i32) -> (i32, i32) {
    %c0_i32 = arith.constant 0 : i32
    %c0_i32_0 = arith.constant 0 : i32
    %c0_i32_1 = arith.constant 0 : i32
    return %c0_i32, %c0_i32_0 : i32, i32
  }
  func.func @transform_4(%arg0: i32) -> (i32, i32) {
    %c0_i32 = arith.constant 0 : i32
    %c0_i32_0 = arith.constant 0 : i32
    %c0_i32_1 = arith.constant 0 : i32
    return %c0_i32, %c0_i32_0 : i32, i32
  }
  func.func @transform_5(%arg0: i32) -> (i32, i32) {
    %c0_i32 = arith.constant 0 : i32
    %c0_i32_0 = arith.constant 0 : i32
    %c0_i32_1 = arith.constant 0 : i32
    return %c0_i32, %c0_i32_0 : i32, i32
  }
  func.func @transform_6(%arg0: i32) -> (i32, i32) {
    %c0_i32 = arith.constant 0 : i32
    %c0_i32_0 = arith.constant 0 : i32
    %c0_i32_1 = arith.constant 0 : i32
    return %c0_i32, %c0_i32_0 : i32, i32
  }
  func.func @transform_7(%arg0: i32) -> (i32, i32) {
    %c0_i32 = arith.constant 0 : i32
    %c0_i32_0 = arith.constant 0 : i32
    %c0_i32_1 = arith.constant 0 : i32
    return %c0_i32, %c0_i32_0 : i32, i32
  }
  func.func @transform_8(%arg0: i32) -> (i32, i32) {
    %c0_i32 = arith.constant 0 : i32
    %c0_i32_0 = arith.constant 0 : i32
    %c0_i32_1 = arith.constant 0 : i32
    return %c0_i32, %c0_i32_0 : i32, i32
  }
  func.func @transform_9(%arg0: i32) -> (i32, i32, i32) {
    %c0_i32 = arith.constant 0 : i32
    %c0_i32_0 = arith.constant 0 : i32
    %c0_i32_1 = arith.constant 0 : i32
    return %arg0, %c0_i32, %c0_i32_0 : i32, i32, i32
  }
}

module attributes {stable_mosaic.version = 11 : i64} {
  func.func @_interstage_block_kernel(%arg0: i32, %arg1: memref<1x8x32xbf16, #tpu.memory_space<vmem>>, %arg2: memref<1x8x32xbf16, #tpu.memory_space<vmem>>, %arg3: memref<32x32xbf16, #tpu.memory_space<vmem>>, %arg4: memref<1x32xf32, #tpu.memory_space<vmem>>, %arg5: memref<32x64xbf16, #tpu.memory_space<vmem>>, %arg6: memref<1x64xf32, #tpu.memory_space<vmem>>, %arg7: memref<32x32xbf16, #tpu.memory_space<vmem>>, %arg8: memref<1x32xf32, #tpu.memory_space<vmem>>, %arg9: memref<1x32xf32, #tpu.memory_space<vmem>>, %arg10: memref<1x32xf32, #tpu.memory_space<vmem>>, %arg11: memref<32x32xbf16, #tpu.memory_space<vmem>>, %arg12: memref<1x32xf32, #tpu.memory_space<vmem>>, %arg13: memref<32x64xbf16, #tpu.memory_space<vmem>>, %arg14: memref<1x64xf32, #tpu.memory_space<vmem>>, %arg15: memref<64x32xbf16, #tpu.memory_space<vmem>>, %arg16: memref<1x32xf32, #tpu.memory_space<vmem>>, %arg17: memref<1x32xf32, #tpu.memory_space<vmem>>, %arg18: memref<1x32xf32, #tpu.memory_space<vmem>>, %arg19: memref<1x8x32xbf16, #tpu.memory_space<vmem>>, %arg20: memref<1x8x32xbf16, #tpu.memory_space<vmem>>) attributes {dimension_semantics = [#tpu.dimension_semantics<parallel>], iteration_bounds = array<i64: 2>, scalar_prefetch = 0 : i64, scratch_operands = 0 : i64, tpu.core_type = #tpu.core_type<tc>, window_params = [{transform_indices = @transform_0, window_bounds = array<i64: 1, 8, 32>}, {transform_indices = @transform_1, window_bounds = array<i64: 1, 8, 32>}, {pipeline_mode = #tpu.pipeline_mode<synchronous>, transform_indices = @transform_2, window_bounds = array<i64: 32, 32>}, {pipeline_mode = #tpu.pipeline_mode<synchronous>, transform_indices = @transform_3, window_bounds = array<i64: 1, 32>}, {pipeline_mode = #tpu.pipeline_mode<synchronous>, transform_indices = @transform_4, window_bounds = array<i64: 32, 64>}, {pipeline_mode = #tpu.pipeline_mode<synchronous>, transform_indices = @transform_5, window_bounds = array<i64: 1, 64>}, {pipeline_mode = #tpu.pipeline_mode<synchronous>, transform_indices = @transform_6, window_bounds = array<i64: 32, 32>}, {pipeline_mode = #tpu.pipeline_mode<synchronous>, transform_indices = @transform_7, window_bounds = array<i64: 1, 32>}, {pipeline_mode = #tpu.pipeline_mode<synchronous>, transform_indices = @transform_8, window_bounds = array<i64: 1, 32>}, {pipeline_mode = #tpu.pipeline_mode<synchronous>, transform_indices = @transform_9, window_bounds = array<i64: 1, 32>}, {pipeline_mode = #tpu.pipeline_mode<synchronous>, transform_indices = @transform_10, window_bounds = array<i64: 32, 32>}, {pipeline_mode = #tpu.pipeline_mode<synchronous>, transform_indices = @transform_11, window_bounds = array<i64: 1, 32>}, {pipeline_mode = #tpu.pipeline_mode<synchronous>, transform_indices = @transform_12, window_bounds = array<i64: 32, 64>}, {pipeline_mode = #tpu.pipeline_mode<synchronous>, transform_indices = @transform_13, window_bounds = array<i64: 1, 64>}, {pipeline_mode = #tpu.pipeline_mode<synchronous>, transform_indices = @transform_14, window_bounds = array<i64: 64, 32>}, {pipeline_mode = #tpu.pipeline_mode<synchronous>, transform_indices = @transform_15, window_bounds = array<i64: 1, 32>}, {pipeline_mode = #tpu.pipeline_mode<synchronous>, transform_indices = @transform_16, window_bounds = array<i64: 1, 32>}, {pipeline_mode = #tpu.pipeline_mode<synchronous>, transform_indices = @transform_17, window_bounds = array<i64: 1, 32>}, {transform_indices = @transform_18, window_bounds = array<i64: 1, 8, 32>}, {transform_indices = @transform_19, window_bounds = array<i64: 1, 8, 32>}]} {
    %c0 = arith.constant 0 : index
    %c0_0 = arith.constant 0 : index
    %c0_1 = arith.constant 0 : index
    %0 = vector.load %arg1[%c0, %c0_0, %c0_1] : memref<1x8x32xbf16, #tpu.memory_space<vmem>>, vector<1x8x32xbf16>
    %1 = vector.shape_cast %0 : vector<1x8x32xbf16> to vector<8x32xbf16>
    %c0_2 = arith.constant 0 : index
    %c0_3 = arith.constant 0 : index
    %c0_4 = arith.constant 0 : index
    %2 = vector.load %arg2[%c0_2, %c0_3, %c0_4] : memref<1x8x32xbf16, #tpu.memory_space<vmem>>, vector<1x8x32xbf16>
    %3 = vector.shape_cast %2 : vector<1x8x32xbf16> to vector<8x32xbf16>
    %c0_5 = arith.constant 0 : index
    %c0_6 = arith.constant 0 : index
    %4 = vector.load %arg3[%c0_5, %c0_6] : memref<32x32xbf16, #tpu.memory_space<vmem>>, vector<32x32xbf16>
    %cst = arith.constant dense<0.000000e+00> : vector<8x32xf32>
    %5 = tpu.matmul %1, %4, %cst {dimension_numbers = #tpu.dot_dimension_numbers<[1], [0], [0], [1], [0, 0, 1, 1], [], []>} : vector<8x32xbf16>, vector<32x32xbf16>, vector<8x32xf32> -> vector<8x32xf32>
    %c0_7 = arith.constant 0 : index
    %c0_8 = arith.constant 0 : index
    %6 = vector.load %arg4[%c0_7, %c0_8] : memref<1x32xf32, #tpu.memory_space<vmem>>, vector<1x32xf32>
    %7 = vector.broadcast %6 : vector<1x32xf32> to vector<8x32xf32>
    %8 = arith.addf %5, %7 : vector<8x32xf32>
    %9 = arith.truncf %8 : vector<8x32xf32> to vector<8x32xbf16>
    %c0_9 = arith.constant 0 : index
    %c0_10 = arith.constant 0 : index
    %10 = vector.load %arg5[%c0_9, %c0_10] : memref<32x64xbf16, #tpu.memory_space<vmem>>, vector<32x64xbf16>
    %cst_11 = arith.constant dense<0.000000e+00> : vector<8x64xf32>
    %11 = tpu.matmul %3, %10, %cst_11 {dimension_numbers = #tpu.dot_dimension_numbers<[1], [0], [0], [1], [0, 0, 1, 1], [], []>} : vector<8x32xbf16>, vector<32x64xbf16>, vector<8x64xf32> -> vector<8x64xf32>
    %c0_12 = arith.constant 0 : index
    %c0_13 = arith.constant 0 : index
    %12 = vector.load %arg6[%c0_12, %c0_13] : memref<1x64xf32, #tpu.memory_space<vmem>>, vector<1x64xf32>
    %13 = vector.broadcast %12 : vector<1x64xf32> to vector<8x64xf32>
    %14 = arith.addf %11, %13 : vector<8x64xf32>
    %15 = vector.extract_strided_slice %14 {offsets = [0, 0], sizes = [8, 32], strides = [1, 1]} : vector<8x64xf32> to vector<8x32xf32>
    %16 = arith.truncf %15 : vector<8x32xf32> to vector<8x32xbf16>
    %17 = vector.extract_strided_slice %14 {offsets = [0, 32], sizes = [8, 32], strides = [1, 1]} : vector<8x64xf32> to vector<8x32xf32>
    %18 = arith.truncf %17 : vector<8x32xf32> to vector<8x32xbf16>
    %19 = vector.extract_strided_slice %9 {offsets = [0, 0], sizes = [8, 8], strides = [1, 1]} : vector<8x32xbf16> to vector<8x8xbf16>
    %20 = vector.extract_strided_slice %16 {offsets = [0, 0], sizes = [8, 8], strides = [1, 1]} : vector<8x32xbf16> to vector<8x8xbf16>
    %cst_14 = arith.constant dense<0.000000e+00> : vector<8x8xf32>
    %21 = tpu.matmul %19, %20, %cst_14 {dimension_numbers = #tpu.dot_dimension_numbers<[1], [1], [0], [0], [0, 0, 1, 0], [], []>} : vector<8x8xbf16>, vector<8x8xbf16>, vector<8x8xf32> -> vector<8x8xf32>
    %cst_15 = arith.constant 0.353553385 : f32
    %22 = vector.broadcast %cst_15 : f32 to vector<8x8xf32>
    %23 = arith.mulf %21, %22 : vector<8x8xf32>
    %cst_16 = arith.constant dense<0xFF800000> : vector<8xf32>
    %24 = vector.multi_reduction <maximumf>, %23, %cst_16 [1] : vector<8x8xf32> to vector<8xf32>
    %25 = vector.shape_cast %24 : vector<8xf32> to vector<8x1xf32>
    %26 = vector.broadcast %25 : vector<8x1xf32> to vector<8x8xf32>
    %27 = arith.subf %23, %26 : vector<8x8xf32>
    %28 = math.exp %27 : vector<8x8xf32>
    %cst_17 = arith.constant dense<0.000000e+00> : vector<8xf32>
    %29 = vector.multi_reduction <add>, %28, %cst_17 [1] : vector<8x8xf32> to vector<8xf32>
    %30 = vector.shape_cast %29 : vector<8xf32> to vector<8x1xf32>
    %31 = tpu.reciprocal %30 {approx = true} : vector<8x1xf32> -> vector<8x1xf32>
    %32 = vector.broadcast %31 : vector<8x1xf32> to vector<8x8xf32>
    %33 = arith.mulf %28, %32 : vector<8x8xf32>
    %34 = arith.truncf %33 : vector<8x8xf32> to vector<8x8xbf16>
    %35 = vector.extract_strided_slice %18 {offsets = [0, 0], sizes = [8, 8], strides = [1, 1]} : vector<8x32xbf16> to vector<8x8xbf16>
    %cst_18 = arith.constant dense<0.000000e+00> : vector<8x8xf32>
    %36 = tpu.matmul %34, %35, %cst_18 {dimension_numbers = #tpu.dot_dimension_numbers<[1], [0], [0], [1], [0, 0, 1, 1], [], []>} : vector<8x8xbf16>, vector<8x8xbf16>, vector<8x8xf32> -> vector<8x8xf32>
    %37 = vector.extract_strided_slice %9 {offsets = [0, 8], sizes = [8, 8], strides = [1, 1]} : vector<8x32xbf16> to vector<8x8xbf16>
    %38 = vector.extract_strided_slice %16 {offsets = [0, 8], sizes = [8, 8], strides = [1, 1]} : vector<8x32xbf16> to vector<8x8xbf16>
    %cst_19 = arith.constant dense<0.000000e+00> : vector<8x8xf32>
    %39 = tpu.matmul %37, %38, %cst_19 {dimension_numbers = #tpu.dot_dimension_numbers<[1], [1], [0], [0], [0, 0, 1, 0], [], []>} : vector<8x8xbf16>, vector<8x8xbf16>, vector<8x8xf32> -> vector<8x8xf32>
    %cst_20 = arith.constant 0.353553385 : f32
    %40 = vector.broadcast %cst_20 : f32 to vector<8x8xf32>
    %41 = arith.mulf %39, %40 : vector<8x8xf32>
    %cst_21 = arith.constant dense<0xFF800000> : vector<8xf32>
    %42 = vector.multi_reduction <maximumf>, %41, %cst_21 [1] : vector<8x8xf32> to vector<8xf32>
    %43 = vector.shape_cast %42 : vector<8xf32> to vector<8x1xf32>
    %44 = vector.broadcast %43 : vector<8x1xf32> to vector<8x8xf32>
    %45 = arith.subf %41, %44 : vector<8x8xf32>
    %46 = math.exp %45 : vector<8x8xf32>
    %cst_22 = arith.constant dense<0.000000e+00> : vector<8xf32>
    %47 = vector.multi_reduction <add>, %46, %cst_22 [1] : vector<8x8xf32> to vector<8xf32>
    %48 = vector.shape_cast %47 : vector<8xf32> to vector<8x1xf32>
    %49 = tpu.reciprocal %48 {approx = true} : vector<8x1xf32> -> vector<8x1xf32>
    %50 = vector.broadcast %49 : vector<8x1xf32> to vector<8x8xf32>
    %51 = arith.mulf %46, %50 : vector<8x8xf32>
    %52 = arith.truncf %51 : vector<8x8xf32> to vector<8x8xbf16>
    %53 = vector.extract_strided_slice %18 {offsets = [0, 8], sizes = [8, 8], strides = [1, 1]} : vector<8x32xbf16> to vector<8x8xbf16>
    %cst_23 = arith.constant dense<0.000000e+00> : vector<8x8xf32>
    %54 = tpu.matmul %52, %53, %cst_23 {dimension_numbers = #tpu.dot_dimension_numbers<[1], [0], [0], [1], [0, 0, 1, 1], [], []>} : vector<8x8xbf16>, vector<8x8xbf16>, vector<8x8xf32> -> vector<8x8xf32>
    %55 = vector.extract_strided_slice %9 {offsets = [0, 16], sizes = [8, 8], strides = [1, 1]} : vector<8x32xbf16> to vector<8x8xbf16>
    %56 = vector.extract_strided_slice %16 {offsets = [0, 16], sizes = [8, 8], strides = [1, 1]} : vector<8x32xbf16> to vector<8x8xbf16>
    %cst_24 = arith.constant dense<0.000000e+00> : vector<8x8xf32>
    %57 = tpu.matmul %55, %56, %cst_24 {dimension_numbers = #tpu.dot_dimension_numbers<[1], [1], [0], [0], [0, 0, 1, 0], [], []>} : vector<8x8xbf16>, vector<8x8xbf16>, vector<8x8xf32> -> vector<8x8xf32>
    %cst_25 = arith.constant 0.353553385 : f32
    %58 = vector.broadcast %cst_25 : f32 to vector<8x8xf32>
    %59 = arith.mulf %57, %58 : vector<8x8xf32>
    %cst_26 = arith.constant dense<0xFF800000> : vector<8xf32>
    %60 = vector.multi_reduction <maximumf>, %59, %cst_26 [1] : vector<8x8xf32> to vector<8xf32>
    %61 = vector.shape_cast %60 : vector<8xf32> to vector<8x1xf32>
    %62 = vector.broadcast %61 : vector<8x1xf32> to vector<8x8xf32>
    %63 = arith.subf %59, %62 : vector<8x8xf32>
    %64 = math.exp %63 : vector<8x8xf32>
    %cst_27 = arith.constant dense<0.000000e+00> : vector<8xf32>
    %65 = vector.multi_reduction <add>, %64, %cst_27 [1] : vector<8x8xf32> to vector<8xf32>
    %66 = vector.shape_cast %65 : vector<8xf32> to vector<8x1xf32>
    %67 = tpu.reciprocal %66 {approx = true} : vector<8x1xf32> -> vector<8x1xf32>
    %68 = vector.broadcast %67 : vector<8x1xf32> to vector<8x8xf32>
    %69 = arith.mulf %64, %68 : vector<8x8xf32>
    %70 = arith.truncf %69 : vector<8x8xf32> to vector<8x8xbf16>
    %71 = vector.extract_strided_slice %18 {offsets = [0, 16], sizes = [8, 8], strides = [1, 1]} : vector<8x32xbf16> to vector<8x8xbf16>
    %cst_28 = arith.constant dense<0.000000e+00> : vector<8x8xf32>
    %72 = tpu.matmul %70, %71, %cst_28 {dimension_numbers = #tpu.dot_dimension_numbers<[1], [0], [0], [1], [0, 0, 1, 1], [], []>} : vector<8x8xbf16>, vector<8x8xbf16>, vector<8x8xf32> -> vector<8x8xf32>
    %73 = vector.extract_strided_slice %9 {offsets = [0, 24], sizes = [8, 8], strides = [1, 1]} : vector<8x32xbf16> to vector<8x8xbf16>
    %74 = vector.extract_strided_slice %16 {offsets = [0, 24], sizes = [8, 8], strides = [1, 1]} : vector<8x32xbf16> to vector<8x8xbf16>
    %cst_29 = arith.constant dense<0.000000e+00> : vector<8x8xf32>
    %75 = tpu.matmul %73, %74, %cst_29 {dimension_numbers = #tpu.dot_dimension_numbers<[1], [1], [0], [0], [0, 0, 1, 0], [], []>} : vector<8x8xbf16>, vector<8x8xbf16>, vector<8x8xf32> -> vector<8x8xf32>
    %cst_30 = arith.constant 0.353553385 : f32
    %76 = vector.broadcast %cst_30 : f32 to vector<8x8xf32>
    %77 = arith.mulf %75, %76 : vector<8x8xf32>
    %cst_31 = arith.constant dense<0xFF800000> : vector<8xf32>
    %78 = vector.multi_reduction <maximumf>, %77, %cst_31 [1] : vector<8x8xf32> to vector<8xf32>
    %79 = vector.shape_cast %78 : vector<8xf32> to vector<8x1xf32>
    %80 = vector.broadcast %79 : vector<8x1xf32> to vector<8x8xf32>
    %81 = arith.subf %77, %80 : vector<8x8xf32>
    %82 = math.exp %81 : vector<8x8xf32>
    %cst_32 = arith.constant dense<0.000000e+00> : vector<8xf32>
    %83 = vector.multi_reduction <add>, %82, %cst_32 [1] : vector<8x8xf32> to vector<8xf32>
    %84 = vector.shape_cast %83 : vector<8xf32> to vector<8x1xf32>
    %85 = tpu.reciprocal %84 {approx = true} : vector<8x1xf32> -> vector<8x1xf32>
    %86 = vector.broadcast %85 : vector<8x1xf32> to vector<8x8xf32>
    %87 = arith.mulf %82, %86 : vector<8x8xf32>
    %88 = arith.truncf %87 : vector<8x8xf32> to vector<8x8xbf16>
    %89 = vector.extract_strided_slice %18 {offsets = [0, 24], sizes = [8, 8], strides = [1, 1]} : vector<8x32xbf16> to vector<8x8xbf16>
    %cst_33 = arith.constant dense<0.000000e+00> : vector<8x8xf32>
    %90 = tpu.matmul %88, %89, %cst_33 {dimension_numbers = #tpu.dot_dimension_numbers<[1], [0], [0], [1], [0, 0, 1, 1], [], []>} : vector<8x8xbf16>, vector<8x8xbf16>, vector<8x8xf32> -> vector<8x8xf32>
    %91 = tpu.concatenate %36, %54, %72, %90 in 1 : vector<8x8xf32>, vector<8x8xf32>, vector<8x8xf32>, vector<8x8xf32> -> vector<8x32xf32>
    %92 = arith.truncf %91 : vector<8x32xf32> to vector<8x32xbf16>
    %c0_34 = arith.constant 0 : index
    %c0_35 = arith.constant 0 : index
    %93 = vector.load %arg7[%c0_34, %c0_35] : memref<32x32xbf16, #tpu.memory_space<vmem>>, vector<32x32xbf16>
    %cst_36 = arith.constant dense<0.000000e+00> : vector<8x32xf32>
    %94 = tpu.matmul %92, %93, %cst_36 {dimension_numbers = #tpu.dot_dimension_numbers<[1], [0], [0], [1], [0, 0, 1, 1], [], []>} : vector<8x32xbf16>, vector<32x32xbf16>, vector<8x32xf32> -> vector<8x32xf32>
    %c0_37 = arith.constant 0 : index
    %c0_38 = arith.constant 0 : index
    %95 = vector.load %arg8[%c0_37, %c0_38] : memref<1x32xf32, #tpu.memory_space<vmem>>, vector<1x32xf32>
    %96 = vector.broadcast %95 : vector<1x32xf32> to vector<8x32xf32>
    %97 = arith.addf %94, %96 : vector<8x32xf32>
    %98 = arith.extf %1 : vector<8x32xbf16> to vector<8x32xf32>
    %99 = arith.addf %98, %97 : vector<8x32xf32>
    %c0_39 = arith.constant 0 : index
    %c0_40 = arith.constant 0 : index
    %100 = vector.load %arg9[%c0_39, %c0_40] : memref<1x32xf32, #tpu.memory_space<vmem>>, vector<1x32xf32>
    %c0_41 = arith.constant 0 : index
    %c0_42 = arith.constant 0 : index
    %101 = vector.load %arg10[%c0_41, %c0_42] : memref<1x32xf32, #tpu.memory_space<vmem>>, vector<1x32xf32>
    %cst_43 = arith.constant dense<0.000000e+00> : vector<8xf32>
    %102 = vector.multi_reduction <add>, %99, %cst_43 [1] : vector<8x32xf32> to vector<8xf32>
    %103 = vector.shape_cast %102 : vector<8xf32> to vector<8x1xf32>
    %cst_44 = arith.constant 3.200000e+01 : f32
    %104 = vector.broadcast %cst_44 : f32 to vector<8x1xf32>
    %105 = arith.divf %103, %104 : vector<8x1xf32>
    %106 = vector.broadcast %105 : vector<8x1xf32> to vector<8x32xf32>
    %107 = arith.subf %99, %106 : vector<8x32xf32>
    %108 = arith.mulf %107, %107 : vector<8x32xf32>
    %cst_45 = arith.constant dense<0.000000e+00> : vector<8xf32>
    %109 = vector.multi_reduction <add>, %108, %cst_45 [1] : vector<8x32xf32> to vector<8xf32>
    %110 = vector.shape_cast %109 : vector<8xf32> to vector<8x1xf32>
    %cst_46 = arith.constant 3.200000e+01 : f32
    %111 = vector.broadcast %cst_46 : f32 to vector<8x1xf32>
    %112 = arith.divf %110, %111 : vector<8x1xf32>
    %cst_47 = arith.constant 9.99999974E-6 : f32
    %113 = vector.broadcast %cst_47 : f32 to vector<8x1xf32>
    %114 = arith.addf %112, %113 : vector<8x1xf32>
    %115 = math.rsqrt %114 : vector<8x1xf32>
    %116 = vector.broadcast %115 : vector<8x1xf32> to vector<8x32xf32>
    %117 = arith.mulf %107, %116 : vector<8x32xf32>
    %118 = vector.broadcast %100 : vector<1x32xf32> to vector<8x32xf32>
    %119 = arith.mulf %117, %118 : vector<8x32xf32>
    %120 = vector.broadcast %101 : vector<1x32xf32> to vector<8x32xf32>
    %121 = arith.addf %119, %120 : vector<8x32xf32>
    %122 = arith.truncf %121 : vector<8x32xf32> to vector<8x32xbf16>
    %c0_48 = arith.constant 0 : index
    %c0_49 = arith.constant 0 : index
    %123 = vector.load %arg11[%c0_48, %c0_49] : memref<32x32xbf16, #tpu.memory_space<vmem>>, vector<32x32xbf16>
    %cst_50 = arith.constant dense<0.000000e+00> : vector<8x32xf32>
    %124 = tpu.matmul %122, %123, %cst_50 {dimension_numbers = #tpu.dot_dimension_numbers<[1], [0], [0], [1], [0, 0, 1, 1], [], []>} : vector<8x32xbf16>, vector<32x32xbf16>, vector<8x32xf32> -> vector<8x32xf32>
    %c0_51 = arith.constant 0 : index
    %c0_52 = arith.constant 0 : index
    %125 = vector.load %arg12[%c0_51, %c0_52] : memref<1x32xf32, #tpu.memory_space<vmem>>, vector<1x32xf32>
    %126 = vector.broadcast %125 : vector<1x32xf32> to vector<8x32xf32>
    %127 = arith.addf %124, %126 : vector<8x32xf32>
    %cst_53 = arith.constant 0.000000e+00 : f32
    %128 = vector.broadcast %cst_53 : f32 to vector<8x32xf32>
    %129 = arith.subf %128, %127 : vector<8x32xf32>
    %130 = math.exp %129 : vector<8x32xf32>
    %cst_54 = arith.constant 1.000000e+00 : f32
    %131 = vector.broadcast %cst_54 : f32 to vector<8x32xf32>
    %132 = arith.addf %131, %130 : vector<8x32xf32>
    %cst_55 = arith.constant 1.000000e+00 : f32
    %133 = vector.broadcast %cst_55 : f32 to vector<8x32xf32>
    %134 = arith.divf %133, %132 : vector<8x32xf32>
    %c0_56 = arith.constant 0 : index
    %c0_57 = arith.constant 0 : index
    %135 = vector.load %arg13[%c0_56, %c0_57] : memref<32x64xbf16, #tpu.memory_space<vmem>>, vector<32x64xbf16>
    %cst_58 = arith.constant dense<0.000000e+00> : vector<8x64xf32>
    %136 = tpu.matmul %3, %135, %cst_58 {dimension_numbers = #tpu.dot_dimension_numbers<[1], [0], [0], [1], [0, 0, 1, 1], [], []>} : vector<8x32xbf16>, vector<32x64xbf16>, vector<8x64xf32> -> vector<8x64xf32>
    %c0_59 = arith.constant 0 : index
    %c0_60 = arith.constant 0 : index
    %137 = vector.load %arg14[%c0_59, %c0_60] : memref<1x64xf32, #tpu.memory_space<vmem>>, vector<1x64xf32>
    %138 = vector.broadcast %137 : vector<1x64xf32> to vector<8x64xf32>
    %139 = arith.addf %136, %138 : vector<8x64xf32>
    %cst_61 = arith.constant 0.000000e+00 : f32
    %140 = vector.broadcast %cst_61 : f32 to vector<8x64xf32>
    %141 = arith.maximumf %139, %140 : vector<8x64xf32>
    %142 = arith.truncf %141 : vector<8x64xf32> to vector<8x64xbf16>
    %c0_62 = arith.constant 0 : index
    %c0_63 = arith.constant 0 : index
    %143 = vector.load %arg15[%c0_62, %c0_63] : memref<64x32xbf16, #tpu.memory_space<vmem>>, vector<64x32xbf16>
    %cst_64 = arith.constant dense<0.000000e+00> : vector<8x32xf32>
    %144 = tpu.matmul %142, %143, %cst_64 {dimension_numbers = #tpu.dot_dimension_numbers<[1], [0], [0], [1], [0, 0, 1, 1], [], []>} : vector<8x64xbf16>, vector<64x32xbf16>, vector<8x32xf32> -> vector<8x32xf32>
    %c0_65 = arith.constant 0 : index
    %c0_66 = arith.constant 0 : index
    %145 = vector.load %arg16[%c0_65, %c0_66] : memref<1x32xf32, #tpu.memory_space<vmem>>, vector<1x32xf32>
    %146 = vector.broadcast %145 : vector<1x32xf32> to vector<8x32xf32>
    %147 = arith.addf %144, %146 : vector<8x32xf32>
    %148 = arith.extf %3 : vector<8x32xbf16> to vector<8x32xf32>
    %149 = arith.mulf %134, %147 : vector<8x32xf32>
    %150 = arith.addf %148, %149 : vector<8x32xf32>
    %c0_67 = arith.constant 0 : index
    %c0_68 = arith.constant 0 : index
    %151 = vector.load %arg17[%c0_67, %c0_68] : memref<1x32xf32, #tpu.memory_space<vmem>>, vector<1x32xf32>
    %c0_69 = arith.constant 0 : index
    %c0_70 = arith.constant 0 : index
    %152 = vector.load %arg18[%c0_69, %c0_70] : memref<1x32xf32, #tpu.memory_space<vmem>>, vector<1x32xf32>
    %cst_71 = arith.constant dense<0.000000e+00> : vector<8xf32>
    %153 = vector.multi_reduction <add>, %150, %cst_71 [1] : vector<8x32xf32> to vector<8xf32>
    %154 = vector.shape_cast %153 : vector<8xf32> to vector<8x1xf32>
    %cst_72 = arith.constant 3.200000e+01 : f32
    %155 = vector.broadcast %cst_72 : f32 to vector<8x1xf32>
    %156 = arith.divf %154, %155 : vector<8x1xf32>
    %157 = vector.broadcast %156 : vector<8x1xf32> to vector<8x32xf32>
    %158 = arith.subf %150, %157 : vector<8x32xf32>
    %159 = arith.mulf %158, %158 : vector<8x32xf32>
    %cst_73 = arith.constant dense<0.000000e+00> : vector<8xf32>
    %160 = vector.multi_reduction <add>, %159, %cst_73 [1] : vector<8x32xf32> to vector<8xf32>
    %161 = vector.shape_cast %160 : vector<8xf32> to vector<8x1xf32>
    %cst_74 = arith.constant 3.200000e+01 : f32
    %162 = vector.broadcast %cst_74 : f32 to vector<8x1xf32>
    %163 = arith.divf %161, %162 : vector<8x1xf32>
    %cst_75 = arith.constant 9.99999974E-6 : f32
    %164 = vector.broadcast %cst_75 : f32 to vector<8x1xf32>
    %165 = arith.addf %163, %164 : vector<8x1xf32>
    %166 = math.rsqrt %165 : vector<8x1xf32>
    %167 = vector.broadcast %166 : vector<8x1xf32> to vector<8x32xf32>
    %168 = arith.mulf %158, %167 : vector<8x32xf32>
    %169 = vector.broadcast %151 : vector<1x32xf32> to vector<8x32xf32>
    %170 = arith.mulf %168, %169 : vector<8x32xf32>
    %171 = vector.broadcast %152 : vector<1x32xf32> to vector<8x32xf32>
    %172 = arith.addf %170, %171 : vector<8x32xf32>
    %173 = arith.truncf %121 : vector<8x32xf32> to vector<8x32xbf16>
    %c0_76 = arith.constant 0 : index
    %c0_77 = arith.constant 0 : index
    %c0_78 = arith.constant 0 : index
    %174 = vector.load %arg19[%c0_76, %c0_77, %c0_78] : memref<1x8x32xbf16, #tpu.memory_space<vmem>>, vector<1x8x32xbf16>
    %175 = vector.shape_cast %174 : vector<1x8x32xbf16> to vector<8x32xbf16>
    %176 = vector.shape_cast %173 : vector<8x32xbf16> to vector<1x8x32xbf16>
    tpu.vector_store %arg19[%c0_76, %c0_77, %c0_78], %176 {strides = array<i32>} : memref<1x8x32xbf16, #tpu.memory_space<vmem>>, vector<1x8x32xbf16>,
    %177 = arith.truncf %172 : vector<8x32xf32> to vector<8x32xbf16>
    %c0_79 = arith.constant 0 : index
    %c0_80 = arith.constant 0 : index
    %c0_81 = arith.constant 0 : index
    %178 = vector.load %arg20[%c0_79, %c0_80, %c0_81] : memref<1x8x32xbf16, #tpu.memory_space<vmem>>, vector<1x8x32xbf16>
    %179 = vector.shape_cast %178 : vector<1x8x32xbf16> to vector<8x32xbf16>
    %180 = vector.shape_cast %177 : vector<8x32xbf16> to vector<1x8x32xbf16>
    tpu.vector_store %arg20[%c0_79, %c0_80, %c0_81], %180 {strides = array<i32>} : memref<1x8x32xbf16, #tpu.memory_space<vmem>>, vector<1x8x32xbf16>,
    return
  }
  func.func @transform_0(%arg0: i32) -> (i32, i32, i32) {
    %c0_i32 = arith.constant 0 : i32
    %c0_i32_0 = arith.constant 0 : i32
    %c0_i32_1 = arith.constant 0 : i32
    return %arg0, %c0_i32, %c0_i32_0 : i32, i32, i32
  }
  func.func @transform_1(%arg0: i32) -> (i32, i32, i32) {
    %c0_i32 = arith.constant 0 : i32
    %c0_i32_0 = arith.constant 0 : i32
    %c0_i32_1 = arith.constant 0 : i32
    return %arg0, %c0_i32, %c0_i32_0 : i32, i32, i32
  }
  func.func @transform_2(%arg0: i32) -> (i32, i32) {
    %c0_i32 = arith.constant 0 : i32
    %c0_i32_0 = arith.constant 0 : i32
    %c0_i32_1 = arith.constant 0 : i32
    return %c0_i32, %c0_i32_0 : i32, i32
  }
  func.func @transform_3(%arg0: i32) -> (i32, i32) {
    %c0_i32 = arith.constant 0 : i32
    %c0_i32_0 = arith.constant 0 : i32
    %c0_i32_1 = arith.constant 0 : i32
    return %c0_i32, %c0_i32_0 : i32, i32
  }
  func.func @transform_4(%arg0: i32) -> (i32, i32) {
    %c0_i32 = arith.constant 0 : i32
    %c0_i32_0 = arith.constant 0 : i32
    %c0_i32_1 = arith.constant 0 : i32
    return %c0_i32, %c0_i32_0 : i32, i32
  }
  func.func @transform_5(%arg0: i32) -> (i32, i32) {
    %c0_i32 = arith.constant 0 : i32
    %c0_i32_0 = arith.constant 0 : i32
    %c0_i32_1 = arith.constant 0 : i32
    return %c0_i32, %c0_i32_0 : i32, i32
  }
  func.func @transform_6(%arg0: i32) -> (i32, i32) {
    %c0_i32 = arith.constant 0 : i32
    %c0_i32_0 = arith.constant 0 : i32
    %c0_i32_1 = arith.constant 0 : i32
    return %c0_i32, %c0_i32_0 : i32, i32
  }
  func.func @transform_7(%arg0: i32) -> (i32, i32) {
    %c0_i32 = arith.constant 0 : i32
    %c0_i32_0 = arith.constant 0 : i32
    %c0_i32_1 = arith.constant 0 : i32
    return %c0_i32, %c0_i32_0 : i32, i32
  }
  func.func @transform_8(%arg0: i32) -> (i32, i32) {
    %c0_i32 = arith.constant 0 : i32
    %c0_i32_0 = arith.constant 0 : i32
    %c0_i32_1 = arith.constant 0 : i32
    return %c0_i32, %c0_i32_0 : i32, i32
  }
  func.func @transform_9(%arg0: i32) -> (i32, i32) {
    %c0_i32 = arith.constant 0 : i32
    %c0_i32_0 = arith.constant 0 : i32
    %c0_i32_1 = arith.constant 0 : i32
    return %c0_i32, %c0_i32_0 : i32, i32
  }
  func.func @transform_10(%arg0: i32) -> (i32, i32) {
    %c0_i32 = arith.constant 0 : i32
    %c0_i32_0 = arith.constant 0 : i32
    %c0_i32_1 = arith.constant 0 : i32
    return %c0_i32, %c0_i32_0 : i32, i32
  }
  func.func @transform_11(%arg0: i32) -> (i32, i32) {
    %c0_i32 = arith.constant 0 : i32
    %c0_i32_0 = arith.constant 0 : i32
    %c0_i32_1 = arith.constant 0 : i32
    return %c0_i32, %c0_i32_0 : i32, i32
  }
  func.func @transform_12(%arg0: i32) -> (i32, i32) {
    %c0_i32 = arith.constant 0 : i32
    %c0_i32_0 = arith.constant 0 : i32
    %c0_i32_1 = arith.constant 0 : i32
    return %c0_i32, %c0_i32_0 : i32, i32
  }
  func.func @transform_13(%arg0: i32) -> (i32, i32) {
    %c0_i32 = arith.constant 0 : i32
    %c0_i32_0 = arith.constant 0 : i32
    %c0_i32_1 = arith.constant 0 : i32
    return %c0_i32, %c0_i32_0 : i32, i32
  }
  func.func @transform_14(%arg0: i32) -> (i32, i32) {
    %c0_i32 = arith.constant 0 : i32
    %c0_i32_0 = arith.constant 0 : i32
    %c0_i32_1 = arith.constant 0 : i32
    return %c0_i32, %c0_i32_0 : i32, i32
  }
  func.func @transform_15(%arg0: i32) -> (i32, i32) {
    %c0_i32 = arith.constant 0 : i32
    %c0_i32_0 = arith.constant 0 : i32
    %c0_i32_1 = arith.constant 0 : i32
    return %c0_i32, %c0_i32_0 : i32, i32
  }
  func.func @transform_16(%arg0: i32) -> (i32, i32) {
    %c0_i32 = arith.constant 0 : i32
    %c0_i32_0 = arith.constant 0 : i32
    %c0_i32_1 = arith.constant 0 : i32
    return %c0_i32, %c0_i32_0 : i32, i32
  }
  func.func @transform_17(%arg0: i32) -> (i32, i32) {
    %c0_i32 = arith.constant 0 : i32
    %c0_i32_0 = arith.constant 0 : i32
    %c0_i32_1 = arith.constant 0 : i32
    return %c0_i32, %c0_i32_0 : i32, i32
  }
  func.func @transform_18(%arg0: i32) -> (i32, i32, i32) {
    %c0_i32 = arith.constant 0 : i32
    %c0_i32_0 = arith.constant 0 : i32
    %c0_i32_1 = arith.constant 0 : i32
    return %arg0, %c0_i32, %c0_i32_0 : i32, i32, i32
  }
  func.func @transform_19(%arg0: i32) -> (i32, i32, i32) {
    %c0_i32 = arith.constant 0 : i32
    %c0_i32_0 = arith.constant 0 : i32
    %c0_i32_1 = arith.constant 0 : i32
    return %arg0, %c0_i32, %c0_i32_0 : i32, i32, i32
  }
}

</mosaic_0001>

<bundles_post_ra>
// kernel: multistage_net_forward.8
= control target key start
LH: loop header
LB: loop body
LE: loop exit
PB: predicated region body
PF: predicated region fallthrough
CT: control target
= control target key end

     0   :  { %s550_s21 = smov 0   ;;  %s609_s0 = inlined_call_operand.vmem [shape: f32[2,8,3], index: 0, kind: input, shape index: {}]   ;;  %s610_s1 = inlined_call_operand.vmem [shape: f32[2,3,1,3], index: 1, kind: input, shape index: {}]   ;;  %s611_s2 = inlined_call_operand.vmem [shape: f32[2,1,3], index: 2, kind: input, shape index: {}]   ;;  %s612_s3 = inlined_call_operand.vmem [shape: bf16[3,32], index: 3, kind: input, shape index: {}]   ;;  %s613_s4 = inlined_call_operand.vmem [shape: f32[1,32], index: 4, kind: input, shape index: {}]   ;;  %s614_s5 = inlined_call_operand.vmem [shape: f32[8,32], index: 5, kind: input, shape index: {}]   ;;  %s615_s6 = inlined_call_operand.vmem [shape: bf16[2,8,32], index: 6, kind: output, shape index: {}]  }
   0x1 LB: > { %s460_s22 = sadd.s32 4294967295, %s510_s21   ;;  %p464_p0 = scmp.ge.s32.totalorder %s510_s21, 1  ;;  %s510_s21 = sphi %s550_s21, %s16_s21  }
   0x2   : > { %p211_p1 = scmp.lt.s32.totalorder %s510_s21, 3 }
   0x4   : > { %p212_p2 = pnand %p464_p0, %p211_p1 }
   0x5   : > { %p239_p3 = scmp.lt.s32.totalorder (!%p212_p2), %s460_s22, 1 }
   0x6   : > { %215 = sbr.rel (%p212_p2) target bundleno = 243 (0xf3), region = 44 }
   0xb   : > { %v512_v0 = vmov 0.0   ;;  %s617_s22 = smov (!%p239_p3, %s460_s22), 1  ;;  %vm265_vm0 = vcmask 1040384   ;;  %v345_v1 = vld [vmem:[%s612_s3] sm:$0x3]  ;;  %vm252_vm1 = vcmask 1041408  }
   0xc   : > { %487 = vmatprep.subr.bf16.mxu0 %v512_v0  ;;  %s465_s25 = sshll.u32 %s617_s22, 3  ;;  %v513_v2 = vmov 65535   ;;  %vm514_vm2 = vmmov 0   ;;  %v467_v6 = vld [vmem:[%s610_s1] ss:$0 sm:$0xff]  ;;  %vm299_vm3 = vcmask 1043456  }
   0xd   : > { %v357_v3 = vsel %vm265_vm0, 4294967295, %v513_v2  ;;  %489 = vmatprep.mubr.msk.bf16.mxu0 %vm514_vm2, %v512_v0  ;;  %s242_s28 = scalar_lea.vmem %s609_s0, %s465_s25  ;;  %v469_v10 = vld [vmem:[%s610_s1 + $0x1] ss:$0 sm:$0xff]  ;;  %v471_v11 = vld [vmem:[%s610_s1 + $0x2] ss:$0 sm:$0xff]  ;;  %vm353_vm4 = vcmask 23552  }
   0xe   : > { %v358_v4 = vsel %vm252_vm1, %v357_v3, 0  ;;  %v248_v5 = vld [vmem:[%s242_s28] sm:$0xff]  ;;  %s466_s27 = sshll.u32 %s617_s22, 2  ;;  %vm405_vm5 = vcmask 257024  }
   0xf   : > { %v360_v7 = vand.u32 %v358_v4, %v345_v1  ;;  %v250_v8 = vrot.slane %v248_v5, 6  ;;  %v263_v9 = vrot.slane %v248_v5, 7  ;;  %v285_v16 = vmul.f32 %v471_v11, %v248_v5  ;;  %v472_v18 = vld [vmem:[%s611_s2] ss:$0 sm:$0xff]  ;;  %v474_v22 = vld [vmem:[%s610_s1 + $0x3] ss:$0 sm:$0xff]  ;;  %s246_s30 = scalar_lea.vmem %s615_s6, %s466_s27 }
  0x10   : > { %v476_v25 = vld [vmem:[%s610_s1 + $0x4] ss:$0 sm:$0xff]  ;;  %v478_v26 = vld [vmem:[%s610_s1 + $0x5] ss:$0 sm:$0xff]  ;;  %v480_v33 = vld [vmem:[%s611_s2 + $0x1] ss:$0 sm:$0xff] }
  0x11   : > { %488 = vmatpush3.bf16.msra.mxu0 %v360_v7  ;;  %v253_v12 = vsel %vm252_vm1, 0.0, %v250_v8  ;;  %v266_v13 = vsel %vm265_vm0, 0.0, %v263_v9  ;;  %v481_v38 = vld [vmem:[%s613_s4] ss:$0 sm:$0xff] }
  0x12   : > { %v261_v14 = vmul.f32 %v467_v6, %v253_v12  ;;  %v275_v15 = vmul.f32 %v469_v10, %v266_v13  ;;  %v402_v40 = vld [vmem:[%s614_s5] sm:$0xff] }
  0x14   : > { %v276_v17 = vadd.f32 %v275_v15, %v261_v14 }
  0x16   : > { %v286_v19 = vadd.f32 %v285_v16, %v276_v17 }
  0x18   : > { %v294_v20 = vadd.f32 %v472_v18, %v286_v19 }
  0x1a   : > { %v295_v21 = vmax.f32 %v294_v20, 0.0 }
  0x1c   : > { %v297_v23 = vrot.slane %v295_v21, 4  ;;  %v311_v24 = vrot.slane %v295_v21, 6  ;;  %v332_v31 = vmul.f32 %v478_v26, %v295_v21 }
  0x1e   : > { %v300_v27 = vsel %vm299_vm3, 0.0, %v297_v23  ;;  %v313_v28 = vsel %vm252_vm1, 0.0, %v311_v24 }
  0x1f   : > { %v309_v29 = vmul.f32 %v474_v22, %v300_v27  ;;  %v322_v30 = vmul.f32 %v476_v25, %v313_v28 }
  0x21   : > { %v323_v32 = vadd.f32 %v322_v30, %v309_v29 }
  0x23   : > { %v333_v34 = vadd.f32 %v332_v31, %v323_v32 }
  0x25   : > { %v342_v35 = vadd.f32 %v480_v33, %v333_v34 }
  0x27   : > { %v343_v36 = vmax.f32 %v342_v35, 0.0 }
  0x29   : > { %v344_v37 = vpack.c.bf16 %v343_v36, %v343_v36 }
  0x2b   : > { %490 = vmatmul.mubr.msk.bf16.vlgmr.msra.gmra.mxu0 %vm353_vm4, %v344_v37 }
  0xeb   : > { %v396_v39 = vpop.f32.mrf.mxu0 }
  0xec   : > { %v397_v41 = vadd.f32 %v481_v38, %v396_v39 }
  0xed   : > { %v491_v42 = vpop.f32.mrf.mxu0 }
  0xee   : > { %v403_v43 = vadd.f32 %v402_v40, %v397_v41 }
  0xef   : > { %v399_v44 = vpop.f32.mrf.mxu0 }
  0xf0   : > { %v404_v45 = vpack.c.bf16 %v403_v43, %v403_v43 }
  0xf1   : > { %v492_v46 = vpop.f32.mrf.mxu0 }
  0xf2   : > { %406 = vst.msk [vmem:[%s246_s30] sm:$0xf] %vm405_vm5, %v404_v45 }
  0xf3 PF: > { %s16_s21 = sadd.s32 1, %s510_s21  }
  0xf4   : > { %p13_p4 = scmp.ge.s32.totalorder %s16_s21, 4  }
  0xf6   :  { %15 = sbr.rel (!%p13_p4) target bundleno = 1 (0x1), region = 80 }

// kernel: multistage_net_forward.9
= control target key start
LH: loop header
LB: loop body
LE: loop exit
PB: predicated region body
PF: predicated region fallthrough
CT: control target
= control target key end

     0   :  { %s546_s21 = smov 0   ;;  %s603_s0 = inlined_call_operand.vmem [shape: f32[2,8,4], index: 0, kind: input, shape index: {}]   ;;  %s604_s1 = inlined_call_operand.vmem [shape: f32[2,3,1,4], index: 1, kind: input, shape index: {}]   ;;  %s605_s2 = inlined_call_operand.vmem [shape: f32[2,1,4], index: 2, kind: input, shape index: {}]   ;;  %s606_s3 = inlined_call_operand.vmem [shape: bf16[4,32], index: 3, kind: input, shape index: {}]   ;;  %s607_s4 = inlined_call_operand.vmem [shape: f32[1,32], index: 4, kind: input, shape index: {}]   ;;  %s608_s5 = inlined_call_operand.vmem [shape: f32[8,32], index: 5, kind: input, shape index: {}]   ;;  %s609_s6 = inlined_call_operand.vmem [shape: bf16[2,8,32], index: 6, kind: output, shape index: {}]  }
   0x1 LB: > { %s458_s22 = sadd.s32 4294967295, %s507_s21   ;;  %p462_p0 = scmp.ge.s32.totalorder %s507_s21, 1  ;;  %s507_s21 = sphi %s546_s21, %s16_s21  }
   0x2   : > { %p211_p1 = scmp.lt.s32.totalorder %s507_s21, 3 }
   0x4   : > { %p212_p2 = pnand %p462_p0, %p211_p1 }
   0x5   : > { %p239_p3 = scmp.lt.s32.totalorder (!%p212_p2), %s458_s22, 1 }
   0x6   : > { %215 = sbr.rel (%p212_p2) target bundleno = 243 (0xf3), region = 44 }
   0xb   : > { %v509_v0 = vmov 0.0   ;;  %s611_s22 = smov (!%p239_p3, %s458_s22), 1  ;;  %vm252_vm0 = vcmask 1041408   ;;  %v345_v1 = vld [vmem:[%s606_s3] sm:$0x3]  ;;  %vm510_vm1 = vmmov 0  }
   0xc   : > { %485 = vmatprep.subr.bf16.mxu0 %v509_v0  ;;  %s463_s25 = sshll.u32 %s611_s22, 3  ;;  %v358_v2 = vsel %vm252_vm0, %v345_v1, 0  ;;  %487 = vmatprep.mubr.msk.bf16.mxu0 %vm510_vm1, %v509_v0  ;;  %v465_v4 = vld [vmem:[%s604_s1] ss:$0 sm:$0xff]  ;;  %vm265_vm2 = vcmask 1040384   ;;  %vm299_vm3 = vcmask 1043456  }
   0xd   : > { %s242_s28 = scalar_lea.vmem %s603_s0, %s463_s25  ;;  %486 = vmatpush3.bf16.msra.mxu0 %v358_v2  ;;  %v467_v7 = vld [vmem:[%s604_s1 + $0x1] ss:$0 sm:$0xff]  ;;  %v469_v8 = vld [vmem:[%s604_s1 + $0x2] ss:$0 sm:$0xff]  ;;  %v470_v15 = vld [vmem:[%s605_s2] ss:$0 sm:$0xff] }
   0xe   : > { %v248_v3 = vld [vmem:[%s242_s28] sm:$0xff]  ;;  %vm353_vm4 = vcmask 31744   ;;  %s464_s27 = sshll.u32 %s611_s22, 2  ;;  %vm403_vm5 = vcmask 257024  }
   0xf   : > { %v250_v5 = vrot.slane %v248_v3, 6  ;;  %v263_v6 = vrot.slane %v248_v3, 7  ;;  %v285_v13 = vmul.f32 %v469_v8, %v248_v3  ;;  %v472_v19 = vld [vmem:[%s604_s1 + $0x3] ss:$0 sm:$0xff]  ;;  %v474_v22 = vld [vmem:[%s604_s1 + $0x4] ss:$0 sm:$0xff]  ;;  %s246_s30 = scalar_lea.vmem %s609_s6, %s464_s27 }
  0x10   : > { %v476_v23 = vld [vmem:[%s604_s1 + $0x5] ss:$0 sm:$0xff]  ;;  %v478_v30 = vld [vmem:[%s605_s2 + $0x1] ss:$0 sm:$0xff]  ;;  %v479_v35 = vld [vmem:[%s607_s4] ss:$0 sm:$0xff] }
  0x11   : > { %v253_v9 = vsel %vm252_vm0, 0.0, %v250_v5  ;;  %v266_v10 = vsel %vm265_vm2, 0.0, %v263_v6  ;;  %v400_v37 = vld [vmem:[%s608_s5] sm:$0xff] }
  0x12   : > { %v261_v11 = vmul.f32 %v465_v4, %v253_v9  ;;  %v275_v12 = vmul.f32 %v467_v7, %v266_v10 }
  0x14   : > { %v276_v14 = vadd.f32 %v275_v12, %v261_v11 }
  0x16   : > { %v286_v16 = vadd.f32 %v285_v13, %v276_v14 }
  0x18   : > { %v294_v17 = vadd.f32 %v470_v15, %v286_v16 }
  0x1a   : > { %v295_v18 = vmax.f32 %v294_v17, 0.0 }
  0x1c   : > { %v297_v20 = vrot.slane %v295_v18, 4  ;;  %v311_v21 = vrot.slane %v295_v18, 6  ;;  %v332_v28 = vmul.f32 %v476_v23, %v295_v18 }
  0x1e   : > { %v300_v24 = vsel %vm299_vm3, 0.0, %v297_v20  ;;  %v313_v25 = vsel %vm252_vm0, 0.0, %v311_v21 }
  0x1f   : > { %v309_v26 = vmul.f32 %v472_v19, %v300_v24  ;;  %v322_v27 = vmul.f32 %v474_v22, %v313_v25 }
  0x21   : > { %v323_v29 = vadd.f32 %v322_v27, %v309_v26 }
  0x23   : > { %v333_v31 = vadd.f32 %v332_v28, %v323_v29 }
  0x25   : > { %v342_v32 = vadd.f32 %v478_v30, %v333_v31 }
  0x27   : > { %v343_v33 = vmax.f32 %v342_v32, 0.0 }
  0x29   : > { %v344_v34 = vpack.c.bf16 %v343_v33, %v343_v33 }
  0x2b   : > { %488 = vmatmul.mubr.msk.bf16.vlgmr.msra.gmra.mxu0 %vm353_vm4, %v344_v34 }
  0xeb   : > { %v394_v36 = vpop.f32.mrf.mxu0 }
  0xec   : > { %v395_v38 = vadd.f32 %v479_v35, %v394_v36 }
  0xed   : > { %v489_v39 = vpop.f32.mrf.mxu0 }
  0xee   : > { %v401_v40 = vadd.f32 %v400_v37, %v395_v38 }
  0xef   : > { %v397_v41 = vpop.f32.mrf.mxu0 }
  0xf0   : > { %v402_v42 = vpack.c.bf16 %v401_v40, %v401_v40 }
  0xf1   : > { %v490_v43 = vpop.f32.mrf.mxu0 }
  0xf2   : > { %404 = vst.msk [vmem:[%s246_s30] sm:$0xf] %vm403_vm5, %v402_v42 }
  0xf3 PF: > { %s16_s21 = sadd.s32 1, %s507_s21  }
  0xf4   : > { %p13_p4 = scmp.ge.s32.totalorder %s16_s21, 4  }
  0xf6   :  { %15 = sbr.rel (!%p13_p4) target bundleno = 1 (0x1), region = 80 }

// kernel: multistage_net_forward.10
= control target key start
LH: loop header
LB: loop body
LE: loop exit
PB: predicated region body
PF: predicated region fallthrough
CT: control target
= control target key end

     0   :  { %s551_s21 = smov 0   ;;  %s608_s0 = inlined_call_operand.vmem [shape: f32[2,8,5], index: 0, kind: input, shape index: {}]   ;;  %s609_s1 = inlined_call_operand.vmem [shape: f32[2,3,1,5], index: 1, kind: input, shape index: {}]   ;;  %s610_s2 = inlined_call_operand.vmem [shape: f32[2,1,5], index: 2, kind: input, shape index: {}]   ;;  %s611_s3 = inlined_call_operand.vmem [shape: bf16[5,32], index: 3, kind: input, shape index: {}]   ;;  %s612_s4 = inlined_call_operand.vmem [shape: f32[1,32], index: 4, kind: input, shape index: {}]   ;;  %s613_s5 = inlined_call_operand.vmem [shape: f32[8,32], index: 5, kind: input, shape index: {}]   ;;  %s614_s6 = inlined_call_operand.vmem [shape: bf16[2,8,32], index: 6, kind: output, shape index: {}]  }
   0x1 LB: > { %s461_s22 = sadd.s32 4294967295, %s511_s21   ;;  %p465_p0 = scmp.ge.s32.totalorder %s511_s21, 1  ;;  %s511_s21 = sphi %s551_s21, %s16_s21  }
   0x2   : > { %p211_p1 = scmp.lt.s32.totalorder %s511_s21, 3 }
   0x4   : > { %p212_p2 = pnand %p465_p0, %p211_p1 }
   0x5   : > { %p239_p3 = scmp.lt.s32.totalorder (!%p212_p2), %s461_s22, 1 }
   0x6   : > { %215 = sbr.rel (%p212_p2) target bundleno = 243 (0xf3), region = 44 }
   0xb   : > { %v513_v0 = vmov 0.0   ;;  %s616_s22 = smov (!%p239_p3, %s461_s22), 1  ;;  %vm252_vm0 = vcmask 1041408   ;;  %v345_v1 = vld [vmem:[%s611_s3] sm:$0x7]  ;;  %vm357_vm1 = vcmask 1042432  }
   0xc   : > { %488 = vmatprep.subr.bf16.mxu0 %v513_v0  ;;  %s466_s25 = sshll.u32 %s616_s22, 3  ;;  %v514_v2 = vmov 65535   ;;  %vm515_vm2 = vmmov 0   ;;  %v468_v6 = vld [vmem:[%s609_s1] ss:$0 sm:$0xff]  ;;  %vm265_vm3 = vcmask 1040384  }
   0xd   : > { %v358_v3 = vsel %vm252_vm0, 4294967295, %v514_v2  ;;  %490 = vmatprep.mubr.msk.bf16.mxu0 %vm515_vm2, %v513_v0  ;;  %s242_s28 = scalar_lea.vmem %s608_s0, %s466_s25  ;;  %v470_v10 = vld [vmem:[%s609_s1 + $0x1] ss:$0 sm:$0xff]  ;;  %v472_v11 = vld [vmem:[%s609_s1 + $0x2] ss:$0 sm:$0xff]  ;;  %vm299_vm4 = vcmask 1043456  }
   0xe   : > { %v359_v4 = vsel %vm357_vm1, %v358_v3, 0  ;;  %v248_v5 = vld [vmem:[%s242_s28] sm:$0xff]  ;;  %vm353_vm5 = vcmask 39936   ;;  %s467_s27 = sshll.u32 %s616_s22, 2  ;;  %vm406_vm6 = vcmask 257024  }
   0xf   : > { %v361_v7 = vand.u32 %v359_v4, %v345_v1  ;;  %v250_v8 = vrot.slane %v248_v5, 6  ;;  %v263_v9 = vrot.slane %v248_v5, 7  ;;  %v285_v16 = vmul.f32 %v472_v11, %v248_v5  ;;  %v473_v18 = vld [vmem:[%s610_s2] ss:$0 sm:$0xff]  ;;  %v475_v22 = vld [vmem:[%s609_s1 + $0x3] ss:$0 sm:$0xff]  ;;  %s246_s30 = scalar_lea.vmem %s614_s6, %s467_s27 }
  0x10   : > { %v477_v25 = vld [vmem:[%s609_s1 + $0x4] ss:$0 sm:$0xff]  ;;  %v479_v26 = vld [vmem:[%s609_s1 + $0x5] ss:$0 sm:$0xff]  ;;  %v481_v33 = vld [vmem:[%s610_s2 + $0x1] ss:$0 sm:$0xff] }
  0x11   : > { %489 = vmatpush3.bf16.msra.mxu0 %v361_v7  ;;  %v253_v12 = vsel %vm252_vm0, 0.0, %v250_v8  ;;  %v266_v13 = vsel %vm265_vm3, 0.0, %v263_v9  ;;  %v482_v38 = vld [vmem:[%s612_s4] ss:$0 sm:$0xff] }
  0x12   : > { %v261_v14 = vmul.f32 %v468_v6, %v253_v12  ;;  %v275_v15 = vmul.f32 %v470_v10, %v266_v13  ;;  %v403_v40 = vld [vmem:[%s613_s5] sm:$0xff] }
  0x14   : > { %v276_v17 = vadd.f32 %v275_v15, %v261_v14 }
  0x16   : > { %v286_v19 = vadd.f32 %v285_v16, %v276_v17 }
  0x18   : > { %v294_v20 = vadd.f32 %v473_v18, %v286_v19 }
  0x1a   : > { %v295_v21 = vmax.f32 %v294_v20, 0.0 }
  0x1c   : > { %v297_v23 = vrot.slane %v295_v21, 4  ;;  %v311_v24 = vrot.slane %v295_v21, 6  ;;  %v332_v31 = vmul.f32 %v479_v26, %v295_v21 }
  0x1e   : > { %v300_v27 = vsel %vm299_vm4, 0.0, %v297_v23  ;;  %v313_v28 = vsel %vm252_vm0, 0.0, %v311_v24 }
  0x1f   : > { %v309_v29 = vmul.f32 %v475_v22, %v300_v27  ;;  %v322_v30 = vmul.f32 %v477_v25, %v313_v28 }
  0x21   : > { %v323_v32 = vadd.f32 %v322_v30, %v309_v29 }
  0x23   : > { %v333_v34 = vadd.f32 %v332_v31, %v323_v32 }
  0x25   : > { %v342_v35 = vadd.f32 %v481_v33, %v333_v34 }
  0x27   : > { %v343_v36 = vmax.f32 %v342_v35, 0.0 }
  0x29   : > { %v344_v37 = vpack.c.bf16 %v343_v36, %v343_v36 }
  0x2b   : > { %491 = vmatmul.mubr.msk.bf16.vlgmr.msra.gmra.mxu0 %vm353_vm5, %v344_v37 }
  0xeb   : > { %v397_v39 = vpop.f32.mrf.mxu0 }
  0xec   : > { %v398_v41 = vadd.f32 %v482_v38, %v397_v39 }
  0xed   : > { %v492_v42 = vpop.f32.mrf.mxu0 }
  0xee   : > { %v404_v43 = vadd.f32 %v403_v40, %v398_v41 }
  0xef   : > { %v400_v44 = vpop.f32.mrf.mxu0 }
  0xf0   : > { %v405_v45 = vpack.c.bf16 %v404_v43, %v404_v43 }
  0xf1   : > { %v493_v46 = vpop.f32.mrf.mxu0 }
  0xf2   : > { %407 = vst.msk [vmem:[%s246_s30] sm:$0xf] %vm406_vm6, %v405_v45 }
  0xf3 PF: > { %s16_s21 = sadd.s32 1, %s511_s21  }
  0xf4   : > { %p13_p4 = scmp.ge.s32.totalorder %s16_s21, 4  }
  0xf6   :  { %15 = sbr.rel (!%p13_p4) target bundleno = 1 (0x1), region = 80 }

// kernel: multistage_net_forward.11
= control target key start
LH: loop header
LB: loop body
LE: loop exit
PB: predicated region body
PF: predicated region fallthrough
CT: control target
= control target key end

     0   :  { %s2246_s0 = inlined_call_operand.vmem [shape: bf16[2,8,32], index: 0, kind: input, shape index: {}]   ;;  %s2247_s1 = inlined_call_operand.vmem [shape: bf16[2,8,32], index: 1, kind: input, shape index: {}]   ;;  %s2248_s2 = inlined_call_operand.vmem [shape: bf16[32,32], index: 2, kind: input, shape index: {}]   ;;  %s2249_s3 = inlined_call_operand.vmem [shape: f32[1,32], index: 3, kind: input, shape index: {}]   ;;  %s2250_s4 = inlined_call_operand.vmem [shape: bf16[32,64], index: 4, kind: input, shape index: {}]   ;;  %s2251_s5 = inlined_call_operand.vmem [shape: f32[1,64], index: 5, kind: input, shape index: {}]   ;;  %s2252_s6 = inlined_call_operand.vmem [shape: bf16[32,32], index: 6, kind: input, shape index: {}]   ;;  %s2253_s7 = inlined_call_operand.vmem [shape: f32[1,32], index: 7, kind: input, shape index: {}]   ;;  %s2254_s8 = inlined_call_operand.vmem [shape: f32[1,32], index: 8, kind: input, shape index: {}]   ;;  %s2255_s9 = inlined_call_operand.vmem [shape: f32[1,32], index: 9, kind: input, shape index: {}]   ;;  %s2256_s10 = inlined_call_operand.vmem [shape: bf16[32,32], index: 10, kind: input, shape index: {}]   ;;  %s2257_s11 = inlined_call_operand.vmem [shape: f32[1,32], index: 11, kind: input, shape index: {}]   ;;  %s2258_s12 = inlined_call_operand.vmem [shape: bf16[32,64], index: 12, kind: input, shape index: {}]   ;;  %s2259_s13 = inlined_call_operand.vmem [shape: f32[1,64], index: 13, kind: input, shape index: {}]   ;;  %s2260_s14 = inlined_call_operand.vmem [shape: bf16[64,32], index: 14, kind: input, shape index: {}]   ;;  %s2261_s15 = inlined_call_operand.vmem [shape: f32[1,32], index: 15, kind: input, shape index: {}]   ;;  %s2262_s16 = inlined_call_operand.vmem [shape: f32[1,32], index: 16, kind: input, shape index: {}]   ;;  %s2263_s17 = inlined_call_operand.vmem [shape: f32[1,32], index: 17, kind: input, shape index: {}]   ;;  %s2264_s18 = inlined_call_operand.vmem [shape: bf16[2,8,32], index: 18, kind: output, shape index: {0}]   ;;  %s2265_s19 = inlined_call_operand.vmem [shape: bf16[2,8,32], index: 19, kind: output, shape index: {1}]  }
   0x1   :  { %2267 = sst [smem:[#allocation2_spill]] %s2246_s0  ;;  %s2040_s0 = smov 0  }
   0x2   :  { %2268 = sst [smem:[#allocation3_spill]] %s2247_s1 }
   0x3   :  { %2269 = sst [smem:[#allocation4_spill]] %s2248_s2 }
   0x4   :  { %2270 = sst [smem:[#allocation5_spill]] %s2249_s3 }
   0x5 LB: > { %s1677_s30 = sadd.s32 4294967295, %s1926_s0   ;;  %p1681_p0 = scmp.ge.s32.totalorder %s1926_s0, 1  ;;  %s1926_s0 = sphi %s2040_s0, %s30_s0  }
   0x6   : > { %p548_p1 = scmp.lt.s32.totalorder %s1926_s0, 3 }
   0x8   : > { %p549_p2 = pnand %p1681_p0, %p548_p1 }
   0x9   : > { %s2271_s2 = sld [smem:[#allocation4_spill]] (!%p549_p2)  ;;  %p610_p3 = scmp.lt.s32.totalorder (!%p549_p2), %s1677_s30, 1 }
   0xa   : > { %552 = sbr.rel (%p549_p2) target bundleno = 2237 (0x8bd), region = 92  ;;  %s2272_s29 = sld [smem:[#allocation3_spill]] (!%p549_p2) }
   0xb   : > { %s2273_s22 = sld [smem:[#allocation2_spill]] (!%p549_p2)  ;;  %s1930_s28 = smov (!%p549_p2), 112  }
   0xc   : > { %s2274_s27 = sld [smem:[#allocation5_spill]] (!%p549_p2)  ;;  %s1933_s21 = smov (!%p549_p2), 96  }
   0xd   : > { %s1934_s1 = smov (!%p549_p2), 80   ;;  %s1937_s25 = smov (!%p549_p2), 8  }
   0xf   : > { %v1882_v0 = vld [vmem:[%s2250_s4 + $0x8] sm:$0xff]   ;;  %v1928_v1 = vmov 0.0   ;;  %v1884_v3 = vld [vmem:[%s2250_s4] sm:$0xff]   ;;  %vm1929_vm0 = vmmov 0   ;;  %s2276_s30 = smov (!%p610_p3, %s1677_s30), 1  ;;  %vm652_vm1 = vcmask 261120  }
  0x10   : > { %1770 = vmatprep.subr.bf16.mxu1 %v1928_v1  ;;  %1762 = vmatprep.subr.bf16.mxu0 %v1928_v1  ;;  %v1883_v2 = vld [vmem:[%s2271_s2 + $0x8] sm:$0xff]   ;;  %v1885_v4 = vld [vmem:[%s2271_s2] sm:$0xff]   ;;  %s2068_s26 = sshll.u32 %s2276_s30, 2  ;;  %vm764_vm2 = vcmask 64512   ;;  %vm830_vm3 = vcmask 1043456   ;;  %vm1221_vm4 = vcmask 130048  }
  0x11   : > { %1771 = vmatpush3.bf16.msra.mxu1 %v1882_v0  ;;  %1774 = vmatprep.mubr.msk.bf16.mxu1 %vm1929_vm0, %v1928_v1  ;;  %s617_s20 = scalar_lea.vmem %s2272_s29, %s2068_s26  ;;  %s613_s23 = scalar_lea.vmem %s2273_s22, %s2068_s26  ;;  %v1690_v7 = vld [vmem:[%s2251_s5] ss:$0 sm:$0xff]  ;;  %vm1223_vm5 = vcmask 195584   ;;  %vm1577_vm6 = vcmask 257024   ;;  %vm1501_vm7 = vcmask 523264  }
  0x12   : > { %1763 = vmatpush3.bf16.msra.mxu0 %v1883_v2  ;;  %1772 = vmatprep.subr.bf16.mxu1 %v1928_v1  ;;  %v2075_v5 = vld [vmem:[%s617_s20] sm:$0xf]  ;;  %s1931_s29 = smov 120   ;;  %s1932_s20 = smov 104  }
  0x13   : > { %1764 = vmatprep.subr.bf16.mxu0 %v1928_v1  ;;  %1766 = vmatprep.mubr.msk.bf16.mxu0 %vm1929_vm0, %v1928_v1  ;;  %v2084_v6 = vld [vmem:[%s613_s23] sm:$0xf]  ;;  %s1935_s22 = smov 72   ;;  %s1936_s23 = smov 88  }
  0x14   : > { %v1686_v8 = vld [vmem:[%s2274_s27] ss:$0 sm:$0xff] }
  0x15   : > { %1773 = vmatpush3.bf16.msra.mxu1 %v1884_v3 }
  0x16   : > { %1765 = vmatpush3.bf16.msra.mxu0 %v1885_v4  ;;  %1784 = vmatprep.subr.bf16.mxu1 %v1928_v1 }
  0x17   : > { %1778 = vmatprep.subr.bf16.mxu0 %v1928_v1 }
  0x18   : > { %1775 = vmatmul.mubr.msk.bf16.vlgmr.msra.gmra.mxu1 %vm652_vm1, %v2075_v5 }
  0x19   : > { %1767 = vmatmul.mubr.msk.bf16.vlgmr.msra.gmra.mxu0 %vm652_vm1, %v2084_v6  ;;  %1786 = vmatprep.mubr.msk.bf16.mxu1 %vm1929_vm0, %v1928_v1 }
  0x1a   : > { %1780 = vmatprep.mubr.msk.bf16.mxu0 %vm1929_vm0, %v1928_v1 }
  0xd8   : > { %v757_v9 = vpop.f32.mrf.mxu1 }
  0xd9   : > { %v758_v10 = vadd.f32 %v1690_v7, %v757_v9  ;;  %v690_v11 = vpop.f32.mrf.mxu0 }
  0xda   : > { %v691_v12 = vadd.f32 %v1686_v8, %v690_v11  ;;  %v1776_v13 = vpop.f32.mrf.mxu1 }
  0xdb   : > { %v2098_v14 = vpack.c.bf16 %v758_v10, %v758_v10  ;;  %v1768_v15 = vpop.f32.mrf.mxu0 }
  0xdc   : > { %v760_v16 = vpop.f32.mrf.mxu1  ;;  %v696_v17 = vpack.c.bf16 %v691_v12, %v691_v12 }
  0xdd   : > { %988 = vrot.lane.b32.xlu1 %v2098_v14, %s1930_s28  ;;  %877 = vrot.lane.b32.xlu0 %v2098_v14, %s1931_s29  ;;  %v693_v18 = vpop.f32.mrf.mxu0  ;;  %v769_v19 = vsel %vm764_vm2, %v2098_v14, 0 }
  0xde   : > { %v1777_v20 = vpop.f32.mrf.mxu1  ;;  %1779 = vmatpush3.bf16.xpose.msra.mxu0 %v769_v19 }
  0xdf   : > { %v1769_v21 = vpop.f32.mrf.mxu0  ;;  %1790 = vmatprep.subr.bf16.mxu0 %v1928_v1 }
  0xe1   : > { %986 = vrot.lane.b32.xlu1 %v696_v17, %s1930_s28  ;;  %875 = vrot.lane.b32.xlu0 %v696_v17, %s1931_s29  ;;  %s1938_s28 = smov 16   ;;  %s1939_s29 = smov 24  }
  0xe5   : > { %1097 = vrot.lane.b32.xlu1 %v696_v17, %s1932_s20  ;;  %1099 = vrot.lane.b32.xlu0 %v2098_v14, %s1932_s20 }
  0xe6   : > { %1781 = vmatmul.mubr.msk.bf16.vlgmr.msra.gmra.mxu0 %vm764_vm2, %v696_v17 }
  0xe7   : > { %1792 = vmatprep.mubr.msk.bf16.mxu0 %vm1929_vm0, %v1928_v1 }
 0x14f   : > { %v878_v22 = vpop.permute.xlu0 %877  ;;  %v989_v24 = vpop.permute.xlu1 %988 }
 0x150   : > { %v883_v23 = vsel %vm764_vm2, %v878_v22, 0  ;;  %v994_v26 = vsel %vm764_vm2, %v989_v24, 0 }
 0x151   : > { %1791 = vmatpush3.bf16.xpose.msra.mxu0 %v883_v23 }
 0x152   : > { %1802 = vmatprep.subr.bf16.mxu0 %v1928_v1 }
 0x153   : > { %v876_v25 = vpop.permute.xlu0 %875  ;;  %v987_v28 = vpop.permute.xlu1 %986 }
 0x157   : > { %v1100_v27 = vpop.permute.xlu0 %1099  ;;  %v1098_v30 = vpop.permute.xlu1 %1097 }
 0x158   : > { %1793 = vmatmul.mubr.msk.bf16.vlgmr.msra.gmra.mxu0 %vm764_vm2, %v876_v25  ;;  %v1105_v29 = vsel %vm764_vm2, %v1100_v27, 0 }
 0x159   : > { %1803 = vmatpush3.bf16.xpose.msra.mxu0 %v994_v26  ;;  %1804 = vmatprep.mubr.msk.bf16.mxu0 %vm1929_vm0, %v1928_v1 }
 0x15a   : > { %1814 = vmatprep.subr.bf16.mxu0 %v1928_v1 }
 0x160   : > { %1805 = vmatmul.mubr.msk.bf16.vlgmr.msra.gmra.mxu0 %vm764_vm2, %v987_v28 }
 0x161   : > { %1815 = vmatpush3.bf16.xpose.msra.mxu0 %v1105_v29  ;;  %1816 = vmatprep.mubr.msk.bf16.mxu0 %vm1929_vm0, %v1928_v1 }
 0x162   : > { %1826 = vmatprep.subr.bf16.mxu0 %v1928_v1 }
 0x168   : > { %1817 = vmatmul.mubr.msk.bf16.vlgmr.msra.gmra.mxu0 %vm764_vm2, %v1098_v30 }
 0x169   : > { %1830 = vmatprep.mubr.msk.bf16.mxu0 %vm1929_vm0, %v1928_v1 }
 0x1a6   : > { %v805_v31 = vpop.f32.mrf.mxu0 }
 0x1a7   : > { %v811_v32 = vmul.f32 0.35355338, %v805_v31 }
 0x1a8   : > { %v1782_v33 = vpop.f32.mrf.mxu0 }
 0x1a9   : > { %v812_v34 = vsel %vm764_vm2, %v811_v32, -inf }
 0x1aa   : > { %813 = vmax.xlane.f32.xlu0 %v812_v34  ;;  %v808_v35 = vpop.f32.mrf.mxu0 }
 0x1ac   : > { %v1783_v36 = vpop.f32.mrf.mxu0 }
 0x218   : > { %v919_v37 = vpop.f32.mrf.mxu0 }
 0x219   : > { %v925_v38 = vmul.f32 0.35355338, %v919_v37 }
 0x21a   : > { %v1794_v39 = vpop.f32.mrf.mxu0 }
 0x21b   : > { %v926_v40 = vsel %vm764_vm2, %v925_v38, -inf }
 0x21c   : > { %927 = vmax.xlane.f32.xlu1 %v926_v40  ;;  %v922_v41 = vpop.f32.mrf.mxu0 }
 0x21e   : > { %v1795_v42 = vpop.f32.mrf.mxu0 }
 0x21f   : > { %v1886_v42 = vld [vmem:[%s2252_s6 + $0x8] sm:$0xff]  }
 0x220   : > { %v1030_v43 = vpop.f32.mrf.mxu0  ;;  %1827 = vmatpush3.bf16.msra.mxu0 %v1886_v42 }
 0x221   : > { %v1036_v44 = vmul.f32 0.35355338, %v1030_v43  ;;  %1828 = vmatprep.subr.bf16.mxu0 %v1928_v1 }
 0x222   : > { %v1806_v45 = vpop.f32.mrf.mxu0 }
 0x223   : > { %v1037_v46 = vsel %vm764_vm2, %v1036_v44, -inf  ;;  %v1887_v45 = vld [vmem:[%s2252_s6] sm:$0xff]  }
 0x224   : > { %1038 = vmax.xlane.f32.xlu0 %v1037_v46  ;;  %v1033_v47 = vpop.f32.mrf.mxu0  ;;  %1829 = vmatpush3.bf16.msra.mxu0 %v1887_v45 }
 0x225   : > { %1842 = vmatprep.subr.bf16.mxu0 %v1928_v1 }
 0x226   : > { %v1807_v48 = vpop.f32.mrf.mxu0 }
 0x228   : > { %v1141_v49 = vpop.f32.mrf.mxu0 }
 0x229   : > { %v1147_v50 = vmul.f32 0.35355338, %v1141_v49 }
 0x22a   : > { %v1818_v51 = vpop.f32.mrf.mxu0 }
 0x22b   : > { %v1148_v52 = vsel %vm764_vm2, %v1147_v50, -inf }
 0x22c   : > { %1149 = vmax.xlane.f32.xlu0 %v1148_v52  ;;  %v1144_v53 = vpop.f32.mrf.mxu0 }
 0x22e   : > { %v1819_v54 = vpop.f32.mrf.mxu0 }
 0x233   : > { %v814_v55 = vpop.xlane.xlu0 %813 }
 0x234   : > { %v815_v56 = vsub.f32 %v811_v32, %v814_v55 }
 0x236   : > { %v816_v57 = vmul.f32 1.442695, %v815_v56 }
 0x238   : > { %1896 = vpow2.f32 %v816_v57 }
 0x245   : > { %v1897_v58 = vpop.eup %1896 }
 0x246   : > { %v818_v59 = vsel %vm764_vm2, %v1897_v58, 0.0 }
 0x247   : > { %819 = vadd.xlane.f32.xlu1 %v818_v59 }
 0x258   : > { %825 = vrot.lane.b32.xlu1 %v2098_v14, %s1933_s21  ;;  %s625_s21 = scalar_lea.vmem %s2265_s19, %s2068_s26 }
 0x2a5   : > { %v928_v60 = vpop.xlane.xlu1 %927 }
 0x2a6   : > { %v929_v61 = vsub.f32 %v925_v38, %v928_v60 }
 0x2a8   : > { %v930_v62 = vmul.f32 1.442695, %v929_v61 }
 0x2aa   : > { %1898 = vpow2.f32 %v930_v62 }
 0x2ad   : > { %v1039_v63 = vpop.xlane.xlu0 %1038 }
 0x2ae   : > { %v1040_v0 = vsub.f32 %v1036_v44, %v1039_v63  ;;  %v1888_v63 = vld [vmem:[%s2258_s12 + $0x8] sm:$0xff]  }
 0x2b0   : > { %v1041_v2 = vmul.f32 1.442695, %v1040_v0  ;;  %v1702_v0 = vld [vmem:[%s2253_s7] ss:$0 sm:$0xff] }
 0x2b2   : > { %1900 = vpow2.f32 %v1041_v2  ;;  %v1292_v2 = vunpack.c.l.bf16 %v2084_v6 }
 0x2b5   : > { %v1150_v3 = vpop.xlane.xlu0 %1149 }
 0x2b6   : > { %v1151_v4 = vsub.f32 %v1147_v50, %v1150_v3 }
 0x2b7   : > { %v1899_v7 = vpop.eup %1898 }
 0x2b8   : > { %v1152_v8 = vmul.f32 1.442695, %v1151_v4  ;;  %v932_v9 = vsel %vm764_vm2, %v1899_v7, 0.0 }
 0x2b9   : > { %933 = vadd.xlane.f32.xlu0 %v932_v9 }
 0x2ba   : > { %1902 = vpow2.f32 %v1152_v8 }
 0x2bf   : > { %v1901_v10 = vpop.eup %1900 }
 0x2c0   : > { %v1043_v11 = vsel %vm764_vm2, %v1901_v10, 0.0 }
 0x2c1   : > { %1044 = vadd.xlane.f32.xlu1 %v1043_v11 }
 0x2c7   : > { %v1903_v12 = vpop.eup %1902 }
 0x2c8   : > { %v1154_v13 = vsel %vm764_vm2, %v1903_v12, 0.0 }
 0x2c9   : > { %1155 = vadd.xlane.f32.xlu0 %v1154_v13 }
 0x2d0   : > { %v820_v15 = vpop.xlane.xlu1 %819 }
 0x2d1   : > { %1904 = vrcp.f32 %v820_v15 }
 0x2d2   : > { %1049 = vrot.lane.b32.xlu1 %v2098_v14, %s1934_s1 }
 0x2d4   : > { %v826_v16 = vpop.permute.xlu1 %825 }
 0x2d5   : > { %v832_v17 = vsel %vm830_vm3, %v826_v16, 0 }
 0x2d6   : > { %1785 = vmatpush3.bf16.msra.mxu1 %v832_v17  ;;  %1160 = vrot.lane.b32.xlu1 %v2098_v14, %s1935_s22 }
 0x2d7   : > { %1796 = vmatprep.subr.bf16.mxu1 %v1928_v1 }
 0x2de   : > { %v1905_v18 = vpop.eup %1904 }
 0x2df   : > { %938 = vrot.lane.b32.xlu0 %v2098_v14, %s1936_s23  ;;  %v822_v19 = vmul.f32 %v1905_v18, %v1897_v58  ;;  %v1890_v18 = vld [vmem:[%s2256_s10 + $0x8] sm:$0xff]   ;;  %s621_s23 = scalar_lea.vmem %s2264_s18, %s2068_s26 }
 0x2e1   : > { %v823_v20 = vpack.c.bf16 %v822_v19, %v822_v19  ;;  %v1891_v19 = vld [vmem:[%s2256_s10] sm:$0xff]  }
 0x2e3   : > { %1787 = vmatmul.mubr.msk.bf16.vlgmr.msra.gmra.mxu1 %vm764_vm2, %v823_v20 }
 0x2e4   : > { %1798 = vmatprep.mubr.msk.bf16.mxu1 %vm1929_vm0, %v1928_v1 }
 0x342   : > { %v934_v21 = vpop.xlane.xlu0 %933 }
 0x343   : > { %1906 = vrcp.f32 %v934_v21 }
 0x34a   : > { %v1045_v22 = vpop.xlane.xlu1 %1044 }
 0x34b   : > { %1908 = vrcp.f32 %v1045_v22 }
 0x34e   : > { %v1050_v28 = vpop.permute.xlu1 %1049 }
 0x34f   : > { %v1055_v30 = vsel %vm830_vm3, %v1050_v28, 0  ;;  %v1706_v28 = vld [vmem:[%s2254_s8] ss:$0 sm:$0xff] }
 0x350   : > { %v1907_v23 = vpop.eup %1906 }
 0x351   : > { %v936_v25 = vmul.f32 %v1907_v23, %v1899_v7 }
 0x352   : > { %v1156_v24 = vpop.xlane.xlu0 %1155  ;;  %v1161_v32 = vpop.permute.xlu1 %1160 }
 0x353   : > { %1910 = vrcp.f32 %v1156_v24  ;;  %v937_v14 = vpack.c.bf16 %v936_v25, %v936_v25  ;;  %v1166_v35 = vsel %vm830_vm3, %v1161_v32, 0  ;;  %v1892_v32 = vld [vmem:[%s2260_s14 + $0x18] sm:$0xff]  }
 0x356   : > { %v939_v26 = vpop.permute.xlu0 %938 }
 0x357   : > { %v944_v27 = vsel %vm830_vm3, %v939_v26, 0 }
 0x358   : > { %1797 = vmatpush3.bf16.msra.mxu1 %v944_v27  ;;  %v1909_v29 = vpop.eup %1908 }
 0x359   : > { %1808 = vmatprep.subr.bf16.mxu1 %v1928_v1  ;;  %v1047_v31 = vmul.f32 %v1909_v29, %v1901_v10  ;;  %v1707_v29 = vld [vmem:[%s2255_s9] ss:$0 sm:$0xff] }
 0x35b   : > { %1799 = vmatmul.mubr.msk.bf16.vlgmr.msra.gmra.mxu1 %vm764_vm2, %v937_v14  ;;  %v1048_v33 = vpack.c.bf16 %v1047_v31, %v1047_v31 }
 0x35c   : > { %1809 = vmatpush3.bf16.msra.mxu1 %v1055_v30  ;;  %1810 = vmatprep.mubr.msk.bf16.mxu1 %vm1929_vm0, %v1928_v1 }
 0x35d   : > { %1820 = vmatprep.subr.bf16.mxu1 %v1928_v1 }
 0x360   : > { %v1911_v34 = vpop.eup %1910 }
 0x361   : > { %v1158_v36 = vmul.f32 %v1911_v34, %v1903_v12  ;;  %v1889_v12 = vld [vmem:[%s2258_s12] sm:$0xff]   ;;  %v1893_v34 = vld [vmem:[%s2260_s14 + $0x10] sm:$0xff]  }
 0x363   : > { %1811 = vmatmul.mubr.msk.bf16.vlgmr.msra.gmra.mxu1 %vm764_vm2, %v1048_v33  ;;  %v1159_v37 = vpack.c.bf16 %v1158_v36, %v1158_v36 }
 0x364   : > { %1821 = vmatpush3.bf16.msra.mxu1 %v1166_v35  ;;  %1822 = vmatprep.mubr.msk.bf16.mxu1 %vm1929_vm0, %v1928_v1  ;;  %v1712_v35 = vld [vmem:[%s2259_s13] ss:$0 sm:$0xff] }
 0x365   : > { %1834 = vmatprep.subr.bf16.mxu1 %v1928_v1 }
 0x36b   : > { %1823 = vmatmul.mubr.msk.bf16.vlgmr.msra.gmra.mxu1 %vm764_vm2, %v1159_v37  ;;  %v1894_v37 = vld [vmem:[%s2260_s14 + $0x8] sm:$0xff]  }
 0x36c   : > { %1838 = vmatprep.mubr.msk.bf16.mxu1 %vm1929_vm0, %v1928_v1  ;;  %1835 = vmatpush3.bf16.msra.mxu1 %v1890_v18 }
 0x36d   : > { %1836 = vmatprep.subr.bf16.mxu1 %v1928_v1 }
 0x370   : > { %1837 = vmatpush3.bf16.msra.mxu1 %v1891_v19 }
 0x371   : > { %1850 = vmatprep.subr.bf16.mxu1 %v1928_v1 }
 0x3a3   : > { %v868_v38 = vpop.f32.mrf.mxu1 }
 0x3a5   : > { %v1788_v39 = vpop.f32.mrf.mxu1 }
 0x3a6   : > { %v1895_v39 = vld [vmem:[%s2260_s14] sm:$0xff]  }
 0x3a7   : > { %v871_v40 = vpop.f32.mrf.mxu1 }
 0x3a9   : > { %v1789_v41 = vpop.f32.mrf.mxu1 }
 0x3aa   : > { %v1708_v41 = vld [vmem:[%s2257_s11] ss:$0 sm:$0xff] }
 0x41b   : > { %v980_v43 = vpop.f32.mrf.mxu1 }
 0x41c   : > { %1209 = vrot.lane.b32.xlu0 %v980_v43, %s1937_s25 }
 0x41d   : > { %v1800_v44 = vpop.f32.mrf.mxu1 }
 0x41f   : > { %v983_v46 = vpop.f32.mrf.mxu1 }
 0x421   : > { %v1801_v47 = vpop.f32.mrf.mxu1 }
 0x423   : > { %v1091_v48 = vpop.f32.mrf.mxu1 }
 0x424   : > { %1213 = vrot.lane.b32.xlu1 %v1091_v48, %s1938_s28 }
 0x425   : > { %v1812_v49 = vpop.f32.mrf.mxu1 }
 0x427   : > { %v1094_v50 = vpop.f32.mrf.mxu1 }
 0x429   : > { %v1813_v51 = vpop.f32.mrf.mxu1 }
 0x42b   : > { %v1202_v52 = vpop.f32.mrf.mxu1 }
 0x42c   : > { %1217 = vrot.lane.b32.xlu0 %v1202_v52, %s1939_s29 }
 0x42d   : > { %v1824_v53 = vpop.f32.mrf.mxu1 }
 0x42f   : > { %v1205_v54 = vpop.f32.mrf.mxu1 }
 0x430   : > { %v1716_v54 = vld [vmem:[%s2261_s15] ss:$0 sm:$0xff] }
 0x431   : > { %v1825_v55 = vpop.f32.mrf.mxu1 }
 0x48e   : > { %v1210_v56 = vpop.permute.xlu0 %1209 }
 0x48f   : > { %v1220_v58 = vsel %vm764_vm2, %v868_v38, %v1210_v56  ;;  %v1545_v56 = vunpack.c.l.bf16 %v2075_v5 }
 0x496   : > { %v1214_v57 = vpop.permute.xlu1 %1213 }
 0x497   : > { %v1222_v59 = vsel %vm1221_vm4, %v1220_v58, %v1214_v57 }
 0x49e   : > { %v1218_v60 = vpop.permute.xlu0 %1217 }
 0x49f   : > { %v1224_v61 = vsel %vm1223_vm5, %v1222_v59, %v1218_v60 }
 0x4a0   : > { %v1225_v62 = vpack.c.bf16 %v1224_v61, %v1224_v61 }
 0x4a2   : > { %1831 = vmatmul.mubr.msk.bf16.vlgmr.msra.gmra.mxu0 %vm652_vm1, %v1225_v62 }
 0x4a3   : > { %1846 = vmatprep.mubr.msk.bf16.mxu0 %vm1929_vm0, %v1928_v1  ;;  %1843 = vmatpush3.bf16.msra.mxu0 %v1888_v63 }
 0x4a4   : > { %1844 = vmatprep.subr.bf16.mxu0 %v1928_v1 }
 0x4a7   : > { %1845 = vmatpush3.bf16.msra.mxu0 %v1889_v12 }
 0x4aa   : > { %1847 = vmatmul.mubr.msk.bf16.vlgmr.msra.gmra.mxu0 %vm652_vm1, %v2075_v5  ;;  %v1722_v5 = vld [vmem:[%s2262_s16] ss:$0 sm:$0xff] }
 0x562   : > { %v1286_v3 = vpop.f32.mrf.mxu0 }
 0x563   : > { %v1287_v4 = vadd.f32 %v1702_v0, %v1286_v3 }
 0x564   : > { %v1832_v7 = vpop.f32.mrf.mxu0 }
 0x565   : > { %v1293_v8 = vadd.f32 %v1292_v2, %v1287_v4 }
 0x566   : > { %v1289_v9 = vpop.f32.mrf.mxu0 }
 0x567   : > { %v1296_v10 = vsel %vm652_vm1, %v1293_v8, 0.0 }
 0x568   : > { %1297 = vadd.xlane.f32.xlu1 %v1296_v10  ;;  %v1833_v11 = vpop.f32.mrf.mxu0  ;;  %v1723_v10 = vld [vmem:[%s2263_s17] ss:$0 sm:$0xff] }
 0x56a   : > { %v1454_v20 = vpop.f32.mrf.mxu0 }
 0x56b   : > { %v1455_v36 = vadd.f32 %v1712_v35, %v1454_v20 }
 0x56c   : > { %v1848_v21 = vpop.f32.mrf.mxu0 }
 0x56d   : > { %v1460_v38 = vmax.f32 %v1455_v36, 0.0 }
 0x56e   : > { %v1457_v22 = vpop.f32.mrf.mxu0 }
 0x56f   : > { %v1461_v40 = vpack.c.bf16 %v1460_v38, %v1460_v38 }
 0x570   : > { %v1849_v23 = vpop.f32.mrf.mxu0 }
 0x5f1   : > { %v1298_v13 = vpop.xlane.xlu1 %1297 }
 0x5f2   : > { %v1300_v15 = vmul.f32 0.03125, %v1298_v13 }
 0x5f4   : > { %v1301_v6 = vsub.f32 %v1293_v8, %v1300_v15 }
 0x5f6   : > { %v1302_v16 = vmul.f32 %v1301_v6, %v1301_v6 }
 0x5f8   : > { %v1303_v17 = vsel %vm652_vm1, %v1302_v16, 0.0 }
 0x5f9   : > { %1304 = vadd.xlane.f32.xlu0 %v1303_v17 }
 0x682   : > { %v1305_v24 = vpop.xlane.xlu0 %1304 }
 0x683   : > { %v1306_v25 = vmul.f32 0.03125, %v1305_v24 }
 0x685   : > { %v1307_v26 = vadd.f32 1e-05, %v1306_v25 }
 0x687   : > { %1912 = vrsqrt.f32 %v1307_v26 }
 0x694   : > { %v1913_v27 = vpop.eup %1912 }
 0x695   : > { %v1309_v14 = vmul.f32 %v1913_v27, %v1301_v6 }
 0x697   : > { %v1316_v30 = vmul.f32 %v1706_v28, %v1309_v14 }
 0x699   : > { %v1323_v31 = vadd.f32 %v1707_v29, %v1316_v30 }
 0x69b   : > { %v1324_v33 = vpack.c.bf16 %v1323_v31, %v1323_v31 }
 0x69d   : > { %1839 = vmatmul.mubr.msk.bf16.vlgmr.msra.gmra.mxu1 %vm652_vm1, %v1324_v33  ;;  %1578 = vst.msk [vmem:[%s621_s23] sm:$0xf] %vm1577_vm6, %v1324_v33 }
 0x69e   : > { %1851 = vmatpush3.bf16.msra.mxu1 %v1892_v32  ;;  %1858 = vmatprep.mubr.msk.bf16.mxu1 %vm1929_vm0, %v1928_v1 }
 0x69f   : > { %1852 = vmatprep.subr.bf16.mxu1 %v1928_v1 }
 0x6a2   : > { %1853 = vmatpush3.bf16.msra.mxu1 %v1893_v34 }
 0x6a3   : > { %1854 = vmatprep.subr.bf16.mxu1 %v1928_v1 }
 0x6a6   : > { %1855 = vmatpush3.bf16.msra.mxu1 %v1894_v37 }
 0x6a7   : > { %1856 = vmatprep.subr.bf16.mxu1 %v1928_v1 }
 0x6aa   : > { %1857 = vmatpush3.bf16.msra.mxu1 %v1895_v39 }
 0x6ad   : > { %1859 = vmatmul.mubr.msk.bf16.vlgmr.msra.gmra.mxu1 %vm1501_vm7, %v1461_v40 }
 0x75d   : > { %v1385_v42 = vpop.f32.mrf.mxu1 }
 0x75e   : > { %v1386_v43 = vadd.f32 %v1708_v41, %v1385_v42 }
 0x75f   : > { %v1840_v44 = vpop.f32.mrf.mxu1 }
 0x760   : > { %v1391_v45 = vsub.f32 0.0, %v1386_v43 }
 0x761   : > { %v1388_v46 = vpop.f32.mrf.mxu1 }
 0x762   : > { %v1392_v47 = vmul.f32 1.442695, %v1391_v45 }
 0x763   : > { %v1841_v48 = vpop.f32.mrf.mxu1 }
 0x764   : > { %1914 = vpow2.f32 %v1392_v47 }
 0x76d   : > { %v1539_v49 = vpop.f32.mrf.mxu1 }
 0x76e   : > { %v1540_v55 = vadd.f32 %v1716_v54, %v1539_v49 }
 0x76f   : > { %v1860_v50 = vpop.f32.mrf.mxu1 }
 0x771   : > { %v1915_v51 = vpop.eup %1914  ;;  %v1542_v1 = vpop.f32.mrf.mxu1 }
 0x772   : > { %v1394_v52 = vadd.f32 1.0, %v1915_v51 }
 0x773   : > { %v1861_v53 = vpop.f32.mrf.mxu1 }
 0x774   : > { %1916 = vrcp.f32 %v1394_v52 }
 0x781   : > { %v1917_v57 = vpop.eup %1916 }
 0x782   : > { %v1546_v58 = vmul.f32 %v1917_v57, %v1540_v55 }
 0x784   : > { %v1547_v59 = vadd.f32 %v1546_v58, %v1545_v56 }
 0x786   : > { %v1550_v60 = vsel %vm652_vm1, %v1547_v59, 0.0 }
 0x787   : > { %1551 = vadd.xlane.f32.xlu0 %v1550_v60 }
 0x810   : > { %v1552_v61 = vpop.xlane.xlu0 %1551 }
 0x811   : > { %v1553_v62 = vmul.f32 0.03125, %v1552_v61 }
 0x813   : > { %v1554_v63 = vsub.f32 %v1547_v59, %v1553_v62 }
 0x815   : > { %v1555_v0 = vmul.f32 %v1554_v63, %v1554_v63 }
 0x817   : > { %v1556_v2 = vsel %vm652_vm1, %v1555_v0, 0.0 }
 0x818   : > { %1557 = vadd.xlane.f32.xlu1 %v1556_v2 }
 0x8a1   : > { %v1558_v3 = vpop.xlane.xlu1 %1557 }
 0x8a2   : > { %v1559_v4 = vmul.f32 0.03125, %v1558_v3 }
 0x8a4   : > { %v1560_v7 = vadd.f32 1e-05, %v1559_v4 }
 0x8a6   : > { %1918 = vrsqrt.f32 %v1560_v7 }
 0x8b3   : > { %v1919_v8 = vpop.eup %1918 }
 0x8b4   : > { %v1562_v9 = vmul.f32 %v1919_v8, %v1554_v63 }
 0x8b6   : > { %v1569_v11 = vmul.f32 %v1722_v5, %v1562_v9 }
 0x8b8   : > { %v1576_v12 = vadd.f32 %v1723_v10, %v1569_v11 }
 0x8ba   : > { %v1579_v13 = vpack.c.bf16 %v1576_v12, %v1576_v12 }
 0x8bc   : > { %1580 = vst.msk [vmem:[%s625_s21] sm:$0xf] %vm1577_vm6, %v1579_v13 }
 0x8bd PF: > { %s30_s0 = sadd.s32 1, %s1926_s0  }
 0x8be   : > { %p27_p4 = scmp.ge.s32.totalorder %s30_s0, 4  }
 0x8c0   :  { %29 = sbr.rel (!%p27_p4) target bundleno = 5 (0x5), region = 137 }

// kernel: multistage_net_forward.15
= control target key start
LH: loop header
LB: loop body
LE: loop exit
PB: predicated region body
PF: predicated region fallthrough
CT: control target
= control target key end

     0   :  { %s937_s0 = inlined_call_operand.vmem [shape: bf16[2,8,32], index: 0, kind: input, shape index: {}]   ;;  %s938_s1 = inlined_call_operand.vmem [shape: f32[2,3,1,32], index: 1, kind: input, shape index: {}]   ;;  %s939_s2 = inlined_call_operand.vmem [shape: f32[2,1,32], index: 2, kind: input, shape index: {}]   ;;  %s940_s3 = inlined_call_operand.vmem [shape: bf16[32,64], index: 3, kind: input, shape index: {}]   ;;  %s941_s4 = inlined_call_operand.vmem [shape: f32[1,64], index: 4, kind: input, shape index: {}]   ;;  %s942_s5 = inlined_call_operand.vmem [shape: f32[1,64], index: 5, kind: input, shape index: {}]   ;;  %s943_s6 = inlined_call_operand.<no memory space> [shape: f32[1,1], index: 6, kind: input, shape index: {}]   ;;  %s944_s7 = inlined_call_operand.vmem [shape: f32[8,4], index: 7, kind: input, shape index: {}]   ;;  %s945_s8 = inlined_call_operand.vmem [shape: f32[1,4], index: 8, kind: input, shape index: {}]   ;;  %s946_s9 = inlined_call_operand.hbm [shape: f32[2,1,4], index: 9, kind: output, shape index: {}]  }
   0x1   :  { %v14_v0 = vstv %s943_s6 }
   0x2   :  { %15 = vst [vmem:[#allocation2] sm:$0x1] %v14_v0 }
   0x3   :  { %16 = vsyncpa [#allocation4], 0 }
   0x4   :  { %18 = vsyncpa [#allocation4 + $0x1], 0  ;;  %s806_s11 = smov 0   ;;  %s808_s12 = smov 0  }
   0x5   :  { %s810_s13 = smov 0   ;;  %s812_s14 = smov 0  }
   0x6 LB: > { %s827_s6 = sadd.s32 4294967295, %s747_s14   ;;  %s603_s15 = sadd.s32 4294967294, %s747_s14   ;;  %s747_s14 = sphi %s812_s14, %s952_s14   ;;  %s743_s13 = sphi %s810_s13, %s951_s13   ;;  %s739_s12 = sphi %s808_s12, %s950_s12   ;;  %s735_s11 = sphi %s806_s11, %s949_s11  }
   0x7   : > { %s831_s16 = sadd.s32 1, %s747_s14   ;;  %s225_s17 = sadd.s32 1, %s743_s13 }
   0x8   : > { %s222_s18 = ssub.s32 %s747_s14, %s831_s16  ;;  %p235_p0 = scmp.ne.s32.totalorder %s743_s13, %s739_s12 }
   0x9   : > { %p223_p1 = scmp.eq.s32.totalorder %s222_s18, 0  ;;  %p236_p2 = scmp.eq.s32.totalorder %s827_s6, 1 }
   0xa   : > { %p241_p3 = scmp.ne.s32.totalorder %s739_s12, %s735_s11  ;;  %p242_p4 = scmp.eq.s32.totalorder %s603_s15, 1 }
   0xb   : > { %s842_s19 = scalar_select %p223_p1, %s743_s13, %s225_s17  }
   0xc   : > { %p844_p5 = por %p236_p2, %p235_p0  ;;  %p848_p6 = por %p242_p4, %p241_p3 }
   0xd   : > { %p606_p7 = scmp.ge.s32.totalorder %s747_s14, 1  ;;  %p291_p8 = scmp.lt.s32.totalorder %s747_s14, 3 }
   0xf   : > { %p292_p9 = pnand %p606_p7, %p291_p8 }
  0x10   : > { %p325_p10 = scmp.lt.s32.totalorder (!%p292_p9), %s827_s6, 1  ;;  %s752_s25 = smov (!%p292_p9), [#allocation3]  }
  0x11   : > { %295 = sbr.rel (%p292_p9) target bundleno = 551 (0x227), region = 56 }
  0x16   : > { %v685_v1 = vld [vmem:[%s940_s3 + $0x8] sm:$0xff]   ;;  %v749_v2 = vmov 0.0   ;;  %v686_v3 = vld [vmem:[%s940_s3] sm:$0xff]   ;;  %vm750_vm0 = vmmov 0   ;;  %s326_s26 = scalar_select %p325_p10, %s827_s6, 1  ;;  %vm335_vm1 = vcmask 1041408  }
  0x17   : > { %634 = vmatprep.subr.bf16.mxu0 %v749_v2  ;;  %638 = vmatprep.mubr.msk.bf16.mxu0 %vm750_vm0, %v749_v2  ;;  %v608_v6 = vld [vmem:[%s938_s1] ss:$0 sm:$0xff]  ;;  %vm348_vm2 = vcmask 1040384   ;;  %v610_v9 = vld [vmem:[%s938_s1 + $0x1] ss:$0 sm:$0xff]  ;;  %vm382_vm3 = vcmask 1043456  }
  0x18   : > { %635 = vmatpush3.bf16.msra.mxu0 %v685_v1  ;;  %s607_s27 = sshll.u32 %s326_s26, 2  ;;  %v612_v10 = vld [vmem:[%s938_s1 + $0x2] ss:$0 sm:$0xff]  ;;  %v613_v17 = vld [vmem:[%s939_s2] ss:$0 sm:$0xff]  ;;  %vm451_vm4 = vcmask 261120  }
  0x19   : > { %636 = vmatprep.subr.bf16.mxu0 %v749_v2  ;;  %s328_s30 = scalar_lea.vmem %s937_s0, %s607_s27  ;;  %v615_v21 = vld [vmem:[%s938_s1 + $0x3] ss:$0 sm:$0xff]  ;;  %v617_v24 = vld [vmem:[%s938_s1 + $0x4] ss:$0 sm:$0xff]  ;;  %v619_v25 = vld [vmem:[%s938_s1 + $0x5] ss:$0 sm:$0xff] }
  0x1a   : > { %v330_v4 = vld [vmem:[%s328_s30] sm:$0xf]  ;;  %vm504_vm5 = vcmask 523264   ;;  %v751_v47 = vmov 0   ;;  %vm523_vm6 = vcmask 31744   ;;  %s323_s27 = sand.u32 1, %s739_s12  }
  0x1b   : > { %v331_v5 = vunpack.c.l.bf16 %v330_v4  ;;  %v621_v32 = vld [vmem:[%s939_s2 + $0x1] ss:$0 sm:$0xff]  ;;  %v622_v37 = vld [vmem:[%s941_s4] ss:$0 sm:$0xff]  ;;  %684 = vset.pattern.permute.xlu0 %v751_v47  ;;  %s628_s30 = sshll.u32 %s827_s6, 4  ;;  %s324_s10 = scalar_lea.vmem [#allocation3], %s323_s27 }
  0x1c   : > { %637 = vmatpush3.bf16.msra.mxu0 %v686_v3  ;;  %v626_v41 = vld [vmem:[%s942_s5] ss:$0 sm:$0xff]  ;;  %s548_s15 = sshll.u32 %s324_s10, 4  ;;  %vm533_vm7 = vcmask 24576   ;;  %s546_s22 = scalar_lea.hbm %s946_s9, %s628_s30  ;;  %s549_s15 = int_to_ptr.vmem [resolvable:$true] %s548_s15 }
  0x1d   : > { %v333_v7 = vrot.slane %v331_v5, 6  ;;  %v346_v8 = vrot.slane %v331_v5, 7  ;;  %v368_v15 = vmul.f32 %v612_v10, %v331_v5  ;;  %v627_v48 = vld [vmem:[#allocation2] ss:$0 sm:$0xff]  ;;  %s536_s23 = scalar_lea.sflag [#allocation4], %s323_s27  ;;  %s687_s24 = scalar_lea.vmem %s549_s15, 16 }
  0x1e   : > { %v516_v51 = vld [vmem:[%s944_s7] sm:$0xff]  ;;  %p688_p11 = scmp.ne.s32.totalorder %s549_s15, %s687_s24  ;;  %s691_s26 = sshll.u32 %s752_s25, 4  ;;  %s692_s26 = int_to_ptr.vmem [resolvable:$false] %s691_s26 }
  0x1f   : > { %v336_v11 = vsel %vm335_vm1, 0.0, %v333_v7  ;;  %v349_v12 = vsel %vm348_vm2, 0.0, %v346_v8  ;;  %v531_v60 = vld [vmem:[%s945_s8] sm:$0x1]  ;;  %s693_s6 = scalar_lea.vmem %s692_s26, 32  ;;  %p694_p0 = scmp.lt.s32.totalorder %s549_s15, %s692_s26 }
  0x20   : > { %v344_v13 = vmul.f32 %v608_v6, %v336_v11  ;;  %v358_v14 = vmul.f32 %v610_v9, %v349_v12  ;;  %p689_p12 = pnand %p688_p11, %p844_p5  ;;  %p695_p1 = scmp.lt.s32.totalorder %s693_s6, %s687_s24 }
  0x22   : > { %v359_v16 = vadd.f32 %v358_v14, %v344_v13  ;;  %p690_p13 = pneg %p689_p12  ;;  %p696_p2 = por %p695_p1, %p694_p0 }
  0x24   : > { %v369_v18 = vadd.f32 %v368_v15, %v359_v16  ;;  %p697_p3 = pnand %p696_p2, %p690_p13 }
  0x26   : > { %v377_v19 = vadd.f32 %v613_v17, %v369_v18 }
  0x28   : > { %v378_v20 = vmax.f32 %v377_v19, 0.0 }
  0x2a   : > { %v380_v22 = vrot.slane %v378_v20, 4  ;;  %v394_v23 = vrot.slane %v378_v20, 6  ;;  %v415_v30 = vmul.f32 %v619_v25, %v378_v20 }
  0x2c   : > { %v383_v26 = vsel %vm382_vm3, 0.0, %v380_v22  ;;  %v396_v27 = vsel %vm335_vm1, 0.0, %v394_v23 }
  0x2d   : > { %v392_v28 = vmul.f32 %v615_v21, %v383_v26  ;;  %v405_v29 = vmul.f32 %v617_v24, %v396_v27 }
  0x2f   : > { %v406_v31 = vadd.f32 %v405_v29, %v392_v28 }
  0x31   : > { %v416_v33 = vadd.f32 %v415_v30, %v406_v31 }
  0x33   : > { %v425_v34 = vadd.f32 %v621_v32, %v416_v33 }
  0x35   : > { %v426_v35 = vmax.f32 %v425_v34, 0.0 }
  0x37   : > { %v427_v36 = vpack.c.bf16 %v426_v35, %v426_v35 }
  0x39   : > { %639 = vmatmul.mubr.msk.bf16.vlgmr.msra.gmra.mxu0 %vm451_vm4, %v427_v36 }
  0xf9   : > { %v489_v38 = vpop.f32.mrf.mxu0 }
  0xfa   : > { %v490_v39 = vadd.f32 %v622_v37, %v489_v38 }
  0xfb   : > { %v640_v40 = vpop.f32.mrf.mxu0 }
  0xfc   : > { %v495_v42 = vmax.f32 %v490_v39, 0.0 }
  0xfd   : > { %v492_v43 = vpop.f32.mrf.mxu0 }
  0xfe   : > { %v503_v44 = vmul.f32 %v626_v41, %v495_v42 }
  0xff   : > { %v641_v45 = vpop.f32.mrf.mxu0 }
 0x100   : > { %v505_v46 = vsel %vm504_vm5, %v503_v44, 0.0 }
 0x101   : > { %506 = vadd.xlane.f32.xlu0 %v505_v46 }
 0x18a   : > { %v507_v49 = vpop.xlane.xlu0 %506 }
 0x18b   : > { %v515_v50 = vadd.f32 %v627_v48, %v507_v49 }
 0x18d   : > { %519 = vperm.xlu0 %684, %v515_v50  }
 0x208   : > { %v520_v52 = vpop.permute.xlu0 %519 }
 0x209   : > { %v522_v53 = vmul.f32 %v520_v52, %v516_v51 }
 0x20b   : > { %v524_v54 = vsel %vm523_vm6, %v522_v53, 0.0 }
 0x20c   : > { %v525_v55 = vrot.slane %v524_v54, 4 }
 0x20e   : > { %v526_v56 = vadd.f32 %v525_v55, %v524_v54 }
 0x210   : > { %v527_v57 = vrot.slane %v526_v56, 2 }
 0x212   : > { %v528_v58 = vadd.f32 %v527_v57, %v526_v56 }
 0x214   : > { %v529_v59 = vrot.slane %v528_v58, 1 }
 0x216   : > { %v530_v61 = vadd.f32 %v529_v59, %v528_v58 }
 0x218   : > { %v532_v62 = vadd.f32 %v531_v60, %v530_v61 }
 0x21a   : > { %534 = vst.msk [vmem:[%s324_s10] sm:$0x1] %vm533_vm7, %v532_v62 }
 0x21b   : > { %700 = shalt.err (!%p697_p3)
}
 0x21c   : > { %s701_s28 = scalar_lea.hbm %s546_s22, 16  ;;  %s705_s30 = scalar_lea.hbm %s946_s9, 32 }
 0x21d   : > { %p702_p4 = scmp.ne.s32.totalorder %s546_s22, %s701_s28  ;;  %p706_p9 = scmp.lt.s32.totalorder %s546_s22, %s946_s9 }
 0x21e   : > { %p707_p10 = scmp.lt.s32.totalorder %s705_s30, %s701_s28 }
 0x21f   : > { %p703_p7 = pnand %p702_p4, %p844_p5 }
 0x220   : > { %p708_p11 = por %p707_p10, %p706_p9 }
 0x221   : > { %p704_p8 = pneg %p703_p7 }
 0x223   : > { %p709_p12 = pnand %p708_p11, %p704_p8 }
 0x225   : > { %712 = shalt.err (!%p709_p12)
}
 0x226   : > { %642 = dma.vmem_to_hbm [thread:$0]  (%p844_p5), %s549_s15, 16, %s546_s22, %s536_s23  }
 0x227 PF: > { %p648_p13 = scmp.ge.s32.totalorder %s747_s14, 2  ;;  %s560_s18 = sand.u32 1, %s735_s11  }
 0x228   : > { %s561_s24 = scalar_lea.sflag [#allocation4], %s560_s18 }
 0x229   : > { %p645_p0 = pnand %p648_p13, %p848_p6 }
 0x22b   : > { %p646_p1 = pneg %p645_p0 }
 0x22d   : > { %730 = dma.done.wait (%p646_p1), %s561_s24, 16  }
 0x22e   : > { %732 = vsyncadd (%p646_p1), %s561_s24, 4294967280  ;;  %p21_p2 = scmp.ge.s32.totalorder %s831_s16, 4   ;;  %s949_s11 = smov %s739_s12 }
 0x22f   : > { %s950_s12 = smov %s743_s13  ;;  %s951_s13 = smov %s842_s19 }
 0x230   : > { %s952_s14 = smov %s831_s16  ;;  %23 = sbr.rel (!%p21_p2) target bundleno = 6 (0x6), region = 97 }
 0x235   :  { %565 = vsyncpa [#allocation4], 1 }
 0x236   :  { %567 = vsyncpa [#allocation4 + $0x1], 1 }

// kernel: multistage_net_forward.13
= control target key start
LH: loop header
LB: loop body
LE: loop exit
PB: predicated region body
PF: predicated region fallthrough
CT: control target
= control target key end

     0   :  { %s2433_s0 = inlined_call_operand.vmem [shape: bf16[2,8,32], index: 0, kind: input, shape index: {}]   ;;  %s2434_s1 = inlined_call_operand.vmem [shape: bf16[2,8,32], index: 1, kind: input, shape index: {}]   ;;  %s2435_s2 = inlined_call_operand.vmem [shape: bf16[32,32], index: 2, kind: input, shape index: {}]   ;;  %s2436_s3 = inlined_call_operand.vmem [shape: f32[1,32], index: 3, kind: input, shape index: {}]   ;;  %s2437_s4 = inlined_call_operand.vmem [shape: bf16[32,64], index: 4, kind: input, shape index: {}]   ;;  %s2438_s5 = inlined_call_operand.vmem [shape: f32[1,64], index: 5, kind: input, shape index: {}]   ;;  %s2439_s6 = inlined_call_operand.vmem [shape: bf16[32,32], index: 6, kind: input, shape index: {}]   ;;  %s2440_s7 = inlined_call_operand.vmem [shape: f32[1,32], index: 7, kind: input, shape index: {}]   ;;  %s2441_s8 = inlined_call_operand.vmem [shape: f32[1,32], index: 8, kind: input, shape index: {}]   ;;  %s2442_s9 = inlined_call_operand.vmem [shape: f32[1,32], index: 9, kind: input, shape index: {}]   ;;  %s2443_s10 = inlined_call_operand.vmem [shape: bf16[32,32], index: 10, kind: input, shape index: {}]   ;;  %s2444_s11 = inlined_call_operand.vmem [shape: f32[1,32], index: 11, kind: input, shape index: {}]   ;;  %s2445_s12 = inlined_call_operand.vmem [shape: bf16[32,64], index: 12, kind: input, shape index: {}]   ;;  %s2446_s13 = inlined_call_operand.vmem [shape: f32[1,64], index: 13, kind: input, shape index: {}]   ;;  %s2447_s14 = inlined_call_operand.vmem [shape: bf16[64,32], index: 14, kind: input, shape index: {}]   ;;  %s2448_s15 = inlined_call_operand.vmem [shape: f32[1,32], index: 15, kind: input, shape index: {}]   ;;  %s2449_s16 = inlined_call_operand.vmem [shape: f32[1,32], index: 16, kind: input, shape index: {}]   ;;  %s2450_s17 = inlined_call_operand.vmem [shape: f32[1,32], index: 17, kind: input, shape index: {}]   ;;  %s2451_s18 = inlined_call_operand.hbm [shape: bf16[2,8,32], index: 18, kind: output, shape index: {0}]   ;;  %s2452_s19 = inlined_call_operand.vmem [shape: bf16[2,8,32], index: 19, kind: output, shape index: {1}]  }
   0x1   :  { %2458 = sst [smem:[#allocation8_spill]] %s2433_s0 }
   0x2   :  { %2459 = sst [smem:[#allocation9_spill]] %s2434_s1 }
   0x3   :  { %2460 = sst [smem:[#allocation10_spill]] %s2435_s2 }
   0x4   :  { %2461 = sst [smem:[#allocation11_spill]] %s2436_s3 }
   0x5   :  { %2462 = sst [smem:[#allocation12_spill]] %s2437_s4 }
   0x6   :  { %2463 = sst [smem:[#allocation13_spill]] %s2438_s5 }
   0x7   :  { %2464 = sst [smem:[#allocation14_spill]] %s2439_s6 }
   0x8   :  { %2465 = sst [smem:[#allocation15_spill]] %s2440_s7 }
   0x9   :  { %2466 = sst [smem:[#allocation16_spill]] %s2441_s8 }
   0xa   :  { %25 = vsyncpa [#allocation3], 0 }
   0xb   :  { %27 = vsyncpa [#allocation3 + $0x1], 0  ;;  %s2147_s0 = smov 0   ;;  %s2149_s30 = smov 0  }
   0xc   :  { %s2151_s20 = smov 0   ;;  %s2153_s21 = smov 0  }
   0xd LB: > { %2467 = sst [smem:[#allocation5_spill]] %s2028_s20  ;;  %s2168_s1 = sadd.s32 4294967295, %s2032_s21   ;;  %s2032_s21 = sphi %s2153_s21, %s2481_s21   ;;  %s2028_s20 = sphi %s2151_s20, %s2483_s20   ;;  %s2024_s30 = sphi %s2149_s30, %s2485_s30   ;;  %s2020_s0 = sphi %s2147_s0, %s2484_s0  }
   0xe   : > { %s1697_s22 = sadd.s32 4294967294, %s2032_s21   ;;  %s2172_s2 = sadd.s32 1, %s2032_s21  }
   0xf   : > { %2468 = sst [smem:[#allocation6_spill]] %s2172_s2  ;;  %s428_s23 = sadd.s32 1, %s2028_s20 }
  0x10   : > { %s425_s24 = ssub.s32 %s2032_s21, %s2172_s2  ;;  %p438_p0 = scmp.ne.s32.totalorder %s2028_s20, %s2024_s30 }
  0x11   : > { %p426_p1 = scmp.eq.s32.totalorder %s425_s24, 0  ;;  %p439_p2 = scmp.eq.s32.totalorder %s2168_s1, 1 }
  0x12   : > { %p444_p3 = scmp.ne.s32.totalorder %s2024_s30, %s2020_s0  ;;  %p445_p4 = scmp.eq.s32.totalorder %s1697_s22, 1 }
  0x13   : > { %s2183_s25 = scalar_select %p426_p1, %s2028_s20, %s428_s23  }
  0x14   : > { %p2185_p5 = por %p439_p2, %p438_p0  ;;  %p2189_p6 = por %p445_p4, %p444_p3 }
  0x15   : > { %2469 = sst [smem:[#allocation7_spill]] %s2183_s25  ;;  %p1700_p7 = scmp.ge.s32.totalorder %s2032_s21, 1 }
  0x16   : > { %p551_p8 = scmp.lt.s32.totalorder %s2032_s21, 3 }
  0x18   : > { %p552_p9 = pnand %p1700_p7, %p551_p8 }
  0x19   : > { %s2472_s4 = sld [smem:[#allocation12_spill]] (!%p552_p9)  ;;  %p614_p10 = scmp.lt.s32.totalorder (!%p552_p9), %s2168_s1, 1 }
  0x1a   : > { %555 = sbr.rel (%p552_p9) target bundleno = 2253 (0x8cd), region = 92  ;;  %s2473_s23 = sld [smem:[#allocation10_spill]] (!%p552_p9) }
  0x1b   : > { %s2476_s5 = sld [smem:[#allocation13_spill]] (!%p552_p9)  ;;  %s2037_s24 = smov (!%p552_p9), 120  }
  0x1c   : > { %s2477_s22 = sld [smem:[#allocation11_spill]] (!%p552_p9)  ;;  %s2038_s27 = smov (!%p552_p9), 104  }
  0x1d   : > { %s2039_s28 = smov (!%p552_p9), 96   ;;  %s2478_s6 = sld [smem:[#allocation14_spill]] (!%p552_p9) }
  0x1e   : > { %s2479_s7 = sld [smem:[#allocation15_spill]] (!%p552_p9) }
  0x1f   : > { %v1934_v0 = vld [vmem:[%s2472_s4 + $0x8] sm:$0xff]   ;;  %v2034_v1 = vmov 0.0   ;;  %v1936_v3 = vld [vmem:[%s2472_s4] sm:$0xff]   ;;  %vm2035_vm0 = vmmov 0   ;;  %s615_s29 = scalar_select %p614_p10, %s2168_s1, 1  ;;  %vm652_vm1 = vcmask 261120  }
  0x20   : > { %1791 = vmatprep.subr.bf16.mxu1 %v2034_v1  ;;  %1783 = vmatprep.subr.bf16.mxu0 %v2034_v1  ;;  %v1935_v2 = vld [vmem:[%s2473_s23 + $0x8] sm:$0xff]   ;;  %v1937_v4 = vld [vmem:[%s2473_s23] sm:$0xff]   ;;  %s2474_s4 = sld [smem:[#allocation9_spill]]  ;;  %vm764_vm2 = vcmask 64512   ;;  %vm830_vm3 = vcmask 1043456   ;;  %vm1221_vm4 = vcmask 130048  }
  0x21   : > { %1792 = vmatpush3.bf16.msra.mxu1 %v1934_v0  ;;  %1795 = vmatprep.mubr.msk.bf16.mxu1 %vm2035_vm0, %v2034_v1  ;;  %s2217_s25 = sshll.u32 %s615_s29, 2  ;;  %s2475_s23 = sld [smem:[#allocation8_spill]]  ;;  %v1709_v7 = vld [vmem:[%s2476_s5] ss:$0 sm:$0xff]  ;;  %vm1223_vm5 = vcmask 195584   ;;  %vm1577_vm6 = vcmask 257024  }
  0x22   : > { %1784 = vmatpush3.bf16.msra.mxu0 %v1935_v2  ;;  %1793 = vmatprep.subr.bf16.mxu1 %v2034_v1  ;;  %v1705_v8 = vld [vmem:[%s2477_s22] ss:$0 sm:$0xff]  ;;  %s2480_s8 = sld [smem:[#allocation16_spill]]  ;;  %s605_s22 = sand.u32 1, %s2024_s30   ;;  %vm1501_vm7 = vcmask 523264  }
  0x23   : > { %1785 = vmatprep.subr.bf16.mxu0 %v2034_v1  ;;  %1787 = vmatprep.mubr.msk.bf16.mxu0 %vm2035_vm0, %v2034_v1 }
  0x25   : > { %1794 = vmatpush3.bf16.msra.mxu1 %v1936_v3 }
  0x26   : > { %1786 = vmatpush3.bf16.msra.mxu0 %v1937_v4  ;;  %s621_s20 = scalar_lea.vmem %s2474_s4, %s2217_s25  ;;  %1805 = vmatprep.subr.bf16.mxu1 %v2034_v1  ;;  %s2040_s4 = smov 80  }
  0x27   : > { %v2224_v5 = vld [vmem:[%s621_s20] sm:$0xf]  ;;  %s617_s2 = scalar_lea.vmem %s2475_s23, %s2217_s25  ;;  %1799 = vmatprep.subr.bf16.mxu0 %v2034_v1  ;;  %s2041_s20 = smov 72  }
  0x28   : > { %1796 = vmatmul.mubr.msk.bf16.vlgmr.msra.gmra.mxu1 %vm652_vm1, %v2224_v5  ;;  %v2233_v6 = vld [vmem:[%s617_s2] sm:$0xf]  ;;  %s2036_s2 = smov 112   ;;  %s2042_s23 = smov 88  }
  0x29   : > { %1788 = vmatmul.mubr.msk.bf16.vlgmr.msra.gmra.mxu0 %vm652_vm1, %v2233_v6  ;;  %1807 = vmatprep.mubr.msk.bf16.mxu1 %vm2035_vm0, %v2034_v1 }
  0x2a   : > { %1801 = vmatprep.mubr.msk.bf16.mxu0 %vm2035_vm0, %v2034_v1 }
  0xe8   : > { %v757_v9 = vpop.f32.mrf.mxu1 }
  0xe9   : > { %v758_v10 = vadd.f32 %v1709_v7, %v757_v9  ;;  %v690_v11 = vpop.f32.mrf.mxu0 }
  0xea   : > { %v691_v12 = vadd.f32 %v1705_v8, %v690_v11  ;;  %v1797_v13 = vpop.f32.mrf.mxu1 }
  0xeb   : > { %v2247_v14 = vpack.c.bf16 %v758_v10, %v758_v10  ;;  %v1789_v15 = vpop.f32.mrf.mxu0 }
  0xec   : > { %v760_v16 = vpop.f32.mrf.mxu1  ;;  %v696_v17 = vpack.c.bf16 %v691_v12, %v691_v12 }
  0xed   : > { %988 = vrot.lane.b32.xlu1 %v2247_v14, %s2036_s2  ;;  %877 = vrot.lane.b32.xlu0 %v2247_v14, %s2037_s24  ;;  %v693_v18 = vpop.f32.mrf.mxu0  ;;  %v769_v19 = vsel %vm764_vm2, %v2247_v14, 0 }
  0xee   : > { %v1798_v20 = vpop.f32.mrf.mxu1  ;;  %1800 = vmatpush3.bf16.xpose.msra.mxu0 %v769_v19 }
  0xef   : > { %v1790_v21 = vpop.f32.mrf.mxu0  ;;  %1811 = vmatprep.subr.bf16.mxu0 %v2034_v1 }
  0xf1   : > { %986 = vrot.lane.b32.xlu1 %v696_v17, %s2036_s2  ;;  %875 = vrot.lane.b32.xlu0 %v696_v17, %s2037_s24  ;;  %s2043_s2 = smov 8  }
  0xf5   : > { %1097 = vrot.lane.b32.xlu1 %v696_v17, %s2038_s27  ;;  %1099 = vrot.lane.b32.xlu0 %v2247_v14, %s2038_s27  ;;  %s2349_s27 = sshll.u32 %s605_s22, 2 }
  0xf6   : > { %1802 = vmatmul.mubr.msk.bf16.vlgmr.msra.gmra.mxu0 %vm764_vm2, %v696_v17 }
  0xf7   : > { %1813 = vmatprep.mubr.msk.bf16.mxu0 %vm2035_vm0, %v2034_v1 }
 0x15f   : > { %v878_v22 = vpop.permute.xlu0 %877  ;;  %v989_v24 = vpop.permute.xlu1 %988 }
 0x160   : > { %v883_v23 = vsel %vm764_vm2, %v878_v22, 0  ;;  %v994_v26 = vsel %vm764_vm2, %v989_v24, 0 }
 0x161   : > { %1812 = vmatpush3.bf16.xpose.msra.mxu0 %v883_v23 }
 0x162   : > { %1823 = vmatprep.subr.bf16.mxu0 %v2034_v1 }
 0x163   : > { %v876_v25 = vpop.permute.xlu0 %875  ;;  %v987_v28 = vpop.permute.xlu1 %986 }
 0x167   : > { %v1100_v27 = vpop.permute.xlu0 %1099  ;;  %v1098_v30 = vpop.permute.xlu1 %1097 }
 0x168   : > { %1814 = vmatmul.mubr.msk.bf16.vlgmr.msra.gmra.mxu0 %vm764_vm2, %v876_v25  ;;  %v1105_v29 = vsel %vm764_vm2, %v1100_v27, 0 }
 0x169   : > { %1824 = vmatpush3.bf16.xpose.msra.mxu0 %v994_v26  ;;  %1825 = vmatprep.mubr.msk.bf16.mxu0 %vm2035_vm0, %v2034_v1 }
 0x16a   : > { %1835 = vmatprep.subr.bf16.mxu0 %v2034_v1 }
 0x170   : > { %1826 = vmatmul.mubr.msk.bf16.vlgmr.msra.gmra.mxu0 %vm764_vm2, %v987_v28 }
 0x171   : > { %1836 = vmatpush3.bf16.xpose.msra.mxu0 %v1105_v29  ;;  %1837 = vmatprep.mubr.msk.bf16.mxu0 %vm2035_vm0, %v2034_v1 }
 0x172   : > { %1847 = vmatprep.subr.bf16.mxu0 %v2034_v1 }
 0x178   : > { %1838 = vmatmul.mubr.msk.bf16.vlgmr.msra.gmra.mxu0 %vm764_vm2, %v1098_v30 }
 0x179   : > { %1851 = vmatprep.mubr.msk.bf16.mxu0 %vm2035_vm0, %v2034_v1 }
 0x1b6   : > { %v805_v31 = vpop.f32.mrf.mxu0 }
 0x1b7   : > { %v811_v32 = vmul.f32 0.35355338, %v805_v31 }
 0x1b8   : > { %v1803_v33 = vpop.f32.mrf.mxu0 }
 0x1b9   : > { %v812_v34 = vsel %vm764_vm2, %v811_v32, -inf }
 0x1ba   : > { %813 = vmax.xlane.f32.xlu0 %v812_v34  ;;  %v808_v35 = vpop.f32.mrf.mxu0 }
 0x1bc   : > { %v1804_v36 = vpop.f32.mrf.mxu0 }
 0x228   : > { %v919_v37 = vpop.f32.mrf.mxu0 }
 0x229   : > { %v925_v38 = vmul.f32 0.35355338, %v919_v37 }
 0x22a   : > { %v1815_v39 = vpop.f32.mrf.mxu0 }
 0x22b   : > { %v926_v40 = vsel %vm764_vm2, %v925_v38, -inf }
 0x22c   : > { %927 = vmax.xlane.f32.xlu1 %v926_v40  ;;  %v922_v41 = vpop.f32.mrf.mxu0 }
 0x22e   : > { %v1816_v42 = vpop.f32.mrf.mxu0 }
 0x22f   : > { %v1938_v42 = vld [vmem:[%s2478_s6 + $0x8] sm:$0xff]  }
 0x230   : > { %v1030_v43 = vpop.f32.mrf.mxu0  ;;  %1848 = vmatpush3.bf16.msra.mxu0 %v1938_v42 }
 0x231   : > { %v1036_v44 = vmul.f32 0.35355338, %v1030_v43  ;;  %1849 = vmatprep.subr.bf16.mxu0 %v2034_v1 }
 0x232   : > { %v1827_v45 = vpop.f32.mrf.mxu0 }
 0x233   : > { %v1037_v46 = vsel %vm764_vm2, %v1036_v44, -inf  ;;  %v1939_v45 = vld [vmem:[%s2478_s6] sm:$0xff]   ;;  %s2046_s6 = smov [#allocation2]  }
 0x234   : > { %1038 = vmax.xlane.f32.xlu0 %v1037_v46  ;;  %v1033_v47 = vpop.f32.mrf.mxu0  ;;  %1850 = vmatpush3.bf16.msra.mxu0 %v1939_v45 }
 0x235   : > { %1863 = vmatprep.subr.bf16.mxu0 %v2034_v1 }
 0x236   : > { %v1828_v48 = vpop.f32.mrf.mxu0 }
 0x238   : > { %v1141_v49 = vpop.f32.mrf.mxu0 }
 0x239   : > { %v1147_v50 = vmul.f32 0.35355338, %v1141_v49 }
 0x23a   : > { %v1839_v51 = vpop.f32.mrf.mxu0 }
 0x23b   : > { %v1148_v52 = vsel %vm764_vm2, %v1147_v50, -inf }
 0x23c   : > { %1149 = vmax.xlane.f32.xlu0 %v1148_v52  ;;  %v1144_v53 = vpop.f32.mrf.mxu0 }
 0x23e   : > { %v1840_v54 = vpop.f32.mrf.mxu0 }
 0x243   : > { %v814_v55 = vpop.xlane.xlu0 %813 }
 0x244   : > { %v815_v56 = vsub.f32 %v811_v32, %v814_v55 }
 0x246   : > { %v816_v57 = vmul.f32 1.442695, %v815_v56 }
 0x248   : > { %1948 = vpow2.f32 %v816_v57 }
 0x255   : > { %v1949_v58 = vpop.eup %1948 }
 0x256   : > { %v818_v59 = vsel %vm764_vm2, %v1949_v58, 0.0 }
 0x257   : > { %819 = vadd.xlane.f32.xlu1 %v818_v59 }
 0x268   : > { %825 = vrot.lane.b32.xlu1 %v2247_v14, %s2039_s28  ;;  %s2044_s28 = smov 16  }
 0x2b5   : > { %v928_v60 = vpop.xlane.xlu1 %927 }
 0x2b6   : > { %v929_v61 = vsub.f32 %v925_v38, %v928_v60 }
 0x2b8   : > { %v930_v62 = vmul.f32 1.442695, %v929_v61 }
 0x2ba   : > { %1950 = vpow2.f32 %v930_v62 }
 0x2bd   : > { %v1039_v63 = vpop.xlane.xlu0 %1038 }
 0x2be   : > { %v1040_v0 = vsub.f32 %v1036_v44, %v1039_v63  ;;  %v1940_v63 = vld [vmem:[%s2445_s12 + $0x8] sm:$0xff]  }
 0x2c0   : > { %v1041_v2 = vmul.f32 1.442695, %v1040_v0  ;;  %v1721_v0 = vld [vmem:[%s2479_s7] ss:$0 sm:$0xff]  ;;  %s1976_s7 = sshll.u32 %s2046_s6, 4  ;;  %s1977_s7 = int_to_ptr.vmem [resolvable:$false] %s1976_s7 }
 0x2c2   : > { %1952 = vpow2.f32 %v1041_v2  ;;  %v1292_v2 = vunpack.c.l.bf16 %v2233_v6 }
 0x2c5   : > { %v1150_v3 = vpop.xlane.xlu0 %1149 }
 0x2c6   : > { %v1151_v4 = vsub.f32 %v1147_v50, %v1150_v3 }
 0x2c7   : > { %v1951_v7 = vpop.eup %1950 }
 0x2c8   : > { %v1152_v8 = vmul.f32 1.442695, %v1151_v4  ;;  %v932_v9 = vsel %vm764_vm2, %v1951_v7, 0.0 }
 0x2c9   : > { %933 = vadd.xlane.f32.xlu0 %v932_v9 }
 0x2ca   : > { %1954 = vpow2.f32 %v1152_v8 }
 0x2cf   : > { %v1953_v10 = vpop.eup %1952 }
 0x2d0   : > { %v1043_v11 = vsel %vm764_vm2, %v1953_v10, 0.0 }
 0x2d1   : > { %1044 = vadd.xlane.f32.xlu1 %v1043_v11 }
 0x2d7   : > { %v1955_v12 = vpop.eup %1954 }
 0x2d8   : > { %v1154_v13 = vsel %vm764_vm2, %v1955_v12, 0.0 }
 0x2d9   : > { %1155 = vadd.xlane.f32.xlu0 %v1154_v13 }
 0x2e0   : > { %v820_v15 = vpop.xlane.xlu1 %819 }
 0x2e1   : > { %1956 = vrcp.f32 %v820_v15 }
 0x2e2   : > { %1049 = vrot.lane.b32.xlu1 %v2247_v14, %s2040_s4  ;;  %s2045_s4 = smov 24  }
 0x2e4   : > { %v826_v16 = vpop.permute.xlu1 %825 }
 0x2e5   : > { %v832_v17 = vsel %vm830_vm3, %v826_v16, 0 }
 0x2e6   : > { %1806 = vmatpush3.bf16.msra.mxu1 %v832_v17  ;;  %1160 = vrot.lane.b32.xlu1 %v2247_v14, %s2041_s20  ;;  %s607_s20 = scalar_lea.vmem [#allocation2], %s2349_s27 }
 0x2e7   : > { %1817 = vmatprep.subr.bf16.mxu1 %v2034_v1  ;;  %s1599_s29 = sshll.u32 %s607_s20, 4  ;;  %s1600_s29 = int_to_ptr.vmem [resolvable:$true] %s1599_s29 }
 0x2e8   : > { %s1972_s5 = scalar_lea.vmem %s1600_s29, 64  ;;  %p1979_p0 = scmp.lt.s32.totalorder %s1600_s29, %s1977_s7 }
 0x2e9   : > { %p1973_p11 = scmp.ne.s32.totalorder %s1600_s29, %s1972_s5 }
 0x2eb   : > { %p1974_p12 = pnand %p1973_p11, %p2185_p5 }
 0x2ed   : > { %p1975_p13 = pneg %p1974_p12 }
 0x2ee   : > { %v1957_v18 = vpop.eup %1956 }
 0x2ef   : > { %938 = vrot.lane.b32.xlu0 %v2247_v14, %s2042_s23  ;;  %v822_v19 = vmul.f32 %v1957_v18, %v1949_v58  ;;  %v1942_v18 = vld [vmem:[%s2443_s10 + $0x8] sm:$0xff]   ;;  %s1744_s23 = sshll.u32 %s2168_s1, 6 }
 0x2f1   : > { %v823_v20 = vpack.c.bf16 %v822_v19, %v822_v19  ;;  %v1943_v19 = vld [vmem:[%s2443_s10] sm:$0xff]  }
 0x2f3   : > { %1808 = vmatmul.mubr.msk.bf16.vlgmr.msra.gmra.mxu1 %vm764_vm2, %v823_v20 }
 0x2f4   : > { %1819 = vmatprep.mubr.msk.bf16.mxu1 %vm2035_vm0, %v2034_v1 }
 0x352   : > { %v934_v21 = vpop.xlane.xlu0 %933 }
 0x353   : > { %1958 = vrcp.f32 %v934_v21 }
 0x35a   : > { %v1045_v22 = vpop.xlane.xlu1 %1044 }
 0x35b   : > { %1960 = vrcp.f32 %v1045_v22 }
 0x35e   : > { %v1050_v28 = vpop.permute.xlu1 %1049 }
 0x35f   : > { %v1055_v30 = vsel %vm830_vm3, %v1050_v28, 0  ;;  %v1725_v28 = vld [vmem:[%s2480_s8] ss:$0 sm:$0xff]  ;;  %s1978_s8 = scalar_lea.vmem %s1977_s7, 128 }
 0x360   : > { %v1959_v23 = vpop.eup %1958  ;;  %p1980_p1 = scmp.lt.s32.totalorder %s1978_s8, %s1972_s5 }
 0x361   : > { %v936_v25 = vmul.f32 %v1959_v23, %v1951_v7 }
 0x362   : > { %v1156_v24 = vpop.xlane.xlu0 %1155  ;;  %v1161_v32 = vpop.permute.xlu1 %1160  ;;  %p1981_p2 = por %p1980_p1, %p1979_p0 }
 0x363   : > { %1962 = vrcp.f32 %v1156_v24  ;;  %v937_v14 = vpack.c.bf16 %v936_v25, %v936_v25  ;;  %v1166_v35 = vsel %vm830_vm3, %v1161_v32, 0  ;;  %v1944_v32 = vld [vmem:[%s2447_s14 + $0x18] sm:$0xff]  }
 0x364   : > { %p1982_p3 = pnand %p1981_p2, %p1975_p13 }
 0x366   : > { %v939_v26 = vpop.permute.xlu0 %938 }
 0x367   : > { %v944_v27 = vsel %vm830_vm3, %v939_v26, 0 }
 0x368   : > { %1818 = vmatpush3.bf16.msra.mxu1 %v944_v27  ;;  %v1961_v29 = vpop.eup %1960 }
 0x369   : > { %1829 = vmatprep.subr.bf16.mxu1 %v2034_v1  ;;  %v1047_v31 = vmul.f32 %v1961_v29, %v1953_v10  ;;  %v1726_v29 = vld [vmem:[%s2442_s9] ss:$0 sm:$0xff] }
 0x36b   : > { %1820 = vmatmul.mubr.msk.bf16.vlgmr.msra.gmra.mxu1 %vm764_vm2, %v937_v14  ;;  %v1048_v33 = vpack.c.bf16 %v1047_v31, %v1047_v31 }
 0x36c   : > { %1830 = vmatpush3.bf16.msra.mxu1 %v1055_v30  ;;  %1831 = vmatprep.mubr.msk.bf16.mxu1 %vm2035_vm0, %v2034_v1 }
 0x36d   : > { %1841 = vmatprep.subr.bf16.mxu1 %v2034_v1 }
 0x370   : > { %v1963_v34 = vpop.eup %1962 }
 0x371   : > { %v1158_v36 = vmul.f32 %v1963_v34, %v1955_v12  ;;  %v1941_v12 = vld [vmem:[%s2445_s12] sm:$0xff]   ;;  %v1945_v34 = vld [vmem:[%s2447_s14 + $0x10] sm:$0xff]  }
 0x373   : > { %1832 = vmatmul.mubr.msk.bf16.vlgmr.msra.gmra.mxu1 %vm764_vm2, %v1048_v33  ;;  %v1159_v37 = vpack.c.bf16 %v1158_v36, %v1158_v36 }
 0x374   : > { %1842 = vmatpush3.bf16.msra.mxu1 %v1166_v35  ;;  %1843 = vmatprep.mubr.msk.bf16.mxu1 %vm2035_vm0, %v2034_v1  ;;  %v1731_v35 = vld [vmem:[%s2446_s13] ss:$0 sm:$0xff] }
 0x375   : > { %1855 = vmatprep.subr.bf16.mxu1 %v2034_v1 }
 0x37b   : > { %1844 = vmatmul.mubr.msk.bf16.vlgmr.msra.gmra.mxu1 %vm764_vm2, %v1159_v37  ;;  %v1946_v37 = vld [vmem:[%s2447_s14 + $0x8] sm:$0xff]  }
 0x37c   : > { %1859 = vmatprep.mubr.msk.bf16.mxu1 %vm2035_vm0, %v2034_v1  ;;  %1856 = vmatpush3.bf16.msra.mxu1 %v1942_v18 }
 0x37d   : > { %1857 = vmatprep.subr.bf16.mxu1 %v2034_v1 }
 0x380   : > { %1858 = vmatpush3.bf16.msra.mxu1 %v1943_v19 }
 0x381   : > { %1871 = vmatprep.subr.bf16.mxu1 %v2034_v1 }
 0x3b3   : > { %v868_v38 = vpop.f32.mrf.mxu1 }
 0x3b5   : > { %v1809_v39 = vpop.f32.mrf.mxu1 }
 0x3b6   : > { %v1947_v39 = vld [vmem:[%s2447_s14] sm:$0xff]  }
 0x3b7   : > { %v871_v40 = vpop.f32.mrf.mxu1 }
 0x3b9   : > { %v1810_v41 = vpop.f32.mrf.mxu1 }
 0x3ba   : > { %v1727_v41 = vld [vmem:[%s2444_s11] ss:$0 sm:$0xff] }
 0x42b   : > { %v980_v43 = vpop.f32.mrf.mxu1 }
 0x42c   : > { %1209 = vrot.lane.b32.xlu0 %v980_v43, %s2043_s2 }
 0x42d   : > { %v1821_v44 = vpop.f32.mrf.mxu1 }
 0x42f   : > { %v983_v46 = vpop.f32.mrf.mxu1 }
 0x431   : > { %v1822_v47 = vpop.f32.mrf.mxu1 }
 0x433   : > { %v1091_v48 = vpop.f32.mrf.mxu1 }
 0x434   : > { %1213 = vrot.lane.b32.xlu1 %v1091_v48, %s2044_s28  ;;  %s1597_s28 = scalar_lea.hbm %s2451_s18, %s1744_s23 }
 0x435   : > { %v1833_v49 = vpop.f32.mrf.mxu1 }
 0x437   : > { %v1094_v50 = vpop.f32.mrf.mxu1 }
 0x439   : > { %v1834_v51 = vpop.f32.mrf.mxu1 }
 0x43b   : > { %v1202_v52 = vpop.f32.mrf.mxu1 }
 0x43c   : > { %1217 = vrot.lane.b32.xlu0 %v1202_v52, %s2045_s4  ;;  %s1582_s4 = scalar_lea.sflag [#allocation3], %s605_s22 }
 0x43d   : > { %v1845_v53 = vpop.f32.mrf.mxu1 }
 0x43f   : > { %v1205_v54 = vpop.f32.mrf.mxu1 }
 0x440   : > { %v1735_v54 = vld [vmem:[%s2448_s15] ss:$0 sm:$0xff] }
 0x441   : > { %v1846_v55 = vpop.f32.mrf.mxu1 }
 0x49e   : > { %v1210_v56 = vpop.permute.xlu0 %1209 }
 0x49f   : > { %v1220_v58 = vsel %vm764_vm2, %v868_v38, %v1210_v56  ;;  %v1545_v56 = vunpack.c.l.bf16 %v2224_v5 }
 0x4a6   : > { %v1214_v57 = vpop.permute.xlu1 %1213 }
 0x4a7   : > { %v1222_v59 = vsel %vm1221_vm4, %v1220_v58, %v1214_v57 }
 0x4ae   : > { %v1218_v60 = vpop.permute.xlu0 %1217 }
 0x4af   : > { %v1224_v61 = vsel %vm1223_vm5, %v1222_v59, %v1218_v60 }
 0x4b0   : > { %v1225_v62 = vpack.c.bf16 %v1224_v61, %v1224_v61 }
 0x4b2   : > { %1852 = vmatmul.mubr.msk.bf16.vlgmr.msra.gmra.mxu0 %vm652_vm1, %v1225_v62 }
 0x4b3   : > { %1867 = vmatprep.mubr.msk.bf16.mxu0 %vm2035_vm0, %v2034_v1  ;;  %1864 = vmatpush3.bf16.msra.mxu0 %v1940_v63 }
 0x4b4   : > { %1865 = vmatprep.subr.bf16.mxu0 %v2034_v1 }
 0x4b7   : > { %1866 = vmatpush3.bf16.msra.mxu0 %v1941_v12 }
 0x4ba   : > { %1868 = vmatmul.mubr.msk.bf16.vlgmr.msra.gmra.mxu0 %vm652_vm1, %v2224_v5 }
 0x572   : > { %v1286_v3 = vpop.f32.mrf.mxu0 }
 0x573   : > { %v1287_v4 = vadd.f32 %v1721_v0, %v1286_v3 }
 0x574   : > { %v1853_v7 = vpop.f32.mrf.mxu0 }
 0x575   : > { %v1293_v8 = vadd.f32 %v1292_v2, %v1287_v4 }
 0x576   : > { %v1289_v9 = vpop.f32.mrf.mxu0 }
 0x577   : > { %v1296_v10 = vsel %vm652_vm1, %v1293_v8, 0.0 }
 0x578   : > { %1297 = vadd.xlane.f32.xlu1 %v1296_v10  ;;  %v1854_v11 = vpop.f32.mrf.mxu0 }
 0x57a   : > { %v1454_v20 = vpop.f32.mrf.mxu0 }
 0x57b   : > { %v1455_v36 = vadd.f32 %v1731_v35, %v1454_v20 }
 0x57c   : > { %v1869_v21 = vpop.f32.mrf.mxu0 }
 0x57d   : > { %v1460_v38 = vmax.f32 %v1455_v36, 0.0 }
 0x57e   : > { %v1457_v22 = vpop.f32.mrf.mxu0 }
 0x57f   : > { %v1461_v40 = vpack.c.bf16 %v1460_v38, %v1460_v38 }
 0x580   : > { %v1870_v23 = vpop.f32.mrf.mxu0 }
 0x601   : > { %v1298_v13 = vpop.xlane.xlu1 %1297 }
 0x602   : > { %v1300_v15 = vmul.f32 0.03125, %v1298_v13 }
 0x604   : > { %v1301_v6 = vsub.f32 %v1293_v8, %v1300_v15 }
 0x606   : > { %v1302_v16 = vmul.f32 %v1301_v6, %v1301_v6 }
 0x608   : > { %v1303_v17 = vsel %vm652_vm1, %v1302_v16, 0.0 }
 0x609   : > { %1304 = vadd.xlane.f32.xlu0 %v1303_v17 }
 0x692   : > { %v1305_v24 = vpop.xlane.xlu0 %1304 }
 0x693   : > { %v1306_v25 = vmul.f32 0.03125, %v1305_v24 }
 0x695   : > { %v1307_v26 = vadd.f32 1e-05, %v1306_v25 }
 0x697   : > { %1964 = vrsqrt.f32 %v1307_v26 }
 0x6a4   : > { %v1965_v27 = vpop.eup %1964 }
 0x6a5   : > { %v1309_v14 = vmul.f32 %v1965_v27, %v1301_v6 }
 0x6a7   : > { %v1316_v30 = vmul.f32 %v1725_v28, %v1309_v14 }
 0x6a9   : > { %v1323_v31 = vadd.f32 %v1726_v29, %v1316_v30 }
 0x6ab   : > { %v1324_v33 = vpack.c.bf16 %v1323_v31, %v1323_v31 }
 0x6ad   : > { %1860 = vmatmul.mubr.msk.bf16.vlgmr.msra.gmra.mxu1 %vm652_vm1, %v1324_v33  ;;  %1578 = vst.msk [vmem:[%s607_s20] sm:$0xf] %vm1577_vm6, %v1324_v33 }
 0x6ae   : > { %1872 = vmatpush3.bf16.msra.mxu1 %v1944_v32  ;;  %1879 = vmatprep.mubr.msk.bf16.mxu1 %vm2035_vm0, %v2034_v1 }
 0x6af   : > { %1873 = vmatprep.subr.bf16.mxu1 %v2034_v1 }
 0x6b2   : > { %1874 = vmatpush3.bf16.msra.mxu1 %v1945_v34 }
 0x6b3   : > { %1875 = vmatprep.subr.bf16.mxu1 %v2034_v1 }
 0x6b6   : > { %1876 = vmatpush3.bf16.msra.mxu1 %v1946_v37 }
 0x6b7   : > { %1877 = vmatprep.subr.bf16.mxu1 %v2034_v1 }
 0x6ba   : > { %1878 = vmatpush3.bf16.msra.mxu1 %v1947_v39 }
 0x6bd   : > { %1880 = vmatmul.mubr.msk.bf16.vlgmr.msra.gmra.mxu1 %vm1501_vm7, %v1461_v40 }
 0x76d   : > { %v1385_v42 = vpop.f32.mrf.mxu1 }
 0x76e   : > { %v1386_v43 = vadd.f32 %v1727_v41, %v1385_v42 }
 0x76f   : > { %v1861_v44 = vpop.f32.mrf.mxu1 }
 0x770   : > { %v1391_v45 = vsub.f32 0.0, %v1386_v43 }
 0x771   : > { %v1388_v46 = vpop.f32.mrf.mxu1 }
 0x772   : > { %v1392_v47 = vmul.f32 1.442695, %v1391_v45 }
 0x773   : > { %v1862_v48 = vpop.f32.mrf.mxu1 }
 0x774   : > { %1966 = vpow2.f32 %v1392_v47 }
 0x77d   : > { %v1539_v49 = vpop.f32.mrf.mxu1 }
 0x77e   : > { %v1540_v55 = vadd.f32 %v1735_v54, %v1539_v49 }
 0x77f   : > { %v1881_v50 = vpop.f32.mrf.mxu1 }
 0x781   : > { %v1967_v51 = vpop.eup %1966  ;;  %v1542_v1 = vpop.f32.mrf.mxu1 }
 0x782   : > { %v1394_v52 = vadd.f32 1.0, %v1967_v51 }
 0x783   : > { %v1882_v53 = vpop.f32.mrf.mxu1 }
 0x784   : > { %1968 = vrcp.f32 %v1394_v52 }
 0x791   : > { %v1969_v57 = vpop.eup %1968 }
 0x792   : > { %v1546_v58 = vmul.f32 %v1969_v57, %v1540_v55 }
 0x794   : > { %v1547_v59 = vadd.f32 %v1546_v58, %v1545_v56 }
 0x796   : > { %v1550_v60 = vsel %vm652_vm1, %v1547_v59, 0.0 }
 0x797   : > { %1551 = vadd.xlane.f32.xlu0 %v1550_v60 }
 0x820   : > { %v1552_v61 = vpop.xlane.xlu0 %1551 }
 0x821   : > { %v1553_v62 = vmul.f32 0.03125, %v1552_v61 }
 0x823   : > { %v1554_v63 = vsub.f32 %v1547_v59, %v1553_v62 }
 0x825   : > { %v1555_v0 = vmul.f32 %v1554_v63, %v1554_v63 }
 0x827   : > { %v1556_v2 = vsel %vm652_vm1, %v1555_v0, 0.0 }
 0x828   : > { %1557 = vadd.xlane.f32.xlu1 %v1556_v2 }
 0x829   : > { %1985 = shalt.err (!%p1982_p3)
}
 0x82a   : > { %s1986_s1 = scalar_lea.hbm %s1597_s28, 64  ;;  %s1990_s20 = scalar_lea.hbm %s2451_s18, 128 }
 0x82b   : > { %p1987_p4 = scmp.ne.s32.totalorder %s1597_s28, %s1986_s1  ;;  %p1991_p9 = scmp.lt.s32.totalorder %s1597_s28, %s2451_s18 }
 0x82c   : > { %p1992_p10 = scmp.lt.s32.totalorder %s1990_s20, %s1986_s1 }
 0x82d   : > { %p1988_p7 = pnand %p1987_p4, %p2185_p5 }
 0x82e   : > { %p1993_p11 = por %p1992_p10, %p1991_p9 }
 0x82f   : > { %p1989_p8 = pneg %p1988_p7 }
 0x831   : > { %p1994_p12 = pnand %p1993_p11, %p1989_p8 }
 0x833   : > { %1997 = shalt.err (!%p1994_p12)
}
 0x834   : > { %1883 = dma.vmem_to_hbm [thread:$0]  (%p2185_p5), %s1600_s29, 64, %s1597_s28, %s1582_s4   ;;  %v1741_v8 = vld [vmem:[%s2449_s16] ss:$0 sm:$0xff] }
 0x835   : > { %v1742_v10 = vld [vmem:[%s2450_s17] ss:$0 sm:$0xff]  ;;  %s625_s29 = scalar_lea.vmem %s2452_s19, %s2217_s25 }
 0x8b1   : > { %v1558_v5 = vpop.xlane.xlu1 %1557 }
 0x8b2   : > { %v1559_v3 = vmul.f32 0.03125, %v1558_v5 }
 0x8b4   : > { %v1560_v4 = vadd.f32 1e-05, %v1559_v3 }
 0x8b6   : > { %1970 = vrsqrt.f32 %v1560_v4 }
 0x8c3   : > { %v1971_v7 = vpop.eup %1970 }
 0x8c4   : > { %v1562_v9 = vmul.f32 %v1971_v7, %v1554_v63 }
 0x8c6   : > { %v1569_v11 = vmul.f32 %v1741_v8, %v1562_v9 }
 0x8c8   : > { %v1576_v12 = vadd.f32 %v1742_v10, %v1569_v11 }
 0x8ca   : > { %v1579_v13 = vpack.c.bf16 %v1576_v12, %v1576_v12 }
 0x8cc   : > { %1580 = vst.msk [vmem:[%s625_s29] sm:$0xf] %vm1577_vm6, %v1579_v13 }
 0x8cd PF: > { %p1889_p5 = scmp.ge.s32.totalorder %s2032_s21, 2  ;;  %s1614_s28 = sand.u32 1, %s2020_s0  }
 0x8ce   : > { %s1615_s4 = scalar_lea.sflag [#allocation3], %s1614_s28 }
 0x8cf   : > { %p1886_p13 = pnand %p1889_p5, %p2189_p6 }
 0x8d1   : > { %p1887_p0 = pneg %p1886_p13 }
 0x8d3   : > { %2015 = dma.done.wait (%p1887_p0), %s1615_s4, 64  }
 0x8d4   : > { %2017 = vsyncadd (%p1887_p0), %s1615_s4, 4294967232  ;;  %s2481_s21 = sld [smem:[#allocation6_spill]]  ;;  %s2484_s0 = smov %s2024_s30 }
 0x8d5   : > { %s2482_s1 = sld [smem:[#allocation5_spill]] }
 0x8d6   : > { %s2483_s20 = sld [smem:[#allocation7_spill]] }
 0x8da   : > { %p30_p1 = scmp.ge.s32.totalorder %s2481_s21, 4  }
 0x8db   : > { %s2485_s30 = smov %s2482_s1 }
 0x8dc   :  { %32 = sbr.rel (!%p30_p1) target bundleno = 13 (0xd), region = 142 }
 0x8e1   :  { %1627 = vsyncpa [#allocation3], 1 }
 0x8e2   :  { %1629 = vsyncpa [#allocation3 + $0x1], 1 }

</bundles_post_ra>
